<compile_context>
chip_gen: v7x
topology: tpu7x:2x2x1
jax: 0.10.0
libtpu: 0.0.40
codegen_flags: <defaults>
</compile_context>

<pallas_src>
import functools

import jax
import jax.numpy as jnp
from jax import lax
from jax.experimental import pallas as pl
from jax.experimental.pallas import tpu as pltpu


def _round_up(x, m):
    return (x + m - 1) // m * m


# ---------------------------------------------------------------------------
# Tiled Pallas matmul: relu?(a @ b + bias).  bf16 MXU inputs, fp32 accumulate.
# ---------------------------------------------------------------------------
def _matmul_kernel(a_ref, b_ref, bias_ref, o_ref, acc_ref, *, relu):
    k = pl.program_id(2)

    @pl.when(k == 0)
    def _():
        acc_ref[...] = jnp.zeros_like(acc_ref)

    acc_ref[...] += jnp.dot(a_ref[...], b_ref[...],
                            preferred_element_type=jnp.float32)

    @pl.when(k == pl.num_programs(2) - 1)
    def _():
        r = acc_ref[...] + bias_ref[...]
        if relu:
            r = jnp.maximum(r, 0.0)
        o_ref[...] = r.astype(o_ref.dtype)


def pallas_matmul(a, b, bias, relu=False, tm=256, tn=256,
                  out_dtype=jnp.float32):
    """relu?(a @ b + bias).  a: (M, K), b: (K, N) (ideally pre-cast bf16),
    bias: (N,) fp32.  Returns (M, N) in out_dtype."""
    M, K = a.shape
    N = b.shape[1]

    a = a.astype(jnp.bfloat16)
    b = b.astype(jnp.bfloat16)
    bias = bias.astype(jnp.float32)

    # Pad only ragged remainders (no full re-write for already-aligned layers).
    Kp = _round_up(K, 128)
    if Kp != K:
        a = jnp.pad(a, ((0, 0), (0, Kp - K)))
        b = jnp.pad(b, ((0, Kp - K), (0, 0)))
    Ma = _round_up(M, 8)
    if Ma != M:
        a = jnp.pad(a, ((0, Ma - M), (0, 0)))
    Np = _round_up(N, 128)
    if Np != N:
        b = jnp.pad(b, ((0, 0), (0, Np - N)))
        bias = jnp.pad(bias, (0, Np - N))
    bias2d = bias.reshape(1, Np)

    # K tile: largest candidate dividing Kp (K-axis raggedness would corrupt
    # the accumulation; M/N ragged edges are harmless and get clipped).
    tk = next(c for c in (1024, 768, 640, 512, 384, 256, 128) if Kp % c == 0)
    tm = min(tm, Ma)
    tn = min(tn, Np)
    grid = (pl.cdiv(Ma, tm), pl.cdiv(Np, tn), Kp // tk)

    out = pl.pallas_call(
        functools.partial(_matmul_kernel, relu=relu),
        out_shape=jax.ShapeDtypeStruct((Ma, Np), out_dtype),
        grid=grid,
        in_specs=[
            pl.BlockSpec((tm, tk), lambda i, j, k: (i, k)),
            pl.BlockSpec((tk, tn), lambda i, j, k: (k, j)),
            pl.BlockSpec((1, tn), lambda i, j, k: (0, j)),
        ],
        out_specs=pl.BlockSpec((tm, tn), lambda i, j, k: (i, j)),
        scratch_shapes=[pltpu.VMEM((tm, tn), jnp.float32)],
        compiler_params=pltpu.CompilerParams(
            dimension_semantics=("parallel", "parallel", "arbitrary")),
    )(a, b, bias2d)
    return out[:M, :N]


# ---------------------------------------------------------------------------
# Convolutions.
# ---------------------------------------------------------------------------
def conv_im2col(x, w2, b, kh, kw, pad, relu=False, out_dtype=jnp.float32):
    """Conv2d as im2col + tiled Pallas matmul.  Used only for conv2 (64 input
    channels), where the kh*kw duplication is cheap and K is MXU-friendly."""
    N, H, W, Ci = x.shape
    Co = b.shape[0]
    xp = jnp.pad(x.astype(jnp.bfloat16),
                 ((0, 0), (pad, pad), (pad, pad), (0, 0)))
    Ho = H + 2 * pad - kh + 1
    Wo = W + 2 * pad - kw + 1
    cols = [xp[:, dy:dy + Ho, dx:dx + Wo, :]
            for dy in range(kh) for dx in range(kw)]
    patches = jnp.concatenate(cols, axis=-1)       # (N, Ho, Wo, kh*kw*Ci) bf16
    y = pallas_matmul(patches.reshape(N * Ho * Wo, kh * kw * Ci), w2, b,
                      relu=relu, out_dtype=out_dtype)
    return y.reshape(N, Ho, Wo, Co)


def conv_xla(x, w_hwio, b, pad, relu=False):
    """Direct conv for the memory-bound 256/512-channel layers (and conv1,
    whose im2col K=9 would be padded to 128)."""
    y = lax.conv_general_dilated(
        x.astype(jnp.bfloat16), w_hwio,
        window_strides=(1, 1), padding=((pad, pad), (pad, pad)),
        dimension_numbers=("NHWC", "HWIO", "NHWC"),
        preferred_element_type=jnp.float32)
    y = y + b
    if relu:
        y = jnp.maximum(y, 0.0)
    return y


def maxpool(x, kernel, stride, pad):
    """MaxPool2d on NHWC (PyTorch semantics: -inf implicit padding, floor)."""
    return lax.reduce_window(
        x, -jnp.inf, lax.max,
        window_dimensions=(1, kernel[0], kernel[1], 1),
        window_strides=(1, stride[0], stride[1], 1),
        padding=((0, 0), (pad[0], pad[0]), (pad[1], pad[1]), (0, 0)),
    )


def batchnorm_train(x, gamma, beta, eps=1e-5):
    """BatchNorm2d in training mode (batch statistics, biased var).  x: NHWC."""
    mean = x.mean(axis=(0, 1, 2))
    var = x.var(axis=(0, 1, 2))
    return (x - mean) * (gamma / jnp.sqrt(var + eps)) + beta


# ---------------------------------------------------------------------------
# Bidirectional LSTM recurrence kernel.
#   grid = (direction, time-chunk); direction is "parallel" (each v7x TC runs
#   one direction), time-chunk is "arbitrary" (h/c carried in VMEM scratch).
#   The dir-1 half reads its gate columns via the index_map, walks time in
#   reverse *inside* the kernel, and writes h at the natural time index into
#   its half of the (T, Bp, 2H) output -> zero host-side layout work.
# ---------------------------------------------------------------------------
def lstm_recurrence(xp, w_hh_stk):
    """xp:       (T, Bp, 8H) bf16, x_t @ W_ih^T + b_ih + b_hh; columns
                 [0,4H) are direction 0, [4H,8H) direction 1.  Bp % 8 == 0.
       w_hh_stk: (2, H, 4H) bf16, per-direction recurrent weights, transposed.
       Returns  (T, Bp, 2H) fp32: [h_fwd | h_bwd] per timestep, natural order.
    """
    T, Bp, G2 = xp.shape
    G = G2 // 2
    H = w_hh_stk.shape[1]

    # Time chunk: ~6 MiB of xp per buffer (bf16).  VMEM (double buffered
    # in + out, plus weights/scratch) stays < ~20 MiB -> fits every generation
    # with the explicit 32 MiB limit below.
    bytes_per_step = Bp * G * 2
    Tc = max(1, min(T, (6 << 20) // bytes_per_step))
    grid_t = pl.cdiv(T, Tc)

    def time_block(d, c):
        # d == 0: forward order c; d == 1: reverse order grid_t-1-c.
        return d * (grid_t - 1) + (1 - 2 * d) * c

    def kernel(xp_ref, whh_ref, out_ref, h_scr, c_scr):
        d = pl.program_id(0)
        ci = pl.program_id(1)

        @pl.when(ci == 0)
        def _():
            h_scr[...] = jnp.zeros_like(h_scr)
            c_scr[...] = jnp.zeros_like(c_scr)

        tb = d * (grid_t - 1) + (1 - 2 * d) * ci       # time-block index
        n_valid = jnp.minimum(Tc, T - tb * Tc)         # valid rows in block

        def step(i, carry):
            h, c_st = carry
            # Row within the chunk: forward for d=0, reversed for d=1.
            r = d * (n_valid - 1) + (1 - 2 * d) * i
            rec = jnp.dot(h.astype(jnp.bfloat16), whh_ref[0],
                          preferred_element_type=jnp.float32)   # (Bp, 4H)
            gates = xp_ref[r].astype(jnp.float32) + rec
            i_g = jax.nn.sigmoid(gates[:, 0 * H:1 * H])
            f_g = jax.nn.sigmoid(gates[:, 1 * H:2 * H])
            g_g = jnp.tanh(gates[:, 2 * H:3 * H])
            o_g = jax.nn.sigmoid(gates[:, 3 * H:4 * H])
            c_st = f_g * c_st + i_g * g_g
            h = o_g * jnp.tanh(c_st)
            out_ref[r] = h                              # natural time index
            return h, c_st

        h_f, c_f = lax.fori_loop(0, n_valid, step, (h_scr[...], c_scr[...]))
        h_scr[...] = h_f
        c_scr[...] = c_f

    return pl.pallas_call(
        kernel,
        out_shape=jax.ShapeDtypeStruct((T, Bp, 2 * H), jnp.float32),
        grid=(2, grid_t),
        in_specs=[
            # Gate-column half d of xp, time block tb(d, c).
            pl.BlockSpec((Tc, Bp, G), lambda d, c: (time_block(d, c), 0, d)),
            # Per-direction W_hh^T.
            pl.BlockSpec((1, H, 4 * H), lambda d, c: (d, 0, 0)),
        ],
        # Direction d writes its H-wide half of the concatenated output.
        out_specs=pl.BlockSpec((Tc, Bp, H),
                               lambda d, c: (time_block(d, c), 0, d)),
        scratch_shapes=[
            pltpu.VMEM((Bp, H), jnp.float32),
            pltpu.VMEM((Bp, H), jnp.float32),
        ],
        compiler_params=pltpu.CompilerParams(
            # Directions are independent -> "parallel" (2x on v7x megacore);
            # time chunks carry scratch state -> must stay "arbitrary".
            dimension_semantics=("parallel", "arbitrary"),
            vmem_limit_bytes=32 * 1024 * 1024),
    )(xp.astype(jnp.bfloat16), w_hh_stk.astype(jnp.bfloat16))


# ---------------------------------------------------------------------------
# BiRNN: 2-layer bidirectional LSTM + FC (torch.nn.LSTM gate order i,f,g,o).
# ---------------------------------------------------------------------------
def birnn_forward(prep, x, num_classes, hidden=256, num_layers=2):
    T, B, _ = x.shape
    Bp = _round_up(B, 8)          # fill the 8 sublanes in the recurrence kernel
    layer_in = x
    if Bp != B:
        # Pad batch ONCE; padded rows are bounded (sigmoid/tanh), never read.
        layer_in = jnp.pad(layer_in, ((0, 0), (0, Bp - B), (0, 0)))

    for l in range(num_layers):
        # Both directions' input projections in ONE tiled matmul:
        # (T*Bp, F) @ (F, 8H) -> bf16 pre-activations, no layout shuffling.
        xp = pallas_matmul(layer_in.reshape(T * Bp, -1),
                           prep[f"l{l}_w_ih_cat"], prep[f"l{l}_bias_cat"],
                           tn=512, out_dtype=jnp.bfloat16)
        xp = xp.reshape(T, Bp, 8 * hidden)
        # Kernel emits (T, Bp, 2H) = [h_fwd | h_bwd] directly.
        layer_in = lstm_recurrence(xp, prep[f"l{l}_w_hh_stk"])

    out = pallas_matmul(layer_in.reshape(T * Bp, 2 * hidden),
                        prep["fc_w_t"], prep["fc_b"], tn=512)
    return out.reshape(T, Bp, num_classes)[:, :B, :]


# ---------------------------------------------------------------------------
# Full CRNN forward (takes the prepared / pre-transposed params).
# ---------------------------------------------------------------------------
def crnn_forward(prep, x_nchw, num_classes):
    x = jnp.transpose(x_nchw, (0, 2, 3, 1)).astype(jnp.float32)  # NCHW -> NHWC

    x = conv_xla(x, prep["conv1_w"], prep["conv1_b"], pad=1, relu=True)
    x = maxpool(x, (2, 2), (2, 2), (0, 0))
    x = conv_im2col(x, prep["conv2_w2"], prep["conv2_b"], 3, 3, pad=1,
                    relu=True, out_dtype=jnp.bfloat16)
    x = maxpool(x, (2, 2), (2, 2), (0, 0))
    x = conv_xla(x, prep["conv3_w"], prep["conv3_b"], pad=1)
    x = jnp.maximum(batchnorm_train(x, prep["bn1_g"], prep["bn1_b"]), 0.0)
    x = conv_xla(x, prep["conv4_w"], prep["conv4_b"], pad=1, relu=True)
    x = maxpool(x, (2, 2), (2, 1), (0, 1))
    x = conv_xla(x, prep["conv5_w"], prep["conv5_b"], pad=1)
    x = jnp.maximum(batchnorm_train(x, prep["bn2_g"], prep["bn2_b"]), 0.0)
    x = conv_xla(x, prep["conv6_w"], prep["conv6_b"], pad=1)
    x = maxpool(x, (2, 2), (2, 1), (0, 1))
    x = conv_xla(x, prep["conv7_w"], prep["conv7_b"], pad=0)
    x = jnp.maximum(batchnorm_train(x, prep["bn3_g"], prep["bn3_b"]), 0.0)

    # x is NHWC (N, 1, W', 512)  ==  PyTorch NCHW (N, 512, 1, W')
    # PyTorch: squeeze(2).permute(2, 0, 1)  ->  (W', N, 512)
    seq = jnp.transpose(x[:, 0, :, :], (1, 0, 2))
    return birnn_forward(prep, seq, num_classes)


# ---------------------------------------------------------------------------
# One-time weight preparation (all transposes / reshapes / bf16 casts hoisted
# out of the per-call forward path).
# ---------------------------------------------------------------------------
def prepare_params(params, hidden=256):
    prep = {}
    # conv2: im2col matmul weights (kh*kw*Ci, Co) in bf16.
    w = params["conv2_w"]                             # (Co, Ci, kh, kw)
    co, ci, kh, kw = w.shape
    prep["conv2_w2"] = jnp.transpose(w, (2, 3, 1, 0)).reshape(
        kh * kw * ci, co).astype(jnp.bfloat16)
    prep["conv2_b"] = params["conv2_b"]
    # conv1, conv3..conv7: HWIO weights (bf16) for the direct conv path.
    for name in ("conv1", "conv3", "conv4", "conv5", "conv6", "conv7"):
        prep[name + "_w"] = jnp.transpose(
            params[name + "_w"], (2, 3, 1, 0)).astype(jnp.bfloat16)
        prep[name + "_b"] = params[name + "_b"]
    for name in ("bn1", "bn2", "bn3"):
        prep[name + "_g"] = params[name + "_g"]
        prep[name + "_b"] = params[name + "_b"]
    # LSTM: combined (both-direction) input projection + stacked W_hh^T.
    for l in range(2):
        w0 = params[f"lstm_l{l}_d0_w_ih"]
        w1 = params[f"lstm_l{l}_d1_w_ih"]
        prep[f"l{l}_w_ih_cat"] = jnp.concatenate(
            [jnp.transpose(w0), jnp.transpose(w1)], axis=1).astype(jnp.bfloat16)
        prep[f"l{l}_bias_cat"] = jnp.concatenate(
            [params[f"lstm_l{l}_d0_b_ih"] + params[f"lstm_l{l}_d0_b_hh"],
             params[f"lstm_l{l}_d1_b_ih"] + params[f"lstm_l{l}_d1_b_hh"]], axis=0)
        prep[f"l{l}_w_hh_stk"] = jnp.stack(
            [jnp.transpose(params[f"lstm_l{l}_d0_w_hh"]),
             jnp.transpose(params[f"lstm_l{l}_d1_w_hh"])], axis=0).astype(jnp.bfloat16)
    prep["fc_w_t"] = jnp.transpose(params["fc_w"]).astype(jnp.bfloat16)
    prep["fc_b"] = params["fc_b"]
    return prep


# ---------------------------------------------------------------------------
# Deterministic parameter initialization (PyTorch-style uniform bounds).
# ---------------------------------------------------------------------------
def init_params(key, num_classes, hidden=256):
    params = {}
    keys = iter(jax.random.split(key, 64))

    def uni(shape, bound):
        return jax.random.uniform(next(keys), shape, jnp.float32, -bound, bound)

    conv_cfg = [
        ("conv1", 1, 64, 3), ("conv2", 64, 128, 3), ("conv3", 128, 256, 3),
        ("conv4", 256, 256, 3), ("conv5", 256, 512, 3), ("conv6", 512, 512, 3),
        ("conv7", 512, 512, 2),
    ]
    for name, ci, co, k in conv_cfg:
        bound = 1.0 / (ci * k * k) ** 0.5
        params[name + "_w"] = uni((co, ci, k, k), bound)
        params[name + "_b"] = uni((co,), bound)

    for name, c in [("bn1", 256), ("bn2", 512), ("bn3", 512)]:
        params[name + "_g"] = jnp.ones((c,), jnp.float32)
        params[name + "_b"] = jnp.zeros((c,), jnp.float32)

    bound = 1.0 / hidden ** 0.5
    for l in range(2):
        in_sz = 512 if l == 0 else 2 * hidden
        for d in range(2):
            p = f"lstm_l{l}_d{d}_"
            params[p + "w_ih"] = uni((4 * hidden, in_sz), bound)
            params[p + "w_hh"] = uni((4 * hidden, hidden), bound)
            params[p + "b_ih"] = uni((4 * hidden,), bound)
            params[p + "b_hh"] = uni((4 * hidden,), bound)

    bound = 1.0 / (2 * hidden) ** 0.5
    params["fc_w"] = uni((num_classes, 2 * hidden), bound)
    params["fc_b"] = uni((num_classes,), bound)
    return params


if __name__ == "__main__":
    num_classes = 11
    key = jax.random.PRNGKey(0)
    k_param, k_in = jax.random.split(key)

    params = init_params(k_param, num_classes)
    prep = prepare_params(params)          # one-time weight prep, outside fwd

    # Height must be 32 so the CNN collapses it to 1 (as the module requires);
    # width 16 gives a short sequence (T = 5) after the CNN.
    x = jax.random.normal(k_in, (2, 1, 32, 16), jnp.float32)   # NCHW like PyTorch

    fwd = jax.jit(functools.partial(crnn_forward, num_classes=num_classes))
    out = jax.block_until_ready(fwd(prep, x))

    assert out.shape == (5, 2, num_classes), out.shape
    print("KERNEL_OK")
</pallas_src>

<mosaic_0001>
module attributes {stable_mosaic.version = 11 : i64} {
  func.func @_matmul_kernel(%arg0: i32, %arg1: i32, %arg2: i32, %arg3: memref<256x640xbf16, #tpu.memory_space<vmem>>, %arg4: memref<640x128xbf16, #tpu.memory_space<vmem>>, %arg5: memref<1x128xf32, #tpu.memory_space<vmem>>, %arg6: memref<256x128xbf16, #tpu.memory_space<vmem>>, %arg7: memref<256x128xf32, #tpu.memory_space<vmem>>) attributes {dimension_semantics = [#tpu.dimension_semantics<parallel>, #tpu.dimension_semantics<parallel>, #tpu.dimension_semantics<arbitrary>], iteration_bounds = array<i64: 1, 1, 1>, scalar_prefetch = 0 : i64, scratch_operands = 1 : i64, tpu.core_type = #tpu.core_type<tc>, window_params = [{transform_indices = @transform_0, window_bounds = array<i64: 256, 640>}, {transform_indices = @transform_1, window_bounds = array<i64: 640, 128>}, {transform_indices = @transform_2, window_bounds = array<i64: 1, 128>}, {transform_indices = @transform_3, window_bounds = array<i64: 256, 128>}]} {
    %c0_i32 = arith.constant 0 : i32
    %0 = arith.cmpi eq, %arg2, %c0_i32 : i32
    %1 = arith.extui %0 : i1 to i32
    %c0_i32_0 = arith.constant 0 : i32
    %2 = arith.cmpi ne, %1, %c0_i32_0 : i32
    scf.if %2 {
      %cst_10 = arith.constant 0.000000e+00 : f32
      %12 = vector.broadcast %cst_10 : f32 to vector<256x128xf32>
      %c0_11 = arith.constant 0 : index
      %c0_12 = arith.constant 0 : index
      %13 = vector.load %arg7[%c0_11, %c0_12] : memref<256x128xf32, #tpu.memory_space<vmem>>, vector<256x128xf32>
      tpu.vector_store %arg7[%c0_11, %c0_12], %12 {strides = array<i32>} : memref<256x128xf32, #tpu.memory_space<vmem>>, vector<256x128xf32>,
    } else {
    }
    %c0 = arith.constant 0 : index
    %c0_1 = arith.constant 0 : index
    %3 = vector.load %arg7[%c0, %c0_1] : memref<256x128xf32, #tpu.memory_space<vmem>>, vector<256x128xf32>
    %c0_2 = arith.constant 0 : index
    %c0_3 = arith.constant 0 : index
    %4 = vector.load %arg3[%c0_2, %c0_3] : memref<256x640xbf16, #tpu.memory_space<vmem>>, vector<256x640xbf16>
    %c0_4 = arith.constant 0 : index
    %c0_5 = arith.constant 0 : index
    %5 = vector.load %arg4[%c0_4, %c0_5] : memref<640x128xbf16, #tpu.memory_space<vmem>>, vector<640x128xbf16>
    %cst = arith.constant dense<0.000000e+00> : vector<256x128xf32>
    %6 = tpu.matmul %4, %5, %cst {dimension_numbers = #tpu.dot_dimension_numbers<[1], [0], [0], [1], [0, 0, 1, 1], [], []>} : vector<256x640xbf16>, vector<640x128xbf16>, vector<256x128xf32> -> vector<256x128xf32>
    %7 = arith.addf %3, %6 : vector<256x128xf32>
    %c0_6 = arith.constant 0 : index
    %c0_7 = arith.constant 0 : index
    %8 = vector.load %arg7[%c0_6, %c0_7] : memref<256x128xf32, #tpu.memory_space<vmem>>, vector<256x128xf32>
    tpu.vector_store %arg7[%c0_6, %c0_7], %7 {strides = array<i32>} : memref<256x128xf32, #tpu.memory_space<vmem>>, vector<256x128xf32>,
    %c0_i32_8 = arith.constant 0 : i32
    %9 = arith.cmpi eq, %arg2, %c0_i32_8 : i32
    %10 = arith.extui %9 : i1 to i32
    %c0_i32_9 = arith.constant 0 : i32
    %11 = arith.cmpi ne, %10, %c0_i32_9 : i32
    scf.if %11 {
      %c0_10 = arith.constant 0 : index
      %c0_11 = arith.constant 0 : index
      %12 = vector.load %arg7[%c0_10, %c0_11] : memref<256x128xf32, #tpu.memory_space<vmem>>, vector<256x128xf32>
      %c0_12 = arith.constant 0 : index
      %c0_13 = arith.constant 0 : index
      %13 = vector.load %arg5[%c0_12, %c0_13] : memref<1x128xf32, #tpu.memory_space<vmem>>, vector<1x128xf32>
      %14 = vector.broadcast %13 : vector<1x128xf32> to vector<256x128xf32>
      %15 = arith.addf %12, %14 : vector<256x128xf32>
      %cst_14 = arith.constant 0.000000e+00 : f32
      %16 = vector.broadcast %cst_14 : f32 to vector<256x128xf32>
      %17 = arith.maximumf %15, %16 : vector<256x128xf32>
      %18 = arith.truncf %17 : vector<256x128xf32> to vector<256x128xbf16>
      %c0_15 = arith.constant 0 : index
      %c0_16 = arith.constant 0 : index
      %19 = vector.load %arg6[%c0_15, %c0_16] : memref<256x128xbf16, #tpu.memory_space<vmem>>, vector<256x128xbf16>
      tpu.vector_store %arg6[%c0_15, %c0_16], %18 {strides = array<i32>} : memref<256x128xbf16, #tpu.memory_space<vmem>>, vector<256x128xbf16>,
    } else {
    }
    return
  }
  func.func @transform_0(%arg0: i32, %arg1: i32, %arg2: i32) -> (i32, i32) {
    %c0_i32 = arith.constant 0 : i32
    return %arg0, %arg2 : i32, i32
  }
  func.func @transform_1(%arg0: i32, %arg1: i32, %arg2: i32) -> (i32, i32) {
    %c0_i32 = arith.constant 0 : i32
    return %arg2, %arg1 : i32, i32
  }
  func.func @transform_2(%arg0: i32, %arg1: i32, %arg2: i32) -> (i32, i32) {
    %c0_i32 = arith.constant 0 : i32
    %c0_i32_0 = arith.constant 0 : i32
    return %c0_i32, %arg1 : i32, i32
  }
  func.func @transform_3(%arg0: i32, %arg1: i32, %arg2: i32) -> (i32, i32) {
    %c0_i32 = arith.constant 0 : i32
    return %arg0, %arg1 : i32, i32
  }
}

module attributes {stable_mosaic.version = 11 : i64} {
  func.func @_matmul_kernel(%arg0: i32, %arg1: i32, %arg2: i32, %arg3: memref<40x512xbf16, #tpu.memory_space<vmem>>, %arg4: memref<512x512xbf16, #tpu.memory_space<vmem>>, %arg5: memref<1x512xf32, #tpu.memory_space<vmem>>, %arg6: memref<40x512xbf16, #tpu.memory_space<vmem>>, %arg7: memref<40x512xf32, #tpu.memory_space<vmem>>) attributes {dimension_semantics = [#tpu.dimension_semantics<parallel>, #tpu.dimension_semantics<parallel>, #tpu.dimension_semantics<arbitrary>], iteration_bounds = array<i64: 1, 4, 1>, scalar_prefetch = 0 : i64, scratch_operands = 1 : i64, tpu.core_type = #tpu.core_type<tc>, window_params = [{transform_indices = @transform_0, window_bounds = array<i64: 40, 512>}, {transform_indices = @transform_1, window_bounds = array<i64: 512, 512>}, {transform_indices = @transform_2, window_bounds = array<i64: 1, 512>}, {transform_indices = @transform_3, window_bounds = array<i64: 40, 512>}]} {
    %c0_i32 = arith.constant 0 : i32
    %0 = arith.cmpi eq, %arg2, %c0_i32 : i32
    %1 = arith.extui %0 : i1 to i32
    %c0_i32_0 = arith.constant 0 : i32
    %2 = arith.cmpi ne, %1, %c0_i32_0 : i32
    scf.if %2 {
      %cst_10 = arith.constant 0.000000e+00 : f32
      %12 = vector.broadcast %cst_10 : f32 to vector<40x512xf32>
      %c0_11 = arith.constant 0 : index
      %c0_12 = arith.constant 0 : index
      %13 = vector.load %arg7[%c0_11, %c0_12] : memref<40x512xf32, #tpu.memory_space<vmem>>, vector<40x512xf32>
      tpu.vector_store %arg7[%c0_11, %c0_12], %12 {strides = array<i32>} : memref<40x512xf32, #tpu.memory_space<vmem>>, vector<40x512xf32>,
    } else {
    }
    %c0 = arith.constant 0 : index
    %c0_1 = arith.constant 0 : index
    %3 = vector.load %arg7[%c0, %c0_1] : memref<40x512xf32, #tpu.memory_space<vmem>>, vector<40x512xf32>
    %c0_2 = arith.constant 0 : index
    %c0_3 = arith.constant 0 : index
    %4 = vector.load %arg3[%c0_2, %c0_3] : memref<40x512xbf16, #tpu.memory_space<vmem>>, vector<40x512xbf16>
    %c0_4 = arith.constant 0 : index
    %c0_5 = arith.constant 0 : index
    %5 = vector.load %arg4[%c0_4, %c0_5] : memref<512x512xbf16, #tpu.memory_space<vmem>>, vector<512x512xbf16>
    %cst = arith.constant dense<0.000000e+00> : vector<40x512xf32>
    %6 = tpu.matmul %4, %5, %cst {dimension_numbers = #tpu.dot_dimension_numbers<[1], [0], [0], [1], [0, 0, 1, 1], [], []>} : vector<40x512xbf16>, vector<512x512xbf16>, vector<40x512xf32> -> vector<40x512xf32>
    %7 = arith.addf %3, %6 : vector<40x512xf32>
    %c0_6 = arith.constant 0 : index
    %c0_7 = arith.constant 0 : index
    %8 = vector.load %arg7[%c0_6, %c0_7] : memref<40x512xf32, #tpu.memory_space<vmem>>, vector<40x512xf32>
    tpu.vector_store %arg7[%c0_6, %c0_7], %7 {strides = array<i32>} : memref<40x512xf32, #tpu.memory_space<vmem>>, vector<40x512xf32>,
    %c0_i32_8 = arith.constant 0 : i32
    %9 = arith.cmpi eq, %arg2, %c0_i32_8 : i32
    %10 = arith.extui %9 : i1 to i32
    %c0_i32_9 = arith.constant 0 : i32
    %11 = arith.cmpi ne, %10, %c0_i32_9 : i32
    scf.if %11 {
      %c0_10 = arith.constant 0 : index
      %c0_11 = arith.constant 0 : index
      %12 = vector.load %arg7[%c0_10, %c0_11] : memref<40x512xf32, #tpu.memory_space<vmem>>, vector<40x512xf32>
      %c0_12 = arith.constant 0 : index
      %c0_13 = arith.constant 0 : index
      %13 = vector.load %arg5[%c0_12, %c0_13] : memref<1x512xf32, #tpu.memory_space<vmem>>, vector<1x512xf32>
      %14 = vector.broadcast %13 : vector<1x512xf32> to vector<40x512xf32>
      %15 = arith.addf %12, %14 : vector<40x512xf32>
      %16 = arith.truncf %15 : vector<40x512xf32> to vector<40x512xbf16>
      %c0_14 = arith.constant 0 : index
      %c0_15 = arith.constant 0 : index
      %17 = vector.load %arg6[%c0_14, %c0_15] : memref<40x512xbf16, #tpu.memory_space<vmem>>, vector<40x512xbf16>
      tpu.vector_store %arg6[%c0_14, %c0_15], %16 {strides = array<i32>} : memref<40x512xbf16, #tpu.memory_space<vmem>>, vector<40x512xbf16>,
    } else {
    }
    return
  }
  func.func @transform_0(%arg0: i32, %arg1: i32, %arg2: i32) -> (i32, i32) {
    %c0_i32 = arith.constant 0 : i32
    return %arg0, %arg2 : i32, i32
  }
  func.func @transform_1(%arg0: i32, %arg1: i32, %arg2: i32) -> (i32, i32) {
    %c0_i32 = arith.constant 0 : i32
    return %arg2, %arg1 : i32, i32
  }
  func.func @transform_2(%arg0: i32, %arg1: i32, %arg2: i32) -> (i32, i32) {
    %c0_i32 = arith.constant 0 : i32
    %c0_i32_0 = arith.constant 0 : i32
    return %c0_i32, %arg1 : i32, i32
  }
  func.func @transform_3(%arg0: i32, %arg1: i32, %arg2: i32) -> (i32, i32) {
    %c0_i32 = arith.constant 0 : i32
    return %arg0, %arg1 : i32, i32
  }
}

module attributes {stable_mosaic.version = 11 : i64} {
  func.func @kernel(%arg0: i32, %arg1: i32, %arg2: memref<5x8x1024xbf16, #tpu.memory_space<vmem>>, %arg3: memref<1x256x1024xbf16, #tpu.memory_space<vmem>>, %arg4: memref<5x8x256xf32, #tpu.memory_space<vmem>>, %arg5: memref<8x256xf32, #tpu.memory_space<vmem>>, %arg6: memref<8x256xf32, #tpu.memory_space<vmem>>) attributes {dimension_semantics = [#tpu.dimension_semantics<parallel>, #tpu.dimension_semantics<arbitrary>], iteration_bounds = array<i64: 2, 1>, scalar_prefetch = 0 : i64, scratch_operands = 2 : i64, tpu.core_type = #tpu.core_type<tc>, window_params = [{transform_indices = @transform_0, window_bounds = array<i64: 5, 8, 1024>}, {transform_indices = @transform_1, window_bounds = array<i64: 1, 256, 1024>}, {transform_indices = @transform_2, window_bounds = array<i64: 5, 8, 256>}]} {
    %c0_i32 = arith.constant 0 : i32
    %0 = arith.cmpi eq, %arg1, %c0_i32 : i32
    %1 = arith.extui %0 : i1 to i32
    %c0_i32_0 = arith.constant 0 : i32
    %2 = arith.cmpi ne, %1, %c0_i32_0 : i32
    scf.if %2 {
      %cst = arith.constant 0.000000e+00 : f32
      %18 = vector.broadcast %cst : f32 to vector<8x256xf32>
      %c0_13 = arith.constant 0 : index
      %c0_14 = arith.constant 0 : index
      %19 = vector.load %arg5[%c0_13, %c0_14] : memref<8x256xf32, #tpu.memory_space<vmem>>, vector<8x256xf32>
      tpu.vector_store %arg5[%c0_13, %c0_14], %18 {strides = array<i32>} : memref<8x256xf32, #tpu.memory_space<vmem>>, vector<8x256xf32>,
      %cst_15 = arith.constant 0.000000e+00 : f32
      %20 = vector.broadcast %cst_15 : f32 to vector<8x256xf32>
      %c0_16 = arith.constant 0 : index
      %c0_17 = arith.constant 0 : index
      %21 = vector.load %arg6[%c0_16, %c0_17] : memref<8x256xf32, #tpu.memory_space<vmem>>, vector<8x256xf32>
      tpu.vector_store %arg6[%c0_16, %c0_17], %20 {strides = array<i32>} : memref<8x256xf32, #tpu.memory_space<vmem>>, vector<8x256xf32>,
    } else {
    }
    %c0_i32_1 = arith.constant 0 : i32
    %3 = arith.muli %arg0, %c0_i32_1 : i32
    %c2_i32 = arith.constant 2 : i32
    %4 = arith.muli %c2_i32, %arg0 : i32
    %c1_i32 = arith.constant 1 : i32
    %5 = arith.subi %c1_i32, %4 : i32
    %6 = arith.muli %5, %arg1 : i32
    %7 = arith.addi %3, %6 : i32
    %c5_i32 = arith.constant 5 : i32
    %8 = arith.muli %7, %c5_i32 : i32
    %c5_i32_2 = arith.constant 5 : i32
    %9 = arith.subi %c5_i32_2, %8 : i32
    %c5_i32_3 = arith.constant 5 : i32
    %10 = arith.minsi %c5_i32_3, %9 : i32
    %c0 = arith.constant 0 : index
    %c0_4 = arith.constant 0 : index
    %11 = vector.load %arg5[%c0, %c0_4] : memref<8x256xf32, #tpu.memory_space<vmem>>, vector<8x256xf32>
    %c0_5 = arith.constant 0 : index
    %c0_6 = arith.constant 0 : index
    %12 = vector.load %arg6[%c0_5, %c0_6] : memref<8x256xf32, #tpu.memory_space<vmem>>, vector<8x256xf32>
    %c0_i32_7 = arith.constant 0 : i32
    %13 = arith.subi %10, %c0_i32_7 : i32
    %14 = arith.addi %c0_i32_7, %13 : i32
    %c1_i32_8 = arith.constant 1 : i32
    %15:2 = scf.for %arg7 = %c0_i32_7 to %14 step %c1_i32_8 iter_args(%arg8 = %11, %arg9 = %12) -> (vector<8x256xf32>, vector<8x256xf32>)  : i32 {
      %c1_i32_13 = arith.constant 1 : i32
      %18 = arith.subi %10, %c1_i32_13 : i32
      %19 = arith.muli %arg0, %18 : i32
      %c2_i32_14 = arith.constant 2 : i32
      %20 = arith.muli %c2_i32_14, %arg0 : i32
      %c1_i32_15 = arith.constant 1 : i32
      %21 = arith.subi %c1_i32_15, %20 : i32
      %22 = arith.muli %21, %arg7 : i32
      %23 = arith.addi %19, %22 : i32
      %24 = arith.truncf %arg8 : vector<8x256xf32> to vector<8x256xbf16>
      %c0_16 = arith.constant 0 : index
      %c0_17 = arith.constant 0 : index
      %c0_18 = arith.constant 0 : index
      %25 = vector.load %arg3[%c0_16, %c0_17, %c0_18] : memref<1x256x1024xbf16, #tpu.memory_space<vmem>>, vector<1x256x1024xbf16>
      %26 = vector.shape_cast %25 : vector<1x256x1024xbf16> to vector<256x1024xbf16>
      %cst = arith.constant dense<0.000000e+00> : vector<8x1024xf32>
      %27 = tpu.matmul %24, %26, %cst {dimension_numbers = #tpu.dot_dimension_numbers<[1], [0], [0], [1], [0, 0, 1, 1], [], []>} : vector<8x256xbf16>, vector<256x1024xbf16>, vector<8x1024xf32> -> vector<8x1024xf32>
      %28 = arith.index_cast %23 : i32 to index
      %c0_19 = arith.constant 0 : index
      %c0_20 = arith.constant 0 : index
      %29 = vector.load %arg2[%28, %c0_19, %c0_20] : memref<5x8x1024xbf16, #tpu.memory_space<vmem>>, vector<1x8x1024xbf16>
      %30 = vector.shape_cast %29 : vector<1x8x1024xbf16> to vector<8x1024xbf16>
      %31 = arith.extf %30 : vector<8x1024xbf16> to vector<8x1024xf32>
      %32 = arith.addf %31, %27 : vector<8x1024xf32>
      %33 = vector.extract_strided_slice %32 {offsets = [0, 0], sizes = [8, 256], strides = [1, 1]} : vector<8x1024xf32> to vector<8x256xf32>
      %34 = arith.negf %33 : vector<8x256xf32>
      %35 = math.exp %34 : vector<8x256xf32>
      %cst_21 = arith.constant 1.000000e+00 : f32
      %36 = vector.broadcast %cst_21 : f32 to vector<8x256xf32>
      %37 = arith.addf %36, %35 : vector<8x256xf32>
      %38 = arith.divf %36, %37 : vector<8x256xf32>
      %39 = vector.extract_strided_slice %32 {offsets = [0, 256], sizes = [8, 256], strides = [1, 1]} : vector<8x1024xf32> to vector<8x256xf32>
      %40 = arith.negf %39 : vector<8x256xf32>
      %41 = math.exp %40 : vector<8x256xf32>
      %cst_22 = arith.constant 1.000000e+00 : f32
      %42 = vector.broadcast %cst_22 : f32 to vector<8x256xf32>
      %43 = arith.addf %42, %41 : vector<8x256xf32>
      %44 = arith.divf %42, %43 : vector<8x256xf32>
      %45 = vector.extract_strided_slice %32 {offsets = [0, 512], sizes = [8, 256], strides = [1, 1]} : vector<8x1024xf32> to vector<8x256xf32>
      %46 = math.tanh %45 : vector<8x256xf32>
      %47 = vector.extract_strided_slice %32 {offsets = [0, 768], sizes = [8, 256], strides = [1, 1]} : vector<8x1024xf32> to vector<8x256xf32>
      %48 = arith.negf %47 : vector<8x256xf32>
      %49 = math.exp %48 : vector<8x256xf32>
      %cst_23 = arith.constant 1.000000e+00 : f32
      %50 = vector.broadcast %cst_23 : f32 to vector<8x256xf32>
      %51 = arith.addf %50, %49 : vector<8x256xf32>
      %52 = arith.divf %50, %51 : vector<8x256xf32>
      %53 = arith.mulf %44, %arg9 : vector<8x256xf32>
      %54 = arith.mulf %38, %46 : vector<8x256xf32>
      %55 = arith.addf %53, %54 : vector<8x256xf32>
      %56 = math.tanh %55 : vector<8x256xf32>
      %57 = arith.mulf %52, %56 : vector<8x256xf32>
      %58 = arith.index_cast %23 : i32 to index
      %c0_24 = arith.constant 0 : index
      %c0_25 = arith.constant 0 : index
      %59 = vector.load %arg4[%58, %c0_24, %c0_25] : memref<5x8x256xf32, #tpu.memory_space<vmem>>, vector<1x8x256xf32>
      %60 = vector.shape_cast %59 : vector<1x8x256xf32> to vector<8x256xf32>
      %61 = vector.shape_cast %57 : vector<8x256xf32> to vector<1x8x256xf32>
      tpu.vector_store %arg4[%58, %c0_24, %c0_25], %61 {strides = array<i32>} : memref<5x8x256xf32, #tpu.memory_space<vmem>>, vector<1x8x256xf32>,
      scf.yield %57, %55 : vector<8x256xf32>, vector<8x256xf32>
    }
    %c0_9 = arith.constant 0 : index
    %c0_10 = arith.constant 0 : index
    %16 = vector.load %arg5[%c0_9, %c0_10] : memref<8x256xf32, #tpu.memory_space<vmem>>, vector<8x256xf32>
    tpu.vector_store %arg5[%c0_9, %c0_10], %15#0 {strides = array<i32>} : memref<8x256xf32, #tpu.memory_space<vmem>>, vector<8x256xf32>,
    %c0_11 = arith.constant 0 : index
    %c0_12 = arith.constant 0 : index
    %17 = vector.load %arg6[%c0_11, %c0_12] : memref<8x256xf32, #tpu.memory_space<vmem>>, vector<8x256xf32>
    tpu.vector_store %arg6[%c0_11, %c0_12], %15#1 {strides = array<i32>} : memref<8x256xf32, #tpu.memory_space<vmem>>, vector<8x256xf32>,
    return
  }
  func.func @transform_0(%arg0: i32, %arg1: i32) -> (i32, i32, i32) {
    %c0_i32 = arith.constant 0 : i32
    %0 = arith.muli %arg0, %c0_i32 : i32
    %c2_i32 = arith.constant 2 : i32
    %1 = arith.muli %c2_i32, %arg0 : i32
    %c1_i32 = arith.constant 1 : i32
    %2 = arith.subi %c1_i32, %1 : i32
    %3 = arith.muli %2, %arg1 : i32
    %4 = arith.addi %0, %3 : i32
    %c0_i32_0 = arith.constant 0 : i32
    %c0_i32_1 = arith.constant 0 : i32
    return %4, %c0_i32_0, %arg0 : i32, i32, i32
  }
  func.func @transform_1(%arg0: i32, %arg1: i32) -> (i32, i32, i32) {
    %c0_i32 = arith.constant 0 : i32
    %c0_i32_0 = arith.constant 0 : i32
    %c0_i32_1 = arith.constant 0 : i32
    return %arg0, %c0_i32, %c0_i32_0 : i32, i32, i32
  }
  func.func @transform_2(%arg0: i32, %arg1: i32) -> (i32, i32, i32) {
    %c0_i32 = arith.constant 0 : i32
    %0 = arith.muli %arg0, %c0_i32 : i32
    %c2_i32 = arith.constant 2 : i32
    %1 = arith.muli %c2_i32, %arg0 : i32
    %c1_i32 = arith.constant 1 : i32
    %2 = arith.subi %c1_i32, %1 : i32
    %3 = arith.muli %2, %arg1 : i32
    %4 = arith.addi %0, %3 : i32
    %c0_i32_0 = arith.constant 0 : i32
    %c0_i32_1 = arith.constant 0 : i32
    return %4, %c0_i32_0, %arg0 : i32, i32, i32
  }
}

module attributes {stable_mosaic.version = 11 : i64} {
  func.func @_matmul_kernel(%arg0: i32, %arg1: i32, %arg2: i32, %arg3: memref<40x512xbf16, #tpu.memory_space<vmem>>, %arg4: memref<512x128xbf16, #tpu.memory_space<vmem>>, %arg5: memref<1x128xf32, #tpu.memory_space<vmem>>, %arg6: memref<40x128xf32, #tpu.memory_space<vmem>>, %arg7: memref<40x128xf32, #tpu.memory_space<vmem>>) attributes {dimension_semantics = [#tpu.dimension_semantics<parallel>, #tpu.dimension_semantics<parallel>, #tpu.dimension_semantics<arbitrary>], iteration_bounds = array<i64: 1, 1, 1>, scalar_prefetch = 0 : i64, scratch_operands = 1 : i64, tpu.core_type = #tpu.core_type<tc>, window_params = [{transform_indices = @transform_0, window_bounds = array<i64: 40, 512>}, {transform_indices = @transform_1, window_bounds = array<i64: 512, 128>}, {transform_indices = @transform_2, window_bounds = array<i64: 1, 128>}, {transform_indices = @transform_3, window_bounds = array<i64: 40, 128>}]} {
    %c0_i32 = arith.constant 0 : i32
    %0 = arith.cmpi eq, %arg2, %c0_i32 : i32
    %1 = arith.extui %0 : i1 to i32
    %c0_i32_0 = arith.constant 0 : i32
    %2 = arith.cmpi ne, %1, %c0_i32_0 : i32
    scf.if %2 {
      %cst_10 = arith.constant 0.000000e+00 : f32
      %12 = vector.broadcast %cst_10 : f32 to vector<40x128xf32>
      %c0_11 = arith.constant 0 : index
      %c0_12 = arith.constant 0 : index
      %13 = vector.load %arg7[%c0_11, %c0_12] : memref<40x128xf32, #tpu.memory_space<vmem>>, vector<40x128xf32>
      tpu.vector_store %arg7[%c0_11, %c0_12], %12 {strides = array<i32>} : memref<40x128xf32, #tpu.memory_space<vmem>>, vector<40x128xf32>,
    } else {
    }
    %c0 = arith.constant 0 : index
    %c0_1 = arith.constant 0 : index
    %3 = vector.load %arg7[%c0, %c0_1] : memref<40x128xf32, #tpu.memory_space<vmem>>, vector<40x128xf32>
    %c0_2 = arith.constant 0 : index
    %c0_3 = arith.constant 0 : index
    %4 = vector.load %arg3[%c0_2, %c0_3] : memref<40x512xbf16, #tpu.memory_space<vmem>>, vector<40x512xbf16>
    %c0_4 = arith.constant 0 : index
    %c0_5 = arith.constant 0 : index
    %5 = vector.load %arg4[%c0_4, %c0_5] : memref<512x128xbf16, #tpu.memory_space<vmem>>, vector<512x128xbf16>
    %cst = arith.constant dense<0.000000e+00> : vector<40x128xf32>
    %6 = tpu.matmul %4, %5, %cst {dimension_numbers = #tpu.dot_dimension_numbers<[1], [0], [0], [1], [0, 0, 1, 1], [], []>} : vector<40x512xbf16>, vector<512x128xbf16>, vector<40x128xf32> -> vector<40x128xf32>
    %7 = arith.addf %3, %6 : vector<40x128xf32>
    %c0_6 = arith.constant 0 : index
    %c0_7 = arith.constant 0 : index
    %8 = vector.load %arg7[%c0_6, %c0_7] : memref<40x128xf32, #tpu.memory_space<vmem>>, vector<40x128xf32>
    tpu.vector_store %arg7[%c0_6, %c0_7], %7 {strides = array<i32>} : memref<40x128xf32, #tpu.memory_space<vmem>>, vector<40x128xf32>,
    %c0_i32_8 = arith.constant 0 : i32
    %9 = arith.cmpi eq, %arg2, %c0_i32_8 : i32
    %10 = arith.extui %9 : i1 to i32
    %c0_i32_9 = arith.constant 0 : i32
    %11 = arith.cmpi ne, %10, %c0_i32_9 : i32
    scf.if %11 {
      %c0_10 = arith.constant 0 : index
      %c0_11 = arith.constant 0 : index
      %12 = vector.load %arg7[%c0_10, %c0_11] : memref<40x128xf32, #tpu.memory_space<vmem>>, vector<40x128xf32>
      %c0_12 = arith.constant 0 : index
      %c0_13 = arith.constant 0 : index
      %13 = vector.load %arg5[%c0_12, %c0_13] : memref<1x128xf32, #tpu.memory_space<vmem>>, vector<1x128xf32>
      %14 = vector.broadcast %13 : vector<1x128xf32> to vector<40x128xf32>
      %15 = arith.addf %12, %14 : vector<40x128xf32>
      %c0_14 = arith.constant 0 : index
      %c0_15 = arith.constant 0 : index
      %16 = vector.load %arg6[%c0_14, %c0_15] : memref<40x128xf32, #tpu.memory_space<vmem>>, vector<40x128xf32>
      tpu.vector_store %arg6[%c0_14, %c0_15], %15 {strides = array<i32>} : memref<40x128xf32, #tpu.memory_space<vmem>>, vector<40x128xf32>,
    } else {
    }
    return
  }
  func.func @transform_0(%arg0: i32, %arg1: i32, %arg2: i32) -> (i32, i32) {
    %c0_i32 = arith.constant 0 : i32
    return %arg0, %arg2 : i32, i32
  }
  func.func @transform_1(%arg0: i32, %arg1: i32, %arg2: i32) -> (i32, i32) {
    %c0_i32 = arith.constant 0 : i32
    return %arg2, %arg1 : i32, i32
  }
  func.func @transform_2(%arg0: i32, %arg1: i32, %arg2: i32) -> (i32, i32) {
    %c0_i32 = arith.constant 0 : i32
    %c0_i32_0 = arith.constant 0 : i32
    return %c0_i32, %arg1 : i32, i32
  }
  func.func @transform_3(%arg0: i32, %arg1: i32, %arg2: i32) -> (i32, i32) {
    %c0_i32 = arith.constant 0 : i32
    return %arg0, %arg1 : i32, i32
  }
}

</mosaic_0001>

<bundles_post_ra>
// kernel: crnn_forward.6
= control target key start
LH: loop header
LB: loop body
LE: loop exit
PB: predicated region body
PF: predicated region fallthrough
CT: control target
= control target key end

     0   :  { %s3055_s1 = inlined_call_operand.vmem [shape: bf16[640,128], index: 1, kind: input, shape index: {}]   ;;  %s3056_s0 = inlined_call_operand.vmem [shape: bf16[256,640], index: 0, kind: input, shape index: {}]   ;;  %s3057_s2 = inlined_call_operand.vmem [shape: f32[1,128], index: 2, kind: input, shape index: {}]   ;;  %s3058_s3 = inlined_call_operand.vmem [shape: bf16[256,128], index: 3, kind: output, shape index: {}]  }
   0x1   :  { %v2324_v0 = vld [vmem:[%s3055_s1 + $0x40] sm:$0xff]   ;;  %v2326_v2 = vld [vmem:[%s3055_s1 + $0x48] sm:$0xff]   ;;  %v2328_v4 = vld [vmem:[%s3055_s1 + $0x50] sm:$0xff]  }
   0x2   :  { %v2325_v1 = vld [vmem:[%s3055_s1] sm:$0xff]   ;;  %2012 = vmatprep.subr.bf16.mxu0 %v2324_v0  ;;  %2308 = vmatprep.subr.bf16.mxu1 %v2324_v0  ;;  %v2327_v3 = vld [vmem:[%s3055_s1 + $0x8] sm:$0xff]   ;;  %v2329_v5 = vld [vmem:[%s3055_s1 + $0x10] sm:$0xff]  }
   0x3   :  { %2013 = vmatpush3.bf16.msra.mxu0 %v2325_v1  ;;  %2316 = vmatpush3.bf16.msra.mxu1 %v2325_v1  ;;  %v2330_v6 = vld [vmem:[%s3055_s1 + $0x58] sm:$0xff]   ;;  %v2332_v8 = vld [vmem:[%s3055_s1 + $0x60] sm:$0xff]   ;;  %v2334_v10 = vld [vmem:[%s3055_s1 + $0x68] sm:$0xff]  }
   0x4   :  { %2014 = vmatprep.subr.bf16.mxu0 %v2326_v2  ;;  %2309 = vmatprep.subr.bf16.mxu1 %v2326_v2  ;;  %v2331_v7 = vld [vmem:[%s3055_s1 + $0x18] sm:$0xff]   ;;  %v2333_v9 = vld [vmem:[%s3055_s1 + $0x20] sm:$0xff]   ;;  %v2335_v13 = vld [vmem:[%s3055_s1 + $0x28] sm:$0xff]  }
   0x5   :  { %v2342_v11 = vld [vmem:[%s3056_s0 + $0x4] ss:$20 sps:$4 sm:$0xff]   ;;  %v2336_v14 = vld [vmem:[%s3055_s1 + $0x70] sm:$0xff]   ;;  %v2348_v23 = vld [vmem:[%s3055_s1 + $0xc8] sm:$0xff]  }
   0x6   :  { %v2345_v12 = vld [vmem:[%s3056_s0 + $0x1e4] ss:$20 sps:$4 sm:$0xff]   ;;  %947 = vmatprep.mubr.bf16.mxu0 %v2342_v11  ;;  %v2337_v15 = vld [vmem:[%s3055_s1 + $0x30] sm:$0xff]   ;;  %v2351_v24 = vld [vmem:[%s3056_s0 + $0x2c] ss:$20 sps:$4 sm:$0xff]  }
   0x7   :  { %2015 = vmatpush3.bf16.msra.mxu0 %v2327_v3  ;;  %2317 = vmatpush3.bf16.msra.mxu1 %v2327_v3  ;;  %v2338_v16 = vld [vmem:[%s3055_s1 + $0x78] sm:$0xff]   ;;  %v2346_v18 = vld [vmem:[%s3055_s1 + $0xc0] sm:$0xff]   ;;  %v2368_v26 = vld [vmem:[%s3055_s1 + $0x108] sm:$0xff]  }
   0x8   :  { %2016 = vmatprep.subr.bf16.mxu0 %v2328_v4  ;;  %2310 = vmatprep.subr.bf16.mxu1 %v2328_v4  ;;  %v2339_v17 = vld [vmem:[%s3055_s1 + $0x38] sm:$0xff]   ;;  %v2349_v19 = vld [vmem:[%s3055_s1 + $0x100] sm:$0xff]   ;;  %v2350_v27 = vld [vmem:[%s3055_s1 + $0x88] sm:$0xff]  }
   0x9   :  { %1043 = vmatprep.mubr.bf16.mxu1 %v2345_v12  ;;  %v2340_v20 = vld [vmem:[%s3056_s0] ss:$20 sps:$4 sm:$0xff]   ;;  %v2355_v28 = vld [vmem:[%s3056_s0 + $0x28] ss:$20 sps:$4 sm:$0xff]   ;;  %v2365_v37 = vld [vmem:[%s3056_s0 + $0x50] ss:$20 sps:$4 sm:$0xff]  }
   0xa   :  { %v2343_v21 = vld [vmem:[%s3056_s0 + $0x1e0] ss:$20 sps:$4 sm:$0xff]   ;;  %v2356_v30 = vld [vmem:[%s3056_s0 + $0x208] ss:$20 sps:$4 sm:$0xff]   ;;  %v2366_v39 = vld [vmem:[%s3056_s0 + $0x230] ss:$20 sps:$4 sm:$0xff]  }
   0xb   :  { %2017 = vmatpush3.bf16.msra.mxu0 %v2329_v5  ;;  %2318 = vmatpush3.bf16.msra.mxu1 %v2329_v5  ;;  %v2347_v22 = vld [vmem:[%s3055_s1 + $0x80] sm:$0xff]   ;;  %v2357_v29 = vld [vmem:[%s3055_s1 + $0xd0] sm:$0xff]   ;;  %v2359_v33 = vld [vmem:[%s3055_s1 + $0xd8] sm:$0xff]  }
   0xc   :  { %2018 = vmatprep.subr.bf16.mxu0 %v2330_v6  ;;  %2311 = vmatprep.subr.bf16.mxu1 %v2330_v6  ;;  %v2353_v25 = vld [vmem:[%s3056_s0 + $0x20c] ss:$20 sps:$4 sm:$0xff]   ;;  %v2358_v31 = vld [vmem:[%s3055_s1 + $0x90] sm:$0xff]   ;;  %v2360_v35 = vld [vmem:[%s3055_s1 + $0x98] sm:$0xff]  }
   0xd   :  { %v2361_v32 = vld [vmem:[%s3056_s0 + $0x54] ss:$20 sps:$4 sm:$0xff]   ;;  %v2367_v36 = vld [vmem:[%s3055_s1 + $0xe0] sm:$0xff]   ;;  %v2372_v42 = vld [vmem:[%s3056_s0 + $0x7c] ss:$20 sps:$4 sm:$0xff]  }
   0xe   :  { %v2363_v34 = vld [vmem:[%s3056_s0 + $0x234] ss:$20 sps:$4 sm:$0xff]   ;;  %v2369_v40 = vld [vmem:[%s3055_s1 + $0xa0] sm:$0xff]   ;;  %v2374_v43 = vld [vmem:[%s3056_s0 + $0x25c] ss:$20 sps:$4 sm:$0xff]  }
   0xf   :  { %2019 = vmatpush3.bf16.msra.mxu0 %v2331_v7  ;;  %2319 = vmatpush3.bf16.msra.mxu1 %v2331_v7  ;;  %v2381_v38 = vld [vmem:[%s3055_s1 + $0x110] sm:$0xff]   ;;  %v2370_v41 = vld [vmem:[%s3055_s1 + $0xe8] sm:$0xff]   ;;  %v2395_v45 = vld [vmem:[%s3055_s1 + $0x118] sm:$0xff]  }
  0x10   :  { %2020 = vmatprep.subr.bf16.mxu0 %v2332_v8  ;;  %2312 = vmatprep.subr.bf16.mxu1 %v2332_v8  ;;  %v2371_v44 = vld [vmem:[%s3055_s1 + $0xa8] sm:$0xff]   ;;  %v2378_v48 = vld [vmem:[%s3055_s1 + $0xf0] sm:$0xff]   ;;  %v2380_v50 = vld [vmem:[%s3055_s1 + $0xf8] sm:$0xff]  }
  0x11   :  { %v2376_v46 = vld [vmem:[%s3056_s0 + $0x78] ss:$20 sps:$4 sm:$0xff]   ;;  %v2379_v49 = vld [vmem:[%s3055_s1 + $0xb0] sm:$0xff]   ;;  %v2402_v52 = vld [vmem:[%s3055_s1 + $0x120] sm:$0xff]  }
  0x12   :  { %v2377_v47 = vld [vmem:[%s3056_s0 + $0x258] ss:$20 sps:$4 sm:$0xff]   ;;  %v2385_v55 = vld [vmem:[%s3056_s0 + $0x8] ss:$20 sps:$4 sm:$0xff]   ;;  %v2388_v56 = vld [vmem:[%s3056_s0 + $0xa0] ss:$20 sps:$4 sm:$0xff]  }
  0x13   :  { %2021 = vmatpush3.bf16.msra.mxu0 %v2333_v9  ;;  %2320 = vmatpush3.bf16.msra.mxu1 %v2333_v9  ;;  %v2383_v51 = vld [vmem:[%s3056_s0 + $0xa4] ss:$20 sps:$4 sm:$0xff]   ;;  %v2387_v53 = vld [vmem:[%s3056_s0 + $0xc] ss:$20 sps:$4 sm:$0xff]   ;;  %v2391_v59 = vld [vmem:[%s3056_s0 + $0x34] ss:$20 sps:$4 sm:$0xff]  }
  0x14   :  { %2022 = vmatprep.subr.bf16.mxu0 %v2334_v10  ;;  %2313 = vmatprep.subr.bf16.mxu1 %v2334_v10  ;;  %v2382_v54 = vld [vmem:[%s3055_s1 + $0xb8] sm:$0xff]   ;;  %v2415_v57 = vld [vmem:[%s3055_s1 + $0x128] sm:$0xff]   ;;  %v2422_v60 = vld [vmem:[%s3055_s1 + $0x130] sm:$0xff]  }
  0x15   :  { %v2389_v58 = vld [vmem:[%s3056_s0 + $0xcc] ss:$20 sps:$4 sm:$0xff]   ;;  %v2393_v61 = vld [vmem:[%s3056_s0 + $0xc8] ss:$20 sps:$4 sm:$0xff]   ;;  %v2394_v62 = vld [vmem:[%s3056_s0 + $0x30] ss:$20 sps:$4 sm:$0xff]  }
  0x16   :  { %v2396_v63 = vld [vmem:[%s3056_s0 + $0xf4] ss:$20 sps:$4 sm:$0xff]   ;;  %v2398_v0 = vld [vmem:[%s3056_s0 + $0x5c] ss:$20 sps:$4 sm:$0xff]   ;;  %v2401_v3 = vld [vmem:[%s3056_s0 + $0x58] ss:$20 sps:$4 sm:$0xff]  }
  0x17   :  { %2023 = vmatpush3.bf16.msra.mxu0 %v2335_v13  ;;  %2321 = vmatpush3.bf16.msra.mxu1 %v2335_v13  ;;  %v2435_v1 = vld [vmem:[%s3055_s1 + $0x138] sm:$0xff]   ;;  %v2400_v2 = vld [vmem:[%s3056_s0 + $0xf0] ss:$20 sps:$4 sm:$0xff]   ;;  %v2408_v7 = vld [vmem:[%s3056_s0 + $0x80] ss:$20 sps:$4 sm:$0xff]  }
  0x18   :  { %2024 = vmatprep.subr.bf16.mxu0 %v2336_v14  ;;  %2314 = vmatprep.subr.bf16.mxu1 %v2336_v14  ;;  %v2403_v4 = vld [vmem:[%s3056_s0 + $0x11c] ss:$20 sps:$4 sm:$0xff]   ;;  %v2405_v5 = vld [vmem:[%s3056_s0 + $0x84] ss:$20 sps:$4 sm:$0xff]   ;;  %v2411_v9 = vld [vmem:[%s3056_s0 + $0xac] ss:$20 sps:$4 sm:$0xff]  }
  0x19   :  { %v2407_v6 = vld [vmem:[%s3056_s0 + $0x118] ss:$20 sps:$4 sm:$0xff]   ;;  %v2413_v10 = vld [vmem:[%s3056_s0 + $0x140] ss:$20 sps:$4 sm:$0xff]   ;;  %v2414_v11 = vld [vmem:[%s3056_s0 + $0xa8] ss:$20 sps:$4 sm:$0xff]  }
  0x1a   :  { %v2409_v8 = vld [vmem:[%s3056_s0 + $0x144] ss:$20 sps:$4 sm:$0xff]   ;;  %v2416_v12 = vld [vmem:[%s3056_s0 + $0x16c] ss:$20 sps:$4 sm:$0xff]   ;;  %v2418_v13 = vld [vmem:[%s3056_s0 + $0xd4] ss:$20 sps:$4 sm:$0xff]  }
  0x1b   :  { %2025 = vmatpush3.bf16.msra.mxu0 %v2337_v15  ;;  %2322 = vmatpush3.bf16.msra.mxu1 %v2337_v15  ;;  %v2420_v14 = vld [vmem:[%s3056_s0 + $0x168] ss:$20 sps:$4 sm:$0xff]   ;;  %v2421_v15 = vld [vmem:[%s3056_s0 + $0xd0] ss:$20 sps:$4 sm:$0xff]  }
  0x1c   :  { %2026 = vmatprep.subr.bf16.mxu0 %v2338_v16  ;;  %2315 = vmatprep.subr.bf16.mxu1 %v2338_v16  ;;  %v2423_v16 = vld [vmem:[%s3056_s0 + $0x194] ss:$20 sps:$4 sm:$0xff]  }
  0x1f   :  { %2027 = vmatpush3.bf16.msra.mxu0 %v2339_v17  ;;  %2323 = vmatpush3.bf16.msra.mxu1 %v2339_v17  ;;  %v2425_v17 = vld [vmem:[%s3056_s0 + $0xfc] ss:$20 sps:$4 sm:$0xff]  }
  0x20   :  { %2124 = vmatprep.subr.bf16.mxu1 %v2346_v18  ;;  %2260 = vmatprep.subr.bf16.mxu0 %v2349_v19  ;;  %v2427_v18 = vld [vmem:[%s3056_s0 + $0x190] ss:$20 sps:$4 sm:$0xff]  }
  0x22   :  { %948 = vmatmul.mubr.bf16.vlgmr.msra.gmra.mrb[0].mxu0 %v2340_v20  ;;  %1044 = vmatmul.mubr.bf16.vlgmr.msra.gmra.mrb[0].mxu1 %v2343_v21  ;;  %v2429_v20 = vld [vmem:[%s3056_s0 + $0x1bc] ss:$20 sps:$4 sm:$0xff]   ;;  %v2431_v21 = vld [vmem:[%s3056_s0 + $0x124] ss:$20 sps:$4 sm:$0xff]  }
  0x23   :  { %2125 = vmatpush3.bf16.msra.mxu1 %v2347_v22  ;;  %2261 = vmatpush3.bf16.msra.mxu0 %v2349_v19  ;;  %v2428_v19 = vld [vmem:[%s3056_s0 + $0xf8] ss:$20 sps:$4 sm:$0xff]  }
  0x24   :  { %2126 = vmatprep.subr.bf16.mxu1 %v2348_v23  ;;  %955 = vmatprep.mubr.bf16.mxu0 %v2351_v24  ;;  %v2433_v22 = vld [vmem:[%s3056_s0 + $0x1b8] ss:$20 sps:$4 sm:$0xff]   ;;  %v2434_v23 = vld [vmem:[%s3056_s0 + $0x120] ss:$20 sps:$4 sm:$0xff]  }
  0x25   :  { %1051 = vmatprep.mubr.bf16.mxu1 %v2353_v25  ;;  %2262 = vmatprep.subr.bf16.mxu0 %v2368_v26  ;;  %v2436_v24 = vld [vmem:[%s3056_s0 + $0x14c] ss:$20 sps:$4 sm:$0xff]   ;;  %v2438_v25 = vld [vmem:[%s3056_s0 + $0x10] ss:$20 sps:$4 sm:$0xff]  }
  0x27   :  { %2127 = vmatpush3.bf16.msra.mxu1 %v2350_v27  ;;  %2263 = vmatpush3.bf16.msra.mxu0 %v2368_v26  ;;  %v2439_v26 = vld [vmem:[%s3056_s0 + $0x148] ss:$20 sps:$4 sm:$0xff]   ;;  %v2440_v27 = vld [vmem:[%s3056_s0 + $0x38] ss:$20 sps:$4 sm:$0xff]  }
  0x28   :  { %2128 = vmatprep.subr.bf16.mxu1 %v2357_v29  ;;  %2264 = vmatprep.subr.bf16.mxu0 %v2381_v38  ;;  %v2443_v29 = vld [vmem:[%s3056_s0 + $0x60] ss:$20 sps:$4 sm:$0xff]  }
  0x2a   :  { %956 = vmatmul.mubr.bf16.gmra.mrb[4].mxu0 %v2355_v28  ;;  %1052 = vmatmul.mubr.bf16.gmra.mrb[4].mxu1 %v2356_v30  ;;  %v2441_v28 = vld [vmem:[%s3056_s0 + $0x174] ss:$20 sps:$4 sm:$0xff]   ;;  %v2444_v30 = vld [vmem:[%s3056_s0 + $0x170] ss:$20 sps:$4 sm:$0xff]  }
  0x2b   :  { %2129 = vmatpush3.bf16.msra.mxu1 %v2358_v31  ;;  %963 = vmatprep.mubr.bf16.mxu0 %v2361_v32  ;;  %v2445_v31 = vld [vmem:[%s3056_s0 + $0x88] ss:$20 sps:$4 sm:$0xff]  }
  0x2c   :  { %2130 = vmatprep.subr.bf16.mxu1 %v2359_v33  ;;  %1059 = vmatprep.mubr.bf16.mxu1 %v2363_v34  ;;  %v2446_v32 = vld [vmem:[%s3056_s0 + $0x19c] ss:$20 sps:$4 sm:$0xff]   ;;  %v2449_v34 = vld [vmem:[%s3056_s0 + $0x198] ss:$20 sps:$4 sm:$0xff]  }
  0x2d   :  { %2265 = vmatpush3.bf16.msra.mxu0 %v2381_v38  ;;  %v2448_v33 = vld [vmem:[%s3056_s0 + $0xb0] ss:$20 sps:$4 sm:$0xff]   ;;  %v2454_v38 = vld [vmem:[%s3056_s0 + $0x1c0] ss:$20 sps:$4 sm:$0xff]  }
  0x2e   :  { %2266 = vmatprep.subr.bf16.mxu0 %v2395_v45 }
  0x2f   :  { %2131 = vmatpush3.bf16.msra.mxu1 %v2360_v35  ;;  %v2450_v35 = vld [vmem:[%s3056_s0 + $0xd8] ss:$20 sps:$4 sm:$0xff]  }
  0x30   :  { %2132 = vmatprep.subr.bf16.mxu1 %v2367_v36  ;;  %v2451_v36 = vld [vmem:[%s3056_s0 + $0x1c4] ss:$20 sps:$4 sm:$0xff]  }
  0x31   :  { %2267 = vmatpush3.bf16.msra.mxu0 %v2395_v45  ;;  %v2463_v45 = vld [vmem:[%s3056_s0 + $0x1a0] ss:$20 sps:$4 sm:$0xff]  }
  0x32   :  { %964 = vmatmul.mubr.bf16.gmra.mrb[8].mxu0 %v2365_v37  ;;  %1060 = vmatmul.mubr.bf16.gmra.mrb[8].mxu1 %v2366_v39  ;;  %v2453_v37 = vld [vmem:[%s3056_s0 + $0x100] ss:$20 sps:$4 sm:$0xff]   ;;  %v2455_v39 = vld [vmem:[%s3056_s0 + $0x128] ss:$20 sps:$4 sm:$0xff]  }
  0x33   :  { %2133 = vmatpush3.bf16.msra.mxu1 %v2369_v40  ;;  %971 = vmatprep.mubr.bf16.mxu0 %v2372_v42  ;;  %v2456_v40 = vld [vmem:[%s3056_s0 + $0x1ec] ss:$20 sps:$4 sm:$0xff]   ;;  %v2459_v42 = vld [vmem:[%s3056_s0 + $0x1e8] ss:$20 sps:$4 sm:$0xff]  }
  0x34   :  { %2134 = vmatprep.subr.bf16.mxu1 %v2370_v41  ;;  %1067 = vmatprep.mubr.bf16.mxu1 %v2374_v43  ;;  %v2458_v41 = vld [vmem:[%s3056_s0 + $0x150] ss:$20 sps:$4 sm:$0xff]   ;;  %v2460_v43 = vld [vmem:[%s3056_s0 + $0x178] ss:$20 sps:$4 sm:$0xff]  }
  0x35   :  { %2268 = vmatprep.subr.bf16.mxu0 %v2402_v52 }
  0x36   :  { %2269 = vmatpush3.bf16.msra.mxu0 %v2402_v52  ;;  %v2471_v52 = vld [vmem:[%s3056_s0 + $0x264] ss:$20 sps:$4 sm:$0xff]  }
  0x37   :  { %2135 = vmatpush3.bf16.msra.mxu1 %v2371_v44  ;;  %2270 = vmatprep.subr.bf16.mxu0 %v2415_v57  ;;  %v2461_v44 = vld [vmem:[%s3056_s0 + $0x214] ss:$20 sps:$4 sm:$0xff]  }
  0x38   :  { %2136 = vmatprep.subr.bf16.mxu1 %v2378_v48  ;;  %v2466_v48 = vld [vmem:[%s3056_s0 + $0x23c] ss:$20 sps:$4 sm:$0xff]  }
  0x3a   :  { %972 = vmatmul.mubr.bf16.gmra.mrb[12].mxu0 %v2376_v46  ;;  %1068 = vmatmul.mubr.bf16.gmra.mrb[12].mxu1 %v2377_v47  ;;  %v2464_v46 = vld [vmem:[%s3056_s0 + $0x210] ss:$20 sps:$4 sm:$0xff]   ;;  %v2465_v47 = vld [vmem:[%s3056_s0 + $0x1c8] ss:$20 sps:$4 sm:$0xff]  }
  0x3b   :  { %2137 = vmatpush3.bf16.msra.mxu1 %v2379_v49  ;;  %979 = vmatprep.mubr.bf16.mxu0 %v2383_v51  ;;  %v2468_v49 = vld [vmem:[%s3056_s0 + $0x1f0] ss:$20 sps:$4 sm:$0xff]   ;;  %v2470_v51 = vld [vmem:[%s3056_s0 + $0x218] ss:$20 sps:$4 sm:$0xff]  }
  0x3c   :  { %2138 = vmatprep.subr.bf16.mxu1 %v2380_v50  ;;  %1108 = vmatprep.mubr.bf16.mxu1 %v2387_v53  ;;  %v2469_v50 = vld [vmem:[%s3056_s0 + $0x238] ss:$20 sps:$4 sm:$0xff]   ;;  %v2473_v53 = vld [vmem:[%s3056_s0 + $0x240] ss:$20 sps:$4 sm:$0xff]  }
  0x3d   :  { %2271 = vmatpush3.bf16.msra.mxu0 %v2415_v57 }
  0x3e   :  { %2272 = vmatprep.subr.bf16.mxu0 %v2422_v60 }
  0x3f   :  { %2139 = vmatpush3.bf16.msra.mxu1 %v2382_v54  ;;  %v2474_v54 = vld [vmem:[%s3056_s0 + $0x260] ss:$20 sps:$4 sm:$0xff]  }
  0x41   :  { %2273 = vmatpush3.bf16.msra.mxu0 %v2422_v60 }
  0x42   :  { %980 = vmatmul.mubr.bf16.gmra.mrb[16].mxu0 %v2388_v56  ;;  %1109 = vmatmul.mubr.bf16.vlgmr.msra.gmra.mrb[16].mxu1 %v2385_v55  ;;  %v2475_v55 = vld [vmem:[%s3056_s0 + $0x268] ss:$20 sps:$4 sm:$0xff]  }
  0x43   :  { %987 = vmatprep.mubr.bf16.mxu0 %v2389_v58  ;;  %1116 = vmatprep.mubr.bf16.mxu1 %v2391_v59 }
  0x44   :  { %2274 = vmatprep.subr.bf16.mxu0 %v2435_v1 }
  0x45   :  { %2275 = vmatpush3.bf16.msra.mxu0 %v2435_v1 }
  0x4a   :  { %988 = vmatmul.mubr.bf16.gmra.mrb[20].mxu0 %v2393_v61  ;;  %1117 = vmatmul.mubr.bf16.gmra.mrb[20].mxu1 %v2394_v62 }
  0x4b   :  { %995 = vmatprep.mubr.bf16.mxu0 %v2396_v63  ;;  %1124 = vmatprep.mubr.bf16.mxu1 %v2398_v0 }
  0x52   :  { %996 = vmatmul.mubr.bf16.gmra.mrb[24].mxu0 %v2400_v2  ;;  %1125 = vmatmul.mubr.bf16.gmra.mrb[24].mxu1 %v2401_v3 }
  0x53   :  { %1003 = vmatprep.mubr.bf16.mxu0 %v2403_v4  ;;  %1132 = vmatprep.mubr.bf16.mxu1 %v2405_v5 }
  0x5a   :  { %1004 = vmatmul.mubr.bf16.gmra.mrb[28].mxu0 %v2407_v6  ;;  %1133 = vmatmul.mubr.bf16.gmra.mrb[28].mxu1 %v2408_v7 }
  0x5b   :  { %1011 = vmatprep.mubr.bf16.mxu0 %v2409_v8  ;;  %1140 = vmatprep.mubr.bf16.mxu1 %v2411_v9 }
  0x62   :  { %1012 = vmatmul.mubr.bf16.gmra.mrb[32].mxu0 %v2413_v10  ;;  %1141 = vmatmul.mubr.bf16.gmra.mrb[32].mxu1 %v2414_v11 }
  0x63   :  { %1019 = vmatprep.mubr.bf16.mxu0 %v2416_v12  ;;  %1148 = vmatprep.mubr.bf16.mxu1 %v2418_v13 }
  0x6a   :  { %1020 = vmatmul.mubr.bf16.gmra.mrb[36].mxu0 %v2420_v14  ;;  %1149 = vmatmul.mubr.bf16.gmra.mrb[36].mxu1 %v2421_v15 }
  0x6b   :  { %1027 = vmatprep.mubr.bf16.mxu0 %v2423_v16  ;;  %1156 = vmatprep.mubr.bf16.mxu1 %v2425_v17 }
  0x72   :  { %1028 = vmatmul.mubr.bf16.gmra.mrb[40].mxu0 %v2427_v18  ;;  %1157 = vmatmul.mubr.bf16.gmra.mrb[40].mxu1 %v2428_v19 }
  0x73   :  { %1035 = vmatprep.mubr.bf16.mxu0 %v2429_v20  ;;  %1164 = vmatprep.mubr.bf16.mxu1 %v2431_v21 }
  0x7a   :  { %1036 = vmatmul.mubr.bf16.gmra.mrb[44].mxu0 %v2433_v22  ;;  %1165 = vmatmul.mubr.bf16.gmra.mrb[44].mxu1 %v2434_v23 }
  0x7b   :  { %1172 = vmatprep.mubr.bf16.mxu1 %v2436_v24  ;;  %2276 = vmatprep.mubr.bf16.mxu0 %v2438_v25 }
  0x82   :  { %1173 = vmatmul.mubr.bf16.gmra.mrb[48].mxu1 %v2439_v26  ;;  %2277 = vmatmul.mubr.bf16.vlgmr.msra.gmra.mrb[48].mxu0 %v2440_v27 }
  0x83   :  { %1180 = vmatprep.mubr.bf16.mxu1 %v2441_v28  ;;  %2280 = vmatprep.mubr.bf16.mxu0 %v2443_v29 }
  0x8a   :  { %1181 = vmatmul.mubr.bf16.gmra.mrb[52].mxu1 %v2444_v30  ;;  %2281 = vmatmul.mubr.bf16.gmra.mrb[52].mxu0 %v2445_v31 }
  0x8b   :  { %1188 = vmatprep.mubr.bf16.mxu1 %v2446_v32  ;;  %2284 = vmatprep.mubr.bf16.mxu0 %v2448_v33 }
  0x92   :  { %1189 = vmatmul.mubr.bf16.gmra.mrb[56].mxu1 %v2449_v34  ;;  %2285 = vmatmul.mubr.bf16.gmra.mrb[56].mxu0 %v2450_v35 }
  0x93   :  { %1196 = vmatprep.mubr.bf16.mxu1 %v2451_v36  ;;  %2288 = vmatprep.mubr.bf16.mxu0 %v2453_v37 }
  0x9a   :  { %1197 = vmatmul.mubr.bf16.gmra.mrb[60].mxu1 %v2454_v38  ;;  %2289 = vmatmul.mubr.bf16.gmra.mrb[60].mxu0 %v2455_v39 }
  0x9b   :  { %1204 = vmatprep.mubr.bf16.mxu1 %v2456_v40  ;;  %2292 = vmatprep.mubr.bf16.mxu0 %v2458_v41 }
  0xa2   :  { %1205 = vmatmul.mubr.bf16.gmra.mrb[64].mxu1 %v2459_v42  ;;  %2293 = vmatmul.mubr.bf16.gmra.mrb[64].mxu0 %v2460_v43 }
  0xa3   :  { %1212 = vmatprep.mubr.bf16.mxu1 %v2461_v44  ;;  %2296 = vmatprep.mubr.bf16.mxu0 %v2463_v45 }
  0xaa   :  { %1213 = vmatmul.mubr.bf16.gmra.mrb[68].mxu1 %v2464_v46  ;;  %2297 = vmatmul.mubr.bf16.gmra.mrb[68].mxu0 %v2465_v47 }
  0xab   :  { %1220 = vmatprep.mubr.bf16.mxu1 %v2466_v48  ;;  %2300 = vmatprep.mubr.bf16.mxu0 %v2468_v49 }
  0xb2   :  { %1221 = vmatmul.mubr.bf16.gmra.mrb[72].mxu1 %v2469_v50  ;;  %2301 = vmatmul.mubr.bf16.gmra.mrb[72].mxu0 %v2470_v51 }
  0xb3   :  { %1228 = vmatprep.mubr.bf16.mxu1 %v2471_v52  ;;  %2304 = vmatprep.mubr.bf16.mxu0 %v2473_v53 }
  0xba   :  { %1229 = vmatmul.mubr.bf16.gmra.mrb[76].mxu1 %v2474_v54  ;;  %2305 = vmatmul.mubr.bf16.gmra.mrb[76].mxu0 %v2475_v55 }
  0xf5   :  { %v2100_v56 = vpop.f32.mrb[0].mxu1  ;;  %v2028_v57 = vpop.f32.mrb[0].mxu0 }
  0xf6   :  { %v2101_v58 = vpop.f32.mrb[1].mxu1  ;;  %v2029_v59 = vpop.f32.mrb[1].mxu0 }
  0xf7   :  { %v2856_v60 = vadd.f32 %v2101_v58, %v2100_v56  ;;  %v2103_v61 = vpop.f32.mrb[2].mxu1  ;;  %v2030_v62 = vadd.f32 %v2029_v59, %v2028_v57  ;;  %v2031_v63 = vpop.f32.mrb[2].mxu0 }
  0xf8   :  { %v2104_v0 = vpop.f32.mrb[3].mxu1  ;;  %v2032_v1 = vpop.f32.mrb[3].mxu0 }
  0xf9   :  { %v2858_v2 = vadd.f32 %v2104_v0, %v2103_v61  ;;  %v2033_v3 = vadd.f32 %v2032_v1, %v2031_v63 }
  0xfd   :  { %v2106_v4 = vpop.f32.mrb[4].mxu1  ;;  %v2034_v5 = vpop.f32.mrb[4].mxu0 }
  0xfe   :  { %v2107_v6 = vpop.f32.mrb[5].mxu1  ;;  %v2035_v7 = vpop.f32.mrb[5].mxu0 }
  0xff   :  { %v2860_v8 = vadd.f32 %v2107_v6, %v2106_v4  ;;  %v2109_v9 = vpop.f32.mrb[6].mxu1  ;;  %v2036_v10 = vadd.f32 %v2035_v7, %v2034_v5  ;;  %v2037_v11 = vpop.f32.mrb[6].mxu0 }
 0x100   :  { %v2110_v12 = vpop.f32.mrb[7].mxu1  ;;  %v2038_v13 = vpop.f32.mrb[7].mxu0 }
 0x101   :  { %v2862_v14 = vadd.f32 %v2110_v12, %v2109_v9  ;;  %v2039_v15 = vadd.f32 %v2038_v13, %v2037_v11 }
 0x105   :  { %v2112_v16 = vpop.f32.mrb[8].mxu1  ;;  %v2040_v17 = vpop.f32.mrb[8].mxu0 }
 0x106   :  { %v2113_v18 = vpop.f32.mrb[9].mxu1  ;;  %v2041_v19 = vpop.f32.mrb[9].mxu0 }
 0x107   :  { %v2864_v20 = vadd.f32 %v2113_v18, %v2112_v16  ;;  %v2115_v21 = vpop.f32.mrb[10].mxu1  ;;  %v2042_v22 = vadd.f32 %v2041_v19, %v2040_v17  ;;  %v2043_v23 = vpop.f32.mrb[10].mxu0 }
 0x108   :  { %v2116_v24 = vpop.f32.mrb[11].mxu1  ;;  %v2044_v25 = vpop.f32.mrb[11].mxu0 }
 0x109   :  { %v2866_v26 = vadd.f32 %v2116_v24, %v2115_v21  ;;  %v2045_v27 = vadd.f32 %v2044_v25, %v2043_v23 }
 0x10d   :  { %v2118_v28 = vpop.f32.mrb[12].mxu1  ;;  %v2046_v29 = vpop.f32.mrb[12].mxu0 }
 0x10e   :  { %v2119_v30 = vpop.f32.mrb[13].mxu1  ;;  %v2047_v31 = vpop.f32.mrb[13].mxu0 }
 0x10f   :  { %v2868_v32 = vadd.f32 %v2119_v30, %v2118_v28  ;;  %v2121_v33 = vpop.f32.mrb[14].mxu1  ;;  %v2048_v34 = vadd.f32 %v2047_v31, %v2046_v29  ;;  %v2049_v35 = vpop.f32.mrb[14].mxu0 }
 0x110   :  { %v2122_v36 = vpop.f32.mrb[15].mxu1  ;;  %v2050_v37 = vpop.f32.mrb[15].mxu0 }
 0x111   :  { %v2870_v38 = vadd.f32 %v2122_v36, %v2121_v33  ;;  %v2051_v39 = vadd.f32 %v2050_v37, %v2049_v35 }
 0x115   :  { %v2140_v40 = vpop.f32.mrb[16].mxu1  ;;  %v2052_v41 = vpop.f32.mrb[16].mxu0 }
 0x116   :  { %v2141_v42 = vpop.f32.mrb[17].mxu1  ;;  %v2053_v43 = vpop.f32.mrb[17].mxu0 }
 0x117   :  { %v2142_v44 = vadd.f32 %v2141_v42, %v2140_v40  ;;  %v2143_v45 = vpop.f32.mrb[18].mxu1  ;;  %v2054_v46 = vadd.f32 %v2053_v43, %v2052_v41  ;;  %v2055_v47 = vpop.f32.mrb[18].mxu0 }
 0x118   :  { %v2144_v48 = vpop.f32.mrb[19].mxu1  ;;  %v2056_v49 = vpop.f32.mrb[19].mxu0 }
 0x119   :  { %v2145_v50 = vadd.f32 %v2144_v48, %v2143_v45  ;;  %v2057_v51 = vadd.f32 %v2056_v49, %v2055_v47  ;;  %v2872_v52 = vadd.f32 %v2142_v44, %v2030_v62 }
 0x11b   :  { %v2874_v53 = vadd.f32 %v2145_v50, %v2033_v3 }
 0x11d   :  { %v2146_v54 = vpop.f32.mrb[20].mxu1  ;;  %v2058_v55 = vpop.f32.mrb[20].mxu0 }
 0x11e   :  { %v2147_v56 = vpop.f32.mrb[21].mxu1  ;;  %v2059_v57 = vpop.f32.mrb[21].mxu0 }
 0x11f   :  { %v2148_v58 = vadd.f32 %v2147_v56, %v2146_v54  ;;  %v2149_v59 = vpop.f32.mrb[22].mxu1  ;;  %v2060_v61 = vadd.f32 %v2059_v57, %v2058_v55  ;;  %v2061_v63 = vpop.f32.mrb[22].mxu0 }
 0x120   :  { %v2150_v0 = vpop.f32.mrb[23].mxu1  ;;  %v2062_v1 = vpop.f32.mrb[23].mxu0 }
 0x121   :  { %v2151_v4 = vadd.f32 %v2150_v0, %v2149_v59  ;;  %v2063_v5 = vadd.f32 %v2062_v1, %v2061_v63  ;;  %v2876_v6 = vadd.f32 %v2148_v58, %v2036_v10 }
 0x123   :  { %v2878_v7 = vadd.f32 %v2151_v4, %v2039_v15 }
 0x125   :  { %v2152_v62 = vpop.f32.mrb[24].mxu1  ;;  %v2064_v9 = vpop.f32.mrb[24].mxu0 }
 0x126   :  { %v2153_v3 = vpop.f32.mrb[25].mxu1  ;;  %v2065_v11 = vpop.f32.mrb[25].mxu0 }
 0x127   :  { %v2154_v12 = vadd.f32 %v2153_v3, %v2152_v62  ;;  %v2155_v13 = vpop.f32.mrb[26].mxu1  ;;  %v2066_v16 = vadd.f32 %v2065_v11, %v2064_v9  ;;  %v2067_v17 = vpop.f32.mrb[26].mxu0 }
 0x128   :  { %v2156_v18 = vpop.f32.mrb[27].mxu1  ;;  %v2068_v19 = vpop.f32.mrb[27].mxu0 }
 0x129   :  { %v2157_v21 = vadd.f32 %v2156_v18, %v2155_v13  ;;  %v2069_v23 = vadd.f32 %v2068_v19, %v2067_v17  ;;  %v2880_v24 = vadd.f32 %v2154_v12, %v2042_v22 }
 0x12b   :  { %v2882_v25 = vadd.f32 %v2157_v21, %v2045_v27 }
 0x12d   :  { %v2158_v10 = vpop.f32.mrb[28].mxu1  ;;  %v2070_v28 = vpop.f32.mrb[28].mxu0 }
 0x12e   :  { %v2159_v15 = vpop.f32.mrb[29].mxu1  ;;  %v2071_v29 = vpop.f32.mrb[29].mxu0 }
 0x12f   :  { %v2160_v30 = vadd.f32 %v2159_v15, %v2158_v10  ;;  %v2161_v31 = vpop.f32.mrb[30].mxu1  ;;  %v2072_v33 = vadd.f32 %v2071_v29, %v2070_v28  ;;  %v2073_v35 = vpop.f32.mrb[30].mxu0 }
 0x130   :  { %v2162_v36 = vpop.f32.mrb[31].mxu1  ;;  %v2074_v37 = vpop.f32.mrb[31].mxu0 }
 0x131   :  { %v2163_v40 = vadd.f32 %v2162_v36, %v2161_v31  ;;  %v2075_v41 = vadd.f32 %v2074_v37, %v2073_v35  ;;  %v2884_v42 = vadd.f32 %v2160_v30, %v2048_v34 }
 0x133   :  { %v2886_v43 = vadd.f32 %v2163_v40, %v2051_v39 }
 0x135   :  { %v2164_v22 = vpop.f32.mrb[32].mxu1  ;;  %v2076_v44 = vpop.f32.mrb[32].mxu0 }
 0x136   :  { %v2165_v27 = vpop.f32.mrb[33].mxu1  ;;  %v2077_v45 = vpop.f32.mrb[33].mxu0 }
 0x137   :  { %v2166_v47 = vadd.f32 %v2165_v27, %v2164_v22  ;;  %v2167_v48 = vpop.f32.mrb[34].mxu1  ;;  %v2888_v49 = vadd.f32 %v2077_v45, %v2076_v44  ;;  %v2079_v50 = vpop.f32.mrb[34].mxu0 }
 0x138   :  { %v2168_v54 = vpop.f32.mrb[35].mxu1  ;;  %v2080_v55 = vpop.f32.mrb[35].mxu0 }
 0x139   :  { %v2169_v56 = vadd.f32 %v2168_v54, %v2167_v48  ;;  %v2890_v57 = vadd.f32 %v2080_v55, %v2079_v50  ;;  %v2892_v58 = vadd.f32 %v2166_v47, %v2054_v46 }
 0x13b   :  { %v2894_v34 = vadd.f32 %v2169_v56, %v2057_v51 }
 0x13d   :  { %v2170_v39 = vpop.f32.mrb[36].mxu1  ;;  %v2082_v59 = vpop.f32.mrb[36].mxu0 }
 0x13e   :  { %v2171_v63 = vpop.f32.mrb[37].mxu1  ;;  %v2083_v0 = vpop.f32.mrb[37].mxu0 }
 0x13f   :  { %v2172_v1 = vadd.f32 %v2171_v63, %v2170_v39  ;;  %v2173_v4 = vpop.f32.mrb[38].mxu1  ;;  %v2896_v62 = vadd.f32 %v2083_v0, %v2082_v59  ;;  %v2085_v9 = vpop.f32.mrb[38].mxu0  ;;  %v2923_v63 = vld [vmem:[%s3057_s2] ss:$0 sm:$0xff] }
 0x140   :  { %v2174_v3 = vpop.f32.mrb[39].mxu1  ;;  %v2086_v11 = vpop.f32.mrb[39].mxu0 }
 0x141   :  { %v2175_v12 = vadd.f32 %v2174_v3, %v2173_v4  ;;  %v2898_v13 = vadd.f32 %v2086_v11, %v2085_v9  ;;  %v2900_v17 = vadd.f32 %v2172_v1, %v2060_v61 }
 0x143   :  { %v2902_v46 = vadd.f32 %v2175_v12, %v2063_v5 }
 0x145   :  { %v2176_v51 = vpop.f32.mrb[40].mxu1  ;;  %v2088_v18 = vpop.f32.mrb[40].mxu0 }
 0x146   :  { %v2177_v19 = vpop.f32.mrb[41].mxu1  ;;  %v2089_v21 = vpop.f32.mrb[41].mxu0 }
 0x147   :  { %v2178_v10 = vadd.f32 %v2177_v19, %v2176_v51  ;;  %v2179_v28 = vpop.f32.mrb[42].mxu1  ;;  %v2904_v15 = vadd.f32 %v2089_v21, %v2088_v18  ;;  %v2091_v29 = vpop.f32.mrb[42].mxu0 }
 0x148   :  { %v2180_v30 = vpop.f32.mrb[43].mxu1  ;;  %v2092_v31 = vpop.f32.mrb[43].mxu0 }
 0x149   :  { %v2181_v35 = vadd.f32 %v2180_v30, %v2179_v28  ;;  %v2906_v36 = vadd.f32 %v2092_v31, %v2091_v29  ;;  %v2908_v37 = vadd.f32 %v2178_v10, %v2066_v16 }
 0x14b   :  { %v2910_v61 = vadd.f32 %v2181_v35, %v2069_v23 }
 0x14d   :  { %v2182_v5 = vpop.f32.mrb[44].mxu1  ;;  %v2094_v40 = vpop.f32.mrb[44].mxu0 }
 0x14e   :  { %v2183_v22 = vpop.f32.mrb[45].mxu1  ;;  %v2095_v44 = vpop.f32.mrb[45].mxu0 }
 0x14f   :  { %v2184_v27 = vadd.f32 %v2183_v22, %v2182_v5  ;;  %v2185_v45 = vpop.f32.mrb[46].mxu1  ;;  %v2912_v47 = vadd.f32 %v2095_v44, %v2094_v40  ;;  %v2097_v48 = vpop.f32.mrb[46].mxu0 }
 0x150   :  { %v2186_v50 = vpop.f32.mrb[47].mxu1  ;;  %v2098_v54 = vpop.f32.mrb[47].mxu0 }
 0x151   :  { %v2187_v55 = vadd.f32 %v2186_v50, %v2185_v45  ;;  %v2914_v56 = vadd.f32 %v2098_v54, %v2097_v48  ;;  %v2916_v39 = vadd.f32 %v2184_v27, %v2072_v33 }
 0x153   :  { %v2918_v16 = vadd.f32 %v2187_v55, %v2075_v41 }
 0x155   :  { %v2188_v23 = vpop.f32.mrb[48].mxu1  ;;  %v2278_v59 = vpop.f32.mrb[48].mxu0 }
 0x156   :  { %v1280_v0 = vadd.f32 %v2278_v59, %v2876_v6  ;;  %v2189_v1 = vpop.f32.mrb[49].mxu1  ;;  %v1271_v4 = vpop.f32.mrb[49].mxu0 }
 0x157   :  { %v2190_v9 = vadd.f32 %v2189_v1, %v2188_v23  ;;  %v1272_v3 = vadd.f32 %v1271_v4, %v2872_v52  ;;  %v2191_v11 = vpop.f32.mrb[50].mxu1  ;;  %v2279_v12 = vpop.f32.mrb[50].mxu0 }
 0x158   :  { %v1506_v33 = vadd.f32 %v2923_v63, %v1280_v0  ;;  %v1283_v41 = vadd.f32 %v2279_v12, %v2878_v7  ;;  %v2192_v51 = vpop.f32.mrb[51].mxu1  ;;  %v1274_v18 = vpop.f32.mrb[51].mxu0 }
 0x159   :  { %v1504_v19 = vadd.f32 %v2923_v63, %v1272_v3  ;;  %v2193_v21 = vadd.f32 %v2192_v51, %v2191_v11  ;;  %v1275_v10 = vadd.f32 %v1274_v18, %v2874_v53  ;;  %v2932_v6 = vadd.f32 %v2190_v9, %v2888_v49 }
 0x15a   :  { %v1507_v28 = vadd.f32 %v2923_v63, %v1283_v41  ;;  %v1538_v30 = vmax.f32 %v1506_v33, 0.0 }
 0x15b   :  { %v1505_v52 = vadd.f32 %v2923_v63, %v1275_v10  ;;  %v2937_v29 = vadd.f32 %v2193_v21, %v2890_v57  ;;  %v1536_v7 = vmax.f32 %v1504_v19, 0.0 }
 0x15c   :  { %v1539_v31 = vmax.f32 %v1507_v28, 0.0 }
 0x15d   :  { %v1537_v35 = vmax.f32 %v1505_v52, 0.0  ;;  %v2194_v5 = vpop.f32.mrb[52].mxu1  ;;  %v2282_v40 = vpop.f32.mrb[52].mxu0 }
 0x15e   :  { %v1925_v22 = vpack.c.bf16 %v1539_v31, %v1538_v30  ;;  %v1296_v44 = vadd.f32 %v2282_v40, %v2884_v42  ;;  %v2195_v53 = vpop.f32.mrb[53].mxu1  ;;  %v1287_v27 = vpop.f32.mrb[53].mxu0 }
 0x15f   :  { %v1920_v49 = vpack.c.bf16 %v1537_v35, %v1536_v7  ;;  %v2196_v45 = vadd.f32 %v2195_v53, %v2194_v5  ;;  %v1288_v48 = vadd.f32 %v1287_v27, %v2880_v24  ;;  %v2197_v50 = vpop.f32.mrb[54].mxu1  ;;  %v2283_v54 = vpop.f32.mrb[54].mxu0 }
 0x160   :  { %1997 = vst [vmem:[%s3058_s3 + $0x8] sm:$0xff] %v1925_v22   ;;  %v1510_v57 = vadd.f32 %v2923_v63, %v1296_v44  ;;  %v1299_v55 = vadd.f32 %v2283_v54, %v2886_v43  ;;  %v2198_v23 = vpop.f32.mrb[55].mxu1  ;;  %v1290_v59 = vpop.f32.mrb[55].mxu0 }
 0x161   :  { %1921 = vst [vmem:[%s3058_s3] sm:$0xff] %v1920_v49   ;;  %v1508_v42 = vadd.f32 %v2923_v63, %v1288_v48  ;;  %v2199_v0 = vadd.f32 %v2198_v23, %v2197_v50  ;;  %v1291_v24 = vadd.f32 %v1290_v59, %v2882_v25  ;;  %v2952_v1 = vadd.f32 %v2196_v45, %v2896_v62 }
 0x162   :  { %v1511_v4 = vadd.f32 %v2923_v63, %v1299_v55  ;;  %v1542_v3 = vmax.f32 %v1510_v57, 0.0 }
 0x163   :  { %v1509_v9 = vadd.f32 %v2923_v63, %v1291_v24  ;;  %v2957_v43 = vadd.f32 %v2199_v0, %v2898_v13  ;;  %v1540_v12 = vmax.f32 %v1508_v42, 0.0 }
 0x164   :  { %v1543_v11 = vmax.f32 %v1511_v4, 0.0 }
 0x165   :  { %v1541_v33 = vmax.f32 %v1509_v9, 0.0  ;;  %v2200_v41 = vpop.f32.mrb[56].mxu1  ;;  %v2286_v51 = vpop.f32.mrb[56].mxu0 }
 0x166   :  { %v1935_v18 = vpack.c.bf16 %v1543_v11, %v1542_v3  ;;  %v1312_v19 = vadd.f32 %v2286_v51, %v2900_v17  ;;  %v2201_v25 = vpop.f32.mrb[57].mxu1  ;;  %v1303_v21 = vpop.f32.mrb[57].mxu0 }
 0x167   :  { %v1930_v62 = vpack.c.bf16 %v1541_v33, %v1540_v12  ;;  %v2202_v10 = vadd.f32 %v2201_v25, %v2200_v41  ;;  %v1304_v28 = vadd.f32 %v1303_v21, %v2892_v58  ;;  %v2203_v52 = vpop.f32.mrb[58].mxu1  ;;  %v2287_v30 = vpop.f32.mrb[58].mxu0 }
 0x168   :  { %1999 = vst [vmem:[%s3058_s3 + $0x18] sm:$0xff] %v1935_v18   ;;  %v1514_v13 = vadd.f32 %v2923_v63, %v1312_v19  ;;  %v1315_v31 = vadd.f32 %v2287_v30, %v2902_v46  ;;  %v2204_v7 = vpop.f32.mrb[59].mxu1  ;;  %v1306_v35 = vpop.f32.mrb[59].mxu0 }
 0x169   :  { %1998 = vst [vmem:[%s3058_s3 + $0x10] sm:$0xff] %v1930_v62   ;;  %v1512_v17 = vadd.f32 %v2923_v63, %v1304_v28  ;;  %v2205_v5 = vadd.f32 %v2204_v7, %v2203_v52  ;;  %v1307_v58 = vadd.f32 %v1306_v35, %v2894_v34  ;;  %v2972_v40 = vadd.f32 %v2202_v10, %v2904_v15 }
 0x16a   :  { %v1515_v22 = vadd.f32 %v2923_v63, %v1315_v31  ;;  %v1546_v53 = vmax.f32 %v1514_v13, 0.0 }
 0x16b   :  { %v1513_v44 = vadd.f32 %v2923_v63, %v1307_v58  ;;  %v2977_v46 = vadd.f32 %v2205_v5, %v2906_v36  ;;  %v1544_v49 = vmax.f32 %v1512_v17, 0.0 }
 0x16c   :  { %v1547_v27 = vmax.f32 %v1515_v22, 0.0 }
 0x16d   :  { %v1545_v45 = vmax.f32 %v1513_v44, 0.0  ;;  %v2206_v48 = vpop.f32.mrb[60].mxu1  ;;  %v2290_v50 = vpop.f32.mrb[60].mxu0 }
 0x16e   :  { %v1945_v54 = vpack.c.bf16 %v1547_v27, %v1546_v53  ;;  %v1328_v57 = vadd.f32 %v2290_v50, %v2916_v39  ;;  %v2207_v34 = vpop.f32.mrb[61].mxu1  ;;  %v1319_v55 = vpop.f32.mrb[61].mxu0 }
 0x16f   :  { %v1940_v15 = vpack.c.bf16 %v1545_v45, %v1544_v49  ;;  %v2208_v23 = vadd.f32 %v2207_v34, %v2206_v48  ;;  %v1320_v59 = vadd.f32 %v1319_v55, %v2908_v37  ;;  %v2209_v42 = vpop.f32.mrb[62].mxu1  ;;  %v2291_v0 = vpop.f32.mrb[62].mxu0 }
 0x170   :  { %2001 = vst [vmem:[%s3058_s3 + $0x28] sm:$0xff] %v1945_v54   ;;  %v1518_v36 = vadd.f32 %v2923_v63, %v1328_v57  ;;  %v1331_v24 = vadd.f32 %v2291_v0, %v2918_v16  ;;  %v2210_v4 = vpop.f32.mrb[63].mxu1  ;;  %v1322_v9 = vpop.f32.mrb[63].mxu0 }
 0x171   :  { %2000 = vst [vmem:[%s3058_s3 + $0x20] sm:$0xff] %v1940_v15   ;;  %v1516_v39 = vadd.f32 %v2923_v63, %v1320_v59  ;;  %v2211_v3 = vadd.f32 %v2210_v4, %v2209_v42  ;;  %v1323_v37 = vadd.f32 %v1322_v9, %v2910_v61  ;;  %v1199_v11 = vadd.f32 %v2208_v23, %v2912_v47 }
 0x172   :  { %v1519_v12 = vadd.f32 %v2923_v63, %v1331_v24  ;;  %v1550_v16 = vmax.f32 %v1518_v36, 0.0 }
 0x173   :  { %v1517_v33 = vadd.f32 %v2923_v63, %v1323_v37  ;;  %v1202_v41 = vadd.f32 %v2211_v3, %v2914_v56  ;;  %v1548_v18 = vmax.f32 %v1516_v39, 0.0 }
 0x174   :  { %v1551_v51 = vmax.f32 %v1519_v12, 0.0 }
 0x175   :  { %v1549_v19 = vmax.f32 %v1517_v33, 0.0  ;;  %v2212_v25 = vpop.f32.mrb[64].mxu1  ;;  %v2294_v21 = vpop.f32.mrb[64].mxu0 }
 0x176   :  { %v1955_v62 = vpack.c.bf16 %v1551_v51, %v1550_v16  ;;  %v1344_v10 = vadd.f32 %v2294_v21, %v2952_v1  ;;  %v2213_v28 = vpop.f32.mrb[65].mxu1  ;;  %v1335_v52 = vpop.f32.mrb[65].mxu0 }
 0x177   :  { %v1950_v61 = vpack.c.bf16 %v1549_v19, %v1548_v18  ;;  %v2214_v30 = vadd.f32 %v2213_v28, %v2212_v25  ;;  %v1336_v47 = vadd.f32 %v1335_v52, %v2932_v6  ;;  %v2215_v13 = vpop.f32.mrb[66].mxu1  ;;  %v2295_v31 = vpop.f32.mrb[66].mxu0 }
 0x178   :  { %2003 = vst [vmem:[%s3058_s3 + $0x38] sm:$0xff] %v1955_v62   ;;  %v1522_v56 = vadd.f32 %v2923_v63, %v1344_v10  ;;  %v1347_v7 = vadd.f32 %v2295_v31, %v2957_v43  ;;  %v2216_v35 = vpop.f32.mrb[67].mxu1  ;;  %v1338_v17 = vpop.f32.mrb[67].mxu0 }
 0x179   :  { %2002 = vst [vmem:[%s3058_s3 + $0x30] sm:$0xff] %v1950_v61   ;;  %v1520_v1 = vadd.f32 %v2923_v63, %v1336_v47  ;;  %v2217_v5 = vadd.f32 %v2216_v35, %v2215_v13  ;;  %v1339_v6 = vadd.f32 %v1338_v17, %v2937_v29  ;;  %v1207_v58 = vadd.f32 %v2214_v30, %v2856_v60 }
 0x17a   :  { %v1523_v22 = vadd.f32 %v2923_v63, %v1347_v7  ;;  %v1554_v43 = vmax.f32 %v1522_v56, 0.0 }
 0x17b   :  { %v1521_v44 = vadd.f32 %v2923_v63, %v1339_v6  ;;  %v1210_v53 = vadd.f32 %v2217_v5, %v2858_v2  ;;  %v1552_v49 = vmax.f32 %v1520_v1, 0.0 }
 0x17c   :  { %v1555_v27 = vmax.f32 %v1523_v22, 0.0 }
 0x17d   :  { %v1553_v45 = vmax.f32 %v1521_v44, 0.0  ;;  %v2218_v48 = vpop.f32.mrb[68].mxu1  ;;  %v2298_v50 = vpop.f32.mrb[68].mxu0 }
 0x17e   :  { %v1965_v54 = vpack.c.bf16 %v1555_v27, %v1554_v43  ;;  %v1360_v57 = vadd.f32 %v2298_v50, %v1199_v11  ;;  %v2219_v34 = vpop.f32.mrb[69].mxu1  ;;  %v1351_v55 = vpop.f32.mrb[69].mxu0 }
 0x17f   :  { %v1960_v15 = vpack.c.bf16 %v1553_v45, %v1552_v49  ;;  %v2220_v29 = vadd.f32 %v2219_v34, %v2218_v48  ;;  %v1352_v60 = vadd.f32 %v1351_v55, %v2972_v40  ;;  %v2221_v23 = vpop.f32.mrb[70].mxu1  ;;  %v2299_v59 = vpop.f32.mrb[70].mxu0 }
 0x180   :  { %2005 = vst [vmem:[%s3058_s3 + $0x48] sm:$0xff] %v1965_v54   ;;  %v1526_v2 = vadd.f32 %v2923_v63, %v1360_v57  ;;  %v1363_v42 = vadd.f32 %v2299_v59, %v1202_v41  ;;  %v2222_v0 = vpop.f32.mrb[71].mxu1  ;;  %v1354_v36 = vpop.f32.mrb[71].mxu0 }
 0x181   :  { %2004 = vst [vmem:[%s3058_s3 + $0x40] sm:$0xff] %v1960_v15   ;;  %v1524_v24 = vadd.f32 %v2923_v63, %v1352_v60  ;;  %v2223_v4 = vadd.f32 %v2222_v0, %v2221_v23  ;;  %v1355_v40 = vadd.f32 %v1354_v36, %v2977_v46  ;;  %v1215_v9 = vadd.f32 %v2220_v29, %v2860_v8 }
 0x182   :  { %v1527_v39 = vadd.f32 %v2923_v63, %v1363_v42  ;;  %v1558_v11 = vmax.f32 %v1526_v2, 0.0 }
 0x183   :  { %v1525_v3 = vadd.f32 %v2923_v63, %v1355_v40  ;;  %v1218_v37 = vadd.f32 %v2223_v4, %v2862_v14  ;;  %v1556_v33 = vmax.f32 %v1524_v24, 0.0 }
 0x184   :  { %v1559_v12 = vmax.f32 %v1527_v39, 0.0 }
 0x185   :  { %v1557_v41 = vmax.f32 %v1525_v3, 0.0  ;;  %v2224_v16 = vpop.f32.mrb[72].mxu1  ;;  %v2302_v51 = vpop.f32.mrb[72].mxu0 }
 0x186   :  { %v1975_v18 = vpack.c.bf16 %v1559_v12, %v1558_v11  ;;  %v1376_v19 = vadd.f32 %v2302_v51, %v1215_v9  ;;  %v2225_v25 = vpop.f32.mrb[73].mxu1  ;;  %v1367_v21 = vpop.f32.mrb[73].mxu0 }
 0x187   :  { %v1970_v62 = vpack.c.bf16 %v1557_v41, %v1556_v33  ;;  %v2226_v46 = vadd.f32 %v2225_v25, %v2224_v16  ;;  %v1368_v10 = vadd.f32 %v1367_v21, %v1207_v58  ;;  %v2227_v8 = vpop.f32.mrb[74].mxu1  ;;  %v2303_v28 = vpop.f32.mrb[74].mxu0 }
 0x188   :  { %2007 = vst [vmem:[%s3058_s3 + $0x58] sm:$0xff] %v1975_v18   ;;  %v1530_v14 = vadd.f32 %v2923_v63, %v1376_v19  ;;  %v1379_v52 = vadd.f32 %v2303_v28, %v1218_v37  ;;  %v2228_v61 = vpop.f32.mrb[75].mxu1  ;;  %v1370_v30 = vpop.f32.mrb[75].mxu0 }
 0x189   :  { %2006 = vst [vmem:[%s3058_s3 + $0x50] sm:$0xff] %v1970_v62   ;;  %v1528_v47 = vadd.f32 %v2923_v63, %v1368_v10  ;;  %v2229_v13 = vadd.f32 %v2228_v61, %v2227_v8  ;;  %v1371_v31 = vadd.f32 %v1370_v30, %v1210_v53  ;;  %v1223_v56 = vadd.f32 %v2226_v46, %v2864_v20 }
 0x18a   :  { %v1531_v7 = vadd.f32 %v2923_v63, %v1379_v52  ;;  %v1562_v1 = vmax.f32 %v1530_v14, 0.0 }
 0x18b   :  { %v1529_v35 = vadd.f32 %v2923_v63, %v1371_v31  ;;  %v1226_v17 = vadd.f32 %v2229_v13, %v2866_v26  ;;  %v1560_v6 = vmax.f32 %v1528_v47, 0.0 }
 0x18c   :  { %v1563_v5 = vmax.f32 %v1531_v7, 0.0 }
 0x18d   :  { %v1561_v58 = vmax.f32 %v1529_v35, 0.0  ;;  %v2230_v22 = vpop.f32.mrb[76].mxu1  ;;  %v2306_v44 = vpop.f32.mrb[76].mxu0 }
 0x18e   :  { %v1985_v43 = vpack.c.bf16 %v1563_v5, %v1562_v1  ;;  %v2231_v27 = vpop.f32.mrb[77].mxu1  ;;  %v1383_v49 = vpop.f32.mrb[77].mxu0 }
 0x18f   :  { %v1980_v45 = vpack.c.bf16 %v1561_v58, %v1560_v6  ;;  %v2232_v48 = vadd.f32 %v2231_v27, %v2230_v22  ;;  %v1384_v53 = vadd.f32 %v1383_v49, %v1223_v56  ;;  %v2233_v50 = vpop.f32.mrb[78].mxu1  ;;  %v2307_v20 = vpop.f32.mrb[78].mxu0 }
 0x190   :  { %2009 = vst [vmem:[%s3058_s3 + $0x68] sm:$0xff] %v1985_v43   ;;  %v2234_v54 = vpop.f32.mrb[79].mxu1  ;;  %v1386_v26 = vpop.f32.mrb[79].mxu0 }
 0x191   :  { %2008 = vst [vmem:[%s3058_s3 + $0x60] sm:$0xff] %v1980_v45   ;;  %v1231_v57 = vadd.f32 %v2232_v48, %v2868_v32  ;;  %v1532_v34 = vadd.f32 %v2923_v63, %v1384_v53  ;;  %v2235_v55 = vadd.f32 %v2234_v54, %v2233_v50  ;;  %v1387_v15 = vadd.f32 %v1386_v26, %v1226_v17 }
 0x193   :  { %v1392_v29 = vadd.f32 %v2306_v44, %v1231_v57  ;;  %v1234_v60 = vadd.f32 %v2235_v55, %v2870_v38  ;;  %v1533_v23 = vadd.f32 %v2923_v63, %v1387_v15  ;;  %v1564_v2 = vmax.f32 %v1532_v34, 0.0 }
 0x195   :  { %v1534_v59 = vadd.f32 %v2923_v63, %v1392_v29  ;;  %v1395_v42 = vadd.f32 %v2307_v20, %v1234_v60  ;;  %v1565_v0 = vmax.f32 %v1533_v23, 0.0 }
 0x197   :  { %v1535_v36 = vadd.f32 %v2923_v63, %v1395_v42  ;;  %v1990_v24 = vpack.c.bf16 %v1565_v0, %v1564_v2  ;;  %v1566_v4 = vmax.f32 %v1534_v59, 0.0 }
 0x199   :  { %v1567_v40 = vmax.f32 %v1535_v36, 0.0  ;;  %2010 = vst [vmem:[%s3058_s3 + $0x70] sm:$0xff] %v1990_v24  }
 0x19b   :  { %v1995_v32 = vpack.c.bf16 %v1567_v40, %v1566_v4 }
 0x19d   :  { %2011 = vst [vmem:[%s3058_s3 + $0x78] sm:$0xff] %v1995_v32  }

// kernel: crnn_forward.7
= control target key start
LH: loop header
LB: loop body
LE: loop exit
PB: predicated region body
PF: predicated region fallthrough
CT: control target
= control target key end

     0   :  { %s2482_s12 = smov 0   ;;  %s2484_s13 = smov 0   ;;  %s3044_s0 = inlined_call_operand.vmem [shape: bf16[40,512], index: 0, kind: input, shape index: {}]   ;;  %s3045_s1 = inlined_call_operand.vmem [shape: bf16[512,2048], index: 1, kind: input, shape index: {}]   ;;  %s3046_s2 = inlined_call_operand.vmem [shape: f32[1,2048], index: 2, kind: input, shape index: {}]   ;;  %s3047_s3 = inlined_call_operand.vmem [shape: bf16[40,2048], index: 3, kind: output, shape index: {}]  }
   0x1   :  { %s2486_s14 = smov 0   ;;  %s2488_s15 = smov 0  }
   0x2   :  { %s2490_s16 = smov 0  }
   0x3 LB: > { %s28_s17 = sadd.s32 1, %s2456_s15  ;;  %s1980_s18 = sadd.s32 4294967295, %s2460_s16   ;;  %s2460_s16 = sphi %s2490_s16, %s13_s16   ;;  %s2456_s15 = sphi %s2488_s15, %s3052_s15   ;;  %s2452_s14 = sphi %s2486_s14, %s3051_s14   ;;  %s2448_s13 = sphi %s2484_s13, %s3050_s13   ;;  %s2444_s12 = sphi %s2482_s12, %s3049_s12  }
   0x4   : > { %p30_p0 = scmp.ge.s32.totalorder %s28_s17, 4  ;;  %p76_p1 = scmp.ne.s32.totalorder %s2448_s13, %s2444_s12 }
   0x5   : > { %p77_p2 = scmp.eq.s32.totalorder %s2460_s16, 0  ;;  %p134_p4 = scmp.eq.s32.totalorder %s1980_s18, 3 }
   0x6   : > { %s3054_s17 = smov (%p30_p0, %s28_s17), 0  ;;  %s69_s20 = sadd.s32 1, %s2448_s13 }
   0x7   : > { %p78_p3 = por %p77_p2, %p76_p1  ;;  %s65_s19 = ssub.s32 %s2456_s15, %s3054_s17 }
   0x8   : > { %p67_p5 = scmp.eq.s32.totalorder %s65_s19, 0  ;;  %p2517_p6 = por %p134_p4, %p76_p1 }
   0x9   : > { %p1984_p7 = scmp.ge.s32.totalorder %s2460_s16, 4 }
   0xa   : > { %s2522_s22 = scalar_select %p67_p5, %s2448_s13, %s69_s20  }
   0xb   : > { %171 = sbr.rel (%p1984_p7) target bundleno = 86 (0x56), region = 20 }
  0x12   : > { %174 = sbr.rel (!%p78_p3) target bundleno = 86 (0x56), region = 24  ;;  %s176_s23 = sand.u32 (%p78_p3), 1, %s2448_s13  }
  0x13   : > { %s2145_s24 = sshll.u32 (%p78_p3), %s2456_s15, 4  ;;  %s1985_s25 = sshll.u32 (%p78_p3), %s176_s23, 10 }
  0x14   : > { %s2530_s28 = scalar_lea.vmem (%p78_p3), %s3045_s1, %s2145_s24  ;;  %s2535_s29 = scalar_lea.vmem (%p78_p3), [#allocation3], %s1985_s25 }
  0x15   : > { %v197_v0 = vld [vmem:[%s2530_s28] sm:$0xff] (%p78_p3)  ;;  %v199_v1 = vld [vmem:[%s2530_s28 + $0x8] sm:$0xff] (%p78_p3) }
  0x16   : > { %v201_v2 = vld [vmem:[%s2530_s28 + $0x40] sm:$0xff] (%p78_p3)  ;;  %198 = vst [vmem:[%s2535_s29] sm:$0xff] (%p78_p3), %v197_v0  ;;  %200 = vst [vmem:[%s2535_s29 + $0x8] sm:$0xff] (%p78_p3), %v199_v1  ;;  %v203_v3 = vld [vmem:[%s2530_s28 + $0x48] sm:$0xff] (%p78_p3) }
  0x17   : > { %202 = vst [vmem:[%s2535_s29 + $0x10] sm:$0xff] (%p78_p3), %v201_v2  ;;  %v205_v4 = vld [vmem:[%s2530_s28 + $0x80] sm:$0xff] (%p78_p3)  ;;  %v207_v5 = vld [vmem:[%s2530_s28 + $0x88] sm:$0xff] (%p78_p3)  ;;  %204 = vst [vmem:[%s2535_s29 + $0x18] sm:$0xff] (%p78_p3), %v203_v3 }
  0x18   : > { %206 = vst [vmem:[%s2535_s29 + $0x20] sm:$0xff] (%p78_p3), %v205_v4  ;;  %208 = vst [vmem:[%s2535_s29 + $0x28] sm:$0xff] (%p78_p3), %v207_v5  ;;  %v209_v6 = vld [vmem:[%s2530_s28 + $0xc0] sm:$0xff] (%p78_p3)  ;;  %v211_v7 = vld [vmem:[%s2530_s28 + $0xc8] sm:$0xff] (%p78_p3) }
  0x19   : > { %v213_v8 = vld [vmem:[%s2530_s28 + $0x100] sm:$0xff]  ;;  %210 = vst [vmem:[%s2535_s29 + $0x30] sm:$0xff] %v209_v6  ;;  %212 = vst [vmem:[%s2535_s29 + $0x38] sm:$0xff] %v211_v7  ;;  %v215_v9 = vld [vmem:[%s2530_s28 + $0x108] sm:$0xff] }
  0x1a   : > { %214 = vst [vmem:[%s2535_s29 + $0x40] sm:$0xff] %v213_v8  ;;  %v217_v10 = vld [vmem:[%s2530_s28 + $0x140] sm:$0xff]  ;;  %v219_v11 = vld [vmem:[%s2530_s28 + $0x148] sm:$0xff]  ;;  %216 = vst [vmem:[%s2535_s29 + $0x48] sm:$0xff] %v215_v9 }
  0x1b   : > { %218 = vst [vmem:[%s2535_s29 + $0x50] sm:$0xff] %v217_v10  ;;  %220 = vst [vmem:[%s2535_s29 + $0x58] sm:$0xff] %v219_v11  ;;  %v221_v12 = vld [vmem:[%s2530_s28 + $0x180] sm:$0xff]  ;;  %v223_v13 = vld [vmem:[%s2530_s28 + $0x188] sm:$0xff] }
  0x1c   : > { %v225_v14 = vld [vmem:[%s2530_s28 + $0x1c0] sm:$0xff]  ;;  %222 = vst [vmem:[%s2535_s29 + $0x60] sm:$0xff] %v221_v12  ;;  %224 = vst [vmem:[%s2535_s29 + $0x68] sm:$0xff] %v223_v13  ;;  %v227_v15 = vld [vmem:[%s2530_s28 + $0x1c8] sm:$0xff] }
  0x1d   : > { %226 = vst [vmem:[%s2535_s29 + $0x70] sm:$0xff] %v225_v14  ;;  %v229_v16 = vld [vmem:[%s2530_s28 + $0x200] sm:$0xff]  ;;  %v231_v17 = vld [vmem:[%s2530_s28 + $0x208] sm:$0xff]  ;;  %228 = vst [vmem:[%s2535_s29 + $0x78] sm:$0xff] %v227_v15 }
  0x1e   : > { %230 = vst [vmem:[%s2535_s29 + $0x80] sm:$0xff] %v229_v16  ;;  %232 = vst [vmem:[%s2535_s29 + $0x88] sm:$0xff] %v231_v17  ;;  %v233_v18 = vld [vmem:[%s2530_s28 + $0x240] sm:$0xff]  ;;  %v235_v19 = vld [vmem:[%s2530_s28 + $0x248] sm:$0xff] }
  0x1f   : > { %v237_v20 = vld [vmem:[%s2530_s28 + $0x280] sm:$0xff]  ;;  %234 = vst [vmem:[%s2535_s29 + $0x90] sm:$0xff] %v233_v18  ;;  %236 = vst [vmem:[%s2535_s29 + $0x98] sm:$0xff] %v235_v19  ;;  %v239_v21 = vld [vmem:[%s2530_s28 + $0x288] sm:$0xff] }
  0x20   : > { %238 = vst [vmem:[%s2535_s29 + $0xa0] sm:$0xff] %v237_v20  ;;  %v241_v22 = vld [vmem:[%s2530_s28 + $0x2c0] sm:$0xff]  ;;  %v243_v23 = vld [vmem:[%s2530_s28 + $0x2c8] sm:$0xff]  ;;  %240 = vst [vmem:[%s2535_s29 + $0xa8] sm:$0xff] %v239_v21 }
  0x21   : > { %242 = vst [vmem:[%s2535_s29 + $0xb0] sm:$0xff] %v241_v22  ;;  %244 = vst [vmem:[%s2535_s29 + $0xb8] sm:$0xff] %v243_v23  ;;  %v245_v24 = vld [vmem:[%s2530_s28 + $0x300] sm:$0xff]  ;;  %v247_v25 = vld [vmem:[%s2530_s28 + $0x308] sm:$0xff] }
  0x22   : > { %v249_v26 = vld [vmem:[%s2530_s28 + $0x340] sm:$0xff]  ;;  %246 = vst [vmem:[%s2535_s29 + $0xc0] sm:$0xff] %v245_v24  ;;  %248 = vst [vmem:[%s2535_s29 + $0xc8] sm:$0xff] %v247_v25  ;;  %v251_v27 = vld [vmem:[%s2530_s28 + $0x348] sm:$0xff] }
  0x23   : > { %250 = vst [vmem:[%s2535_s29 + $0xd0] sm:$0xff] %v249_v26  ;;  %v253_v28 = vld [vmem:[%s2530_s28 + $0x380] sm:$0xff]  ;;  %v255_v29 = vld [vmem:[%s2530_s28 + $0x388] sm:$0xff]  ;;  %252 = vst [vmem:[%s2535_s29 + $0xd8] sm:$0xff] %v251_v27 }
  0x24   : > { %254 = vst [vmem:[%s2535_s29 + $0xe0] sm:$0xff] %v253_v28  ;;  %256 = vst [vmem:[%s2535_s29 + $0xe8] sm:$0xff] %v255_v29  ;;  %v257_v30 = vld [vmem:[%s2530_s28 + $0x3c0] sm:$0xff]  ;;  %v259_v31 = vld [vmem:[%s2530_s28 + $0x3c8] sm:$0xff] }
  0x25   : > { %v261_v32 = vld [vmem:[%s2530_s28 + $0x400] sm:$0xff]  ;;  %258 = vst [vmem:[%s2535_s29 + $0xf0] sm:$0xff] %v257_v30  ;;  %260 = vst [vmem:[%s2535_s29 + $0xf8] sm:$0xff] %v259_v31  ;;  %v263_v33 = vld [vmem:[%s2530_s28 + $0x408] sm:$0xff] }
  0x26   : > { %262 = vst [vmem:[%s2535_s29 + $0x100] sm:$0xff] %v261_v32  ;;  %v265_v34 = vld [vmem:[%s2530_s28 + $0x440] sm:$0xff]  ;;  %v267_v35 = vld [vmem:[%s2530_s28 + $0x448] sm:$0xff]  ;;  %264 = vst [vmem:[%s2535_s29 + $0x108] sm:$0xff] %v263_v33 }
  0x27   : > { %266 = vst [vmem:[%s2535_s29 + $0x110] sm:$0xff] %v265_v34  ;;  %268 = vst [vmem:[%s2535_s29 + $0x118] sm:$0xff] %v267_v35  ;;  %v269_v36 = vld [vmem:[%s2530_s28 + $0x480] sm:$0xff]  ;;  %v271_v37 = vld [vmem:[%s2530_s28 + $0x488] sm:$0xff] }
  0x28   : > { %v273_v38 = vld [vmem:[%s2530_s28 + $0x4c0] sm:$0xff]  ;;  %270 = vst [vmem:[%s2535_s29 + $0x120] sm:$0xff] %v269_v36  ;;  %272 = vst [vmem:[%s2535_s29 + $0x128] sm:$0xff] %v271_v37  ;;  %v275_v39 = vld [vmem:[%s2530_s28 + $0x4c8] sm:$0xff] }
  0x29   : > { %274 = vst [vmem:[%s2535_s29 + $0x130] sm:$0xff] %v273_v38  ;;  %v277_v40 = vld [vmem:[%s2530_s28 + $0x500] sm:$0xff]  ;;  %v279_v41 = vld [vmem:[%s2530_s28 + $0x508] sm:$0xff]  ;;  %276 = vst [vmem:[%s2535_s29 + $0x138] sm:$0xff] %v275_v39 }
  0x2a   : > { %278 = vst [vmem:[%s2535_s29 + $0x140] sm:$0xff] %v277_v40  ;;  %280 = vst [vmem:[%s2535_s29 + $0x148] sm:$0xff] %v279_v41  ;;  %v281_v42 = vld [vmem:[%s2530_s28 + $0x540] sm:$0xff]  ;;  %v283_v43 = vld [vmem:[%s2530_s28 + $0x548] sm:$0xff] }
  0x2b   : > { %v285_v44 = vld [vmem:[%s2530_s28 + $0x580] sm:$0xff]  ;;  %282 = vst [vmem:[%s2535_s29 + $0x150] sm:$0xff] %v281_v42  ;;  %284 = vst [vmem:[%s2535_s29 + $0x158] sm:$0xff] %v283_v43  ;;  %v287_v45 = vld [vmem:[%s2530_s28 + $0x588] sm:$0xff] }
  0x2c   : > { %286 = vst [vmem:[%s2535_s29 + $0x160] sm:$0xff] %v285_v44  ;;  %v289_v46 = vld [vmem:[%s2530_s28 + $0x5c0] sm:$0xff]  ;;  %v291_v47 = vld [vmem:[%s2530_s28 + $0x5c8] sm:$0xff]  ;;  %288 = vst [vmem:[%s2535_s29 + $0x168] sm:$0xff] %v287_v45 }
  0x2d   : > { %290 = vst [vmem:[%s2535_s29 + $0x170] sm:$0xff] %v289_v46  ;;  %292 = vst [vmem:[%s2535_s29 + $0x178] sm:$0xff] %v291_v47  ;;  %v293_v48 = vld [vmem:[%s2530_s28 + $0x600] sm:$0xff]  ;;  %v295_v49 = vld [vmem:[%s2530_s28 + $0x608] sm:$0xff] }
  0x2e   : > { %v297_v50 = vld [vmem:[%s2530_s28 + $0x640] sm:$0xff]  ;;  %294 = vst [vmem:[%s2535_s29 + $0x180] sm:$0xff] %v293_v48  ;;  %296 = vst [vmem:[%s2535_s29 + $0x188] sm:$0xff] %v295_v49  ;;  %v299_v51 = vld [vmem:[%s2530_s28 + $0x648] sm:$0xff] }
  0x2f   : > { %298 = vst [vmem:[%s2535_s29 + $0x190] sm:$0xff] %v297_v50  ;;  %v301_v52 = vld [vmem:[%s2530_s28 + $0x680] sm:$0xff]  ;;  %v303_v53 = vld [vmem:[%s2530_s28 + $0x688] sm:$0xff]  ;;  %300 = vst [vmem:[%s2535_s29 + $0x198] sm:$0xff] %v299_v51 }
  0x30   : > { %302 = vst [vmem:[%s2535_s29 + $0x1a0] sm:$0xff] %v301_v52  ;;  %304 = vst [vmem:[%s2535_s29 + $0x1a8] sm:$0xff] %v303_v53  ;;  %v305_v54 = vld [vmem:[%s2530_s28 + $0x6c0] sm:$0xff]  ;;  %v307_v55 = vld [vmem:[%s2530_s28 + $0x6c8] sm:$0xff] }
  0x31   : > { %v309_v56 = vld [vmem:[%s2530_s28 + $0x700] sm:$0xff]  ;;  %306 = vst [vmem:[%s2535_s29 + $0x1b0] sm:$0xff] %v305_v54  ;;  %308 = vst [vmem:[%s2535_s29 + $0x1b8] sm:$0xff] %v307_v55  ;;  %v311_v57 = vld [vmem:[%s2530_s28 + $0x708] sm:$0xff] }
  0x32   : > { %310 = vst [vmem:[%s2535_s29 + $0x1c0] sm:$0xff] %v309_v56  ;;  %v313_v58 = vld [vmem:[%s2530_s28 + $0x740] sm:$0xff]  ;;  %v315_v59 = vld [vmem:[%s2530_s28 + $0x748] sm:$0xff]  ;;  %312 = vst [vmem:[%s2535_s29 + $0x1c8] sm:$0xff] %v311_v57 }
  0x33   : > { %314 = vst [vmem:[%s2535_s29 + $0x1d0] sm:$0xff] %v313_v58  ;;  %316 = vst [vmem:[%s2535_s29 + $0x1d8] sm:$0xff] %v315_v59  ;;  %v317_v60 = vld [vmem:[%s2530_s28 + $0x780] sm:$0xff]  ;;  %v319_v61 = vld [vmem:[%s2530_s28 + $0x788] sm:$0xff] }
  0x34   : > { %v321_v62 = vld [vmem:[%s2530_s28 + $0x7c0] sm:$0xff]  ;;  %318 = vst [vmem:[%s2535_s29 + $0x1e0] sm:$0xff] %v317_v60  ;;  %320 = vst [vmem:[%s2535_s29 + $0x1e8] sm:$0xff] %v319_v61  ;;  %v323_v63 = vld [vmem:[%s2530_s28 + $0x7c8] sm:$0xff] }
  0x35   : > { %322 = vst [vmem:[%s2535_s29 + $0x1f0] sm:$0xff] %v321_v62  ;;  %v325_v0 = vld [vmem:[%s2530_s28 + $0x800] sm:$0xff]  ;;  %v327_v1 = vld [vmem:[%s2530_s28 + $0x808] sm:$0xff]  ;;  %324 = vst [vmem:[%s2535_s29 + $0x1f8] sm:$0xff] %v323_v63 }
  0x36   : > { %326 = vst [vmem:[%s2535_s29 + $0x200] sm:$0xff] %v325_v0  ;;  %328 = vst [vmem:[%s2535_s29 + $0x208] sm:$0xff] %v327_v1  ;;  %v329_v2 = vld [vmem:[%s2530_s28 + $0x840] sm:$0xff]  ;;  %v331_v3 = vld [vmem:[%s2530_s28 + $0x848] sm:$0xff] }
  0x37   : > { %v333_v4 = vld [vmem:[%s2530_s28 + $0x880] sm:$0xff]  ;;  %330 = vst [vmem:[%s2535_s29 + $0x210] sm:$0xff] %v329_v2  ;;  %332 = vst [vmem:[%s2535_s29 + $0x218] sm:$0xff] %v331_v3  ;;  %v335_v5 = vld [vmem:[%s2530_s28 + $0x888] sm:$0xff] }
  0x38   : > { %334 = vst [vmem:[%s2535_s29 + $0x220] sm:$0xff] %v333_v4  ;;  %v337_v6 = vld [vmem:[%s2530_s28 + $0x8c0] sm:$0xff]  ;;  %v339_v7 = vld [vmem:[%s2530_s28 + $0x8c8] sm:$0xff]  ;;  %336 = vst [vmem:[%s2535_s29 + $0x228] sm:$0xff] %v335_v5 }
  0x39   : > { %338 = vst [vmem:[%s2535_s29 + $0x230] sm:$0xff] %v337_v6  ;;  %340 = vst [vmem:[%s2535_s29 + $0x238] sm:$0xff] %v339_v7  ;;  %v341_v8 = vld [vmem:[%s2530_s28 + $0x900] sm:$0xff]  ;;  %v343_v9 = vld [vmem:[%s2530_s28 + $0x908] sm:$0xff] }
  0x3a   : > { %v345_v10 = vld [vmem:[%s2530_s28 + $0x940] sm:$0xff]  ;;  %342 = vst [vmem:[%s2535_s29 + $0x240] sm:$0xff] %v341_v8  ;;  %344 = vst [vmem:[%s2535_s29 + $0x248] sm:$0xff] %v343_v9  ;;  %v347_v11 = vld [vmem:[%s2530_s28 + $0x948] sm:$0xff] }
  0x3b   : > { %346 = vst [vmem:[%s2535_s29 + $0x250] sm:$0xff] %v345_v10  ;;  %v349_v12 = vld [vmem:[%s2530_s28 + $0x980] sm:$0xff]  ;;  %v351_v13 = vld [vmem:[%s2530_s28 + $0x988] sm:$0xff]  ;;  %348 = vst [vmem:[%s2535_s29 + $0x258] sm:$0xff] %v347_v11 }
  0x3c   : > { %350 = vst [vmem:[%s2535_s29 + $0x260] sm:$0xff] %v349_v12  ;;  %352 = vst [vmem:[%s2535_s29 + $0x268] sm:$0xff] %v351_v13  ;;  %v353_v14 = vld [vmem:[%s2530_s28 + $0x9c0] sm:$0xff]  ;;  %v355_v15 = vld [vmem:[%s2530_s28 + $0x9c8] sm:$0xff] }
  0x3d   : > { %v357_v16 = vld [vmem:[%s2530_s28 + $0xa00] sm:$0xff]  ;;  %354 = vst [vmem:[%s2535_s29 + $0x270] sm:$0xff] %v353_v14  ;;  %356 = vst [vmem:[%s2535_s29 + $0x278] sm:$0xff] %v355_v15  ;;  %v359_v17 = vld [vmem:[%s2530_s28 + $0xa08] sm:$0xff] }
  0x3e   : > { %358 = vst [vmem:[%s2535_s29 + $0x280] sm:$0xff] %v357_v16  ;;  %v361_v18 = vld [vmem:[%s2530_s28 + $0xa40] sm:$0xff]  ;;  %v363_v19 = vld [vmem:[%s2530_s28 + $0xa48] sm:$0xff]  ;;  %360 = vst [vmem:[%s2535_s29 + $0x288] sm:$0xff] %v359_v17 }
  0x3f   : > { %362 = vst [vmem:[%s2535_s29 + $0x290] sm:$0xff] %v361_v18  ;;  %364 = vst [vmem:[%s2535_s29 + $0x298] sm:$0xff] %v363_v19  ;;  %v365_v20 = vld [vmem:[%s2530_s28 + $0xa80] sm:$0xff]  ;;  %v367_v21 = vld [vmem:[%s2530_s28 + $0xa88] sm:$0xff] }
  0x40   : > { %v369_v22 = vld [vmem:[%s2530_s28 + $0xac0] sm:$0xff]  ;;  %366 = vst [vmem:[%s2535_s29 + $0x2a0] sm:$0xff] %v365_v20  ;;  %368 = vst [vmem:[%s2535_s29 + $0x2a8] sm:$0xff] %v367_v21  ;;  %v371_v23 = vld [vmem:[%s2530_s28 + $0xac8] sm:$0xff] }
  0x41   : > { %370 = vst [vmem:[%s2535_s29 + $0x2b0] sm:$0xff] %v369_v22  ;;  %v373_v24 = vld [vmem:[%s2530_s28 + $0xb00] sm:$0xff]  ;;  %v375_v25 = vld [vmem:[%s2530_s28 + $0xb08] sm:$0xff]  ;;  %372 = vst [vmem:[%s2535_s29 + $0x2b8] sm:$0xff] %v371_v23 }
  0x42   : > { %374 = vst [vmem:[%s2535_s29 + $0x2c0] sm:$0xff] %v373_v24  ;;  %376 = vst [vmem:[%s2535_s29 + $0x2c8] sm:$0xff] %v375_v25  ;;  %v377_v26 = vld [vmem:[%s2530_s28 + $0xb40] sm:$0xff]  ;;  %v379_v27 = vld [vmem:[%s2530_s28 + $0xb48] sm:$0xff] }
  0x43   : > { %v381_v28 = vld [vmem:[%s2530_s28 + $0xb80] sm:$0xff]  ;;  %378 = vst [vmem:[%s2535_s29 + $0x2d0] sm:$0xff] %v377_v26  ;;  %380 = vst [vmem:[%s2535_s29 + $0x2d8] sm:$0xff] %v379_v27  ;;  %v383_v29 = vld [vmem:[%s2530_s28 + $0xb88] sm:$0xff] }
  0x44   : > { %382 = vst [vmem:[%s2535_s29 + $0x2e0] sm:$0xff] %v381_v28  ;;  %v385_v30 = vld [vmem:[%s2530_s28 + $0xbc0] sm:$0xff]  ;;  %v387_v31 = vld [vmem:[%s2530_s28 + $0xbc8] sm:$0xff]  ;;  %384 = vst [vmem:[%s2535_s29 + $0x2e8] sm:$0xff] %v383_v29 }
  0x45   : > { %386 = vst [vmem:[%s2535_s29 + $0x2f0] sm:$0xff] %v385_v30  ;;  %388 = vst [vmem:[%s2535_s29 + $0x2f8] sm:$0xff] %v387_v31  ;;  %v389_v32 = vld [vmem:[%s2530_s28 + $0xc00] sm:$0xff]  ;;  %v391_v33 = vld [vmem:[%s2530_s28 + $0xc08] sm:$0xff] }
  0x46   : > { %v393_v34 = vld [vmem:[%s2530_s28 + $0xc40] sm:$0xff]  ;;  %390 = vst [vmem:[%s2535_s29 + $0x300] sm:$0xff] %v389_v32  ;;  %392 = vst [vmem:[%s2535_s29 + $0x308] sm:$0xff] %v391_v33  ;;  %v395_v35 = vld [vmem:[%s2530_s28 + $0xc48] sm:$0xff] }
  0x47   : > { %394 = vst [vmem:[%s2535_s29 + $0x310] sm:$0xff] %v393_v34  ;;  %v397_v36 = vld [vmem:[%s2530_s28 + $0xc80] sm:$0xff]  ;;  %v399_v37 = vld [vmem:[%s2530_s28 + $0xc88] sm:$0xff]  ;;  %396 = vst [vmem:[%s2535_s29 + $0x318] sm:$0xff] %v395_v35 }
  0x48   : > { %398 = vst [vmem:[%s2535_s29 + $0x320] sm:$0xff] %v397_v36  ;;  %400 = vst [vmem:[%s2535_s29 + $0x328] sm:$0xff] %v399_v37  ;;  %v401_v38 = vld [vmem:[%s2530_s28 + $0xcc0] sm:$0xff]  ;;  %v403_v39 = vld [vmem:[%s2530_s28 + $0xcc8] sm:$0xff] }
  0x49   : > { %v405_v40 = vld [vmem:[%s2530_s28 + $0xd00] sm:$0xff]  ;;  %402 = vst [vmem:[%s2535_s29 + $0x330] sm:$0xff] %v401_v38  ;;  %404 = vst [vmem:[%s2535_s29 + $0x338] sm:$0xff] %v403_v39  ;;  %v407_v41 = vld [vmem:[%s2530_s28 + $0xd08] sm:$0xff] }
  0x4a   : > { %406 = vst [vmem:[%s2535_s29 + $0x340] sm:$0xff] %v405_v40  ;;  %v409_v42 = vld [vmem:[%s2530_s28 + $0xd40] sm:$0xff]  ;;  %v411_v43 = vld [vmem:[%s2530_s28 + $0xd48] sm:$0xff]  ;;  %408 = vst [vmem:[%s2535_s29 + $0x348] sm:$0xff] %v407_v41 }
  0x4b   : > { %410 = vst [vmem:[%s2535_s29 + $0x350] sm:$0xff] %v409_v42  ;;  %412 = vst [vmem:[%s2535_s29 + $0x358] sm:$0xff] %v411_v43  ;;  %v413_v44 = vld [vmem:[%s2530_s28 + $0xd80] sm:$0xff]  ;;  %v415_v45 = vld [vmem:[%s2530_s28 + $0xd88] sm:$0xff] }
  0x4c   : > { %v417_v46 = vld [vmem:[%s2530_s28 + $0xdc0] sm:$0xff]  ;;  %414 = vst [vmem:[%s2535_s29 + $0x360] sm:$0xff] %v413_v44  ;;  %416 = vst [vmem:[%s2535_s29 + $0x368] sm:$0xff] %v415_v45  ;;  %v419_v47 = vld [vmem:[%s2530_s28 + $0xdc8] sm:$0xff] }
  0x4d   : > { %418 = vst [vmem:[%s2535_s29 + $0x370] sm:$0xff] %v417_v46  ;;  %v421_v48 = vld [vmem:[%s2530_s28 + $0xe00] sm:$0xff]  ;;  %v423_v49 = vld [vmem:[%s2530_s28 + $0xe08] sm:$0xff]  ;;  %420 = vst [vmem:[%s2535_s29 + $0x378] sm:$0xff] %v419_v47 }
  0x4e   : > { %422 = vst [vmem:[%s2535_s29 + $0x380] sm:$0xff] %v421_v48  ;;  %424 = vst [vmem:[%s2535_s29 + $0x388] sm:$0xff] %v423_v49  ;;  %v425_v50 = vld [vmem:[%s2530_s28 + $0xe40] sm:$0xff]  ;;  %v427_v51 = vld [vmem:[%s2530_s28 + $0xe48] sm:$0xff] }
  0x4f   : > { %v429_v52 = vld [vmem:[%s2530_s28 + $0xe80] sm:$0xff]  ;;  %426 = vst [vmem:[%s2535_s29 + $0x390] sm:$0xff] %v425_v50  ;;  %428 = vst [vmem:[%s2535_s29 + $0x398] sm:$0xff] %v427_v51  ;;  %v431_v53 = vld [vmem:[%s2530_s28 + $0xe88] sm:$0xff] }
  0x50   : > { %430 = vst [vmem:[%s2535_s29 + $0x3a0] sm:$0xff] %v429_v52  ;;  %v433_v54 = vld [vmem:[%s2530_s28 + $0xec0] sm:$0xff]  ;;  %v435_v55 = vld [vmem:[%s2530_s28 + $0xec8] sm:$0xff]  ;;  %432 = vst [vmem:[%s2535_s29 + $0x3a8] sm:$0xff] %v431_v53 }
  0x51   : > { %434 = vst [vmem:[%s2535_s29 + $0x3b0] sm:$0xff] %v433_v54  ;;  %436 = vst [vmem:[%s2535_s29 + $0x3b8] sm:$0xff] %v435_v55  ;;  %v437_v56 = vld [vmem:[%s2530_s28 + $0xf00] sm:$0xff]  ;;  %v439_v57 = vld [vmem:[%s2530_s28 + $0xf08] sm:$0xff] }
  0x52   : > { %v441_v58 = vld [vmem:[%s2530_s28 + $0xf40] sm:$0xff]  ;;  %438 = vst [vmem:[%s2535_s29 + $0x3c0] sm:$0xff] %v437_v56  ;;  %440 = vst [vmem:[%s2535_s29 + $0x3c8] sm:$0xff] %v439_v57  ;;  %v443_v59 = vld [vmem:[%s2530_s28 + $0xf48] sm:$0xff] }
  0x53   : > { %442 = vst [vmem:[%s2535_s29 + $0x3d0] sm:$0xff] %v441_v58  ;;  %v445_v60 = vld [vmem:[%s2530_s28 + $0xf80] sm:$0xff]  ;;  %v447_v61 = vld [vmem:[%s2530_s28 + $0xf88] sm:$0xff]  ;;  %444 = vst [vmem:[%s2535_s29 + $0x3d8] sm:$0xff] %v443_v59 }
  0x54   : > { %446 = vst [vmem:[%s2535_s29 + $0x3e0] sm:$0xff] %v445_v60  ;;  %448 = vst [vmem:[%s2535_s29 + $0x3e8] sm:$0xff] %v447_v61  ;;  %v449_v62 = vld [vmem:[%s2530_s28 + $0xfc0] sm:$0xff]  ;;  %v451_v63 = vld [vmem:[%s2530_s28 + $0xfc8] sm:$0xff] }
  0x55   : > { %450 = vst [vmem:[%s2535_s29 + $0x3f0] sm:$0xff] %v449_v62  ;;  %452 = vst [vmem:[%s2535_s29 + $0x3f8] sm:$0xff] %v451_v63 }
  0x56 PF: > { %p1988_p8 = scmp.ge.s32.totalorder %s2460_s16, 1  ;;  %p465_p9 = scmp.lt.s32.totalorder %s2460_s16, 5 }
  0x58   : > { %p466_p10 = pnand %p1988_p8, %p465_p9 }
  0x59   : > { %s472_s30 = sand.u32 (!%p466_p10), 1, %s2444_s12   ;;  %v2312_v0 = vld [vmem:[%s3044_s0 + $0x4] ss:$16 sps:$4 sm:$0xff] (!%p466_p10)   ;;  %s1990_s8 = sshll.u32 (!%p466_p10), %s2452_s14, 2 }
  0x5a   : > { %469 = sbr.rel (%p466_p10) target bundleno = 465 (0x1d1), region = 51  ;;  %s1989_s4 = sshll.u32 (!%p466_p10), %s472_s30, 10  ;;  %1437 = vmatprep.mubr.bf16.mxu0 (!%p466_p10), %v2312_v0  ;;  %1559 = vmatprep.mubr.bf16.mxu1 (!%p466_p10), %v2312_v0 }
  0x5b   : > { %s2798_s7 = scalar_lea.vmem (!%p466_p10), [#allocation3], %s1989_s4  ;;  %p523_p11 = scmp.lt.s32.totalorder (!%p466_p10), %s1990_s8, 15 }
  0x5c   : > { %v2214_v1 = vld [vmem:[%s2798_s7 + $0x4] ss:$16 sps:$4 sm:$0xff] (!%p466_p10)   ;;  %v2216_v2 = vld [vmem:[%s2798_s7 + $0xc] ss:$16 sps:$4 sm:$0xff] (!%p466_p10)   ;;  %v2218_v3 = vld [vmem:[%s2798_s7] ss:$16 sps:$4 sm:$0xff] (!%p466_p10)  }
  0x5d   : > { %1405 = vmatprep.subr.bf16.mxu0 (!%p466_p10), %v2214_v1  ;;  %v2219_v4 = vld [vmem:[%s2798_s7 + $0x8] ss:$16 sps:$4 sm:$0xff] (!%p466_p10)   ;;  %1527 = vmatprep.subr.bf16.mxu1 (!%p466_p10), %v2216_v2  ;;  %v2220_v5 = vld [vmem:[%s2798_s7 + $0x24] ss:$16 sps:$4 sm:$0xff] (!%p466_p10)   ;;  %v2222_v6 = vld [vmem:[%s2798_s7 + $0x2c] ss:$16 sps:$4 sm:$0xff] (!%p466_p10)  }
  0x5e   : > { %1406 = vmatpush1.bf16.msra.mxu0 (!%p466_p10), %v2218_v3  ;;  %1528 = vmatpush1.bf16.msra.mxu1 (!%p466_p10), %v2219_v4  ;;  %v2224_v7 = vld [vmem:[%s2798_s7 + $0x20] ss:$16 sps:$4 sm:$0xff] (!%p466_p10)   ;;  %v2225_v8 = vld [vmem:[%s2798_s7 + $0x28] ss:$16 sps:$4 sm:$0xff] (!%p466_p10)   ;;  %v2226_v9 = vld [vmem:[%s2798_s7 + $0x44] ss:$16 sps:$4 sm:$0xff] (!%p466_p10)  }
  0x5f   : > { %1407 = vmatprep.subr.bf16.mxu0 (!%p466_p10), %v2220_v5  ;;  %1529 = vmatprep.subr.bf16.mxu1 (!%p466_p10), %v2222_v6  ;;  %v2228_v10 = vld [vmem:[%s2798_s7 + $0x4c] ss:$16 sps:$4 sm:$0xff] (!%p466_p10)   ;;  %v2230_v11 = vld [vmem:[%s2798_s7 + $0x40] ss:$16 sps:$4 sm:$0xff] (!%p466_p10)   ;;  %v2231_v12 = vld [vmem:[%s2798_s7 + $0x48] ss:$16 sps:$4 sm:$0xff] (!%p466_p10)  }
  0x60   : > { %v2232_v13 = vld [vmem:[%s2798_s7 + $0x64] ss:$16 sps:$4 sm:$0xff] (!%p466_p10)   ;;  %v2234_v14 = vld [vmem:[%s2798_s7 + $0x6c] ss:$16 sps:$4 sm:$0xff] (!%p466_p10)   ;;  %v2236_v15 = vld [vmem:[%s2798_s7 + $0x60] ss:$16 sps:$4 sm:$0xff] (!%p466_p10)  }
  0x61   : > { %v2237_v16 = vld [vmem:[%s2798_s7 + $0x68] ss:$16 sps:$4 sm:$0xff]   ;;  %v2238_v17 = vld [vmem:[%s2798_s7 + $0x84] ss:$16 sps:$4 sm:$0xff]   ;;  %v2240_v18 = vld [vmem:[%s2798_s7 + $0x8c] ss:$16 sps:$4 sm:$0xff]  }
  0x62   : > { %1408 = vmatpush1.bf16.msra.mxu0 %v2224_v7  ;;  %1530 = vmatpush1.bf16.msra.mxu1 %v2225_v8  ;;  %v2242_v19 = vld [vmem:[%s2798_s7 + $0x80] ss:$16 sps:$4 sm:$0xff]   ;;  %v2243_v20 = vld [vmem:[%s2798_s7 + $0x88] ss:$16 sps:$4 sm:$0xff]   ;;  %v2244_v21 = vld [vmem:[%s2798_s7 + $0xa4] ss:$16 sps:$4 sm:$0xff]  }
  0x63   : > { %1409 = vmatprep.subr.bf16.mxu0 %v2226_v9  ;;  %1531 = vmatprep.subr.bf16.mxu1 %v2228_v10  ;;  %v2246_v22 = vld [vmem:[%s2798_s7 + $0xac] ss:$16 sps:$4 sm:$0xff]   ;;  %v2248_v23 = vld [vmem:[%s2798_s7 + $0xa0] ss:$16 sps:$4 sm:$0xff]   ;;  %v2249_v24 = vld [vmem:[%s2798_s7 + $0xa8] ss:$16 sps:$4 sm:$0xff]  }
  0x64   : > { %v2250_v25 = vld [vmem:[%s2798_s7 + $0xc4] ss:$16 sps:$4 sm:$0xff]   ;;  %v2252_v26 = vld [vmem:[%s2798_s7 + $0xcc] ss:$16 sps:$4 sm:$0xff]   ;;  %v2254_v27 = vld [vmem:[%s2798_s7 + $0xc0] ss:$16 sps:$4 sm:$0xff]  }
  0x65   : > { %v2255_v28 = vld [vmem:[%s2798_s7 + $0xc8] ss:$16 sps:$4 sm:$0xff]   ;;  %v2256_v29 = vld [vmem:[%s2798_s7 + $0xe4] ss:$16 sps:$4 sm:$0xff]   ;;  %v2258_v30 = vld [vmem:[%s2798_s7 + $0xec] ss:$16 sps:$4 sm:$0xff]  }
  0x66   : > { %1410 = vmatpush1.bf16.msra.mxu0 %v2230_v11  ;;  %1532 = vmatpush1.bf16.msra.mxu1 %v2231_v12  ;;  %v2260_v31 = vld [vmem:[%s2798_s7 + $0xe0] ss:$16 sps:$4 sm:$0xff]   ;;  %v2261_v32 = vld [vmem:[%s2798_s7 + $0xe8] ss:$16 sps:$4 sm:$0xff]   ;;  %v2262_v33 = vld [vmem:[%s2798_s7 + $0x104] ss:$16 sps:$4 sm:$0xff]  }
  0x67   : > { %1411 = vmatprep.subr.bf16.mxu0 %v2232_v13  ;;  %1533 = vmatprep.subr.bf16.mxu1 %v2234_v14  ;;  %v2264_v34 = vld [vmem:[%s2798_s7 + $0x10c] ss:$16 sps:$4 sm:$0xff]   ;;  %v2266_v35 = vld [vmem:[%s2798_s7 + $0x100] ss:$16 sps:$4 sm:$0xff]   ;;  %v2267_v36 = vld [vmem:[%s2798_s7 + $0x108] ss:$16 sps:$4 sm:$0xff]  }
  0x68   : > { %v2268_v37 = vld [vmem:[%s2798_s7 + $0x124] ss:$16 sps:$4 sm:$0xff]   ;;  %v2270_v38 = vld [vmem:[%s2798_s7 + $0x12c] ss:$16 sps:$4 sm:$0xff]   ;;  %v2272_v39 = vld [vmem:[%s2798_s7 + $0x120] ss:$16 sps:$4 sm:$0xff]  }
  0x69   : > { %v2273_v40 = vld [vmem:[%s2798_s7 + $0x128] ss:$16 sps:$4 sm:$0xff]   ;;  %v2274_v41 = vld [vmem:[%s2798_s7 + $0x144] ss:$16 sps:$4 sm:$0xff]   ;;  %v2276_v42 = vld [vmem:[%s2798_s7 + $0x14c] ss:$16 sps:$4 sm:$0xff]  }
  0x6a   : > { %1412 = vmatpush1.bf16.msra.mxu0 %v2236_v15  ;;  %1534 = vmatpush1.bf16.msra.mxu1 %v2237_v16  ;;  %v2278_v43 = vld [vmem:[%s2798_s7 + $0x140] ss:$16 sps:$4 sm:$0xff]   ;;  %v2279_v44 = vld [vmem:[%s2798_s7 + $0x148] ss:$16 sps:$4 sm:$0xff]   ;;  %v2280_v45 = vld [vmem:[%s2798_s7 + $0x164] ss:$16 sps:$4 sm:$0xff]  }
  0x6b   : > { %1413 = vmatprep.subr.bf16.mxu0 %v2238_v17  ;;  %1535 = vmatprep.subr.bf16.mxu1 %v2240_v18  ;;  %v2282_v46 = vld [vmem:[%s2798_s7 + $0x16c] ss:$16 sps:$4 sm:$0xff]   ;;  %v2284_v47 = vld [vmem:[%s2798_s7 + $0x160] ss:$16 sps:$4 sm:$0xff]   ;;  %v2285_v48 = vld [vmem:[%s2798_s7 + $0x168] ss:$16 sps:$4 sm:$0xff]  }
  0x6c   : > { %v2286_v49 = vld [vmem:[%s2798_s7 + $0x184] ss:$16 sps:$4 sm:$0xff]   ;;  %v2288_v50 = vld [vmem:[%s2798_s7 + $0x18c] ss:$16 sps:$4 sm:$0xff]   ;;  %v2290_v51 = vld [vmem:[%s2798_s7 + $0x180] ss:$16 sps:$4 sm:$0xff]  }
  0x6d   : > { %v2291_v52 = vld [vmem:[%s2798_s7 + $0x188] ss:$16 sps:$4 sm:$0xff]   ;;  %v2292_v53 = vld [vmem:[%s2798_s7 + $0x1a4] ss:$16 sps:$4 sm:$0xff]   ;;  %v2294_v54 = vld [vmem:[%s2798_s7 + $0x1ac] ss:$16 sps:$4 sm:$0xff]  }
  0x6e   : > { %1414 = vmatpush1.bf16.msra.mxu0 %v2242_v19  ;;  %1536 = vmatpush1.bf16.msra.mxu1 %v2243_v20  ;;  %v2296_v55 = vld [vmem:[%s2798_s7 + $0x1a0] ss:$16 sps:$4 sm:$0xff]   ;;  %v2297_v56 = vld [vmem:[%s2798_s7 + $0x1a8] ss:$16 sps:$4 sm:$0xff]   ;;  %v2298_v57 = vld [vmem:[%s2798_s7 + $0x1c4] ss:$16 sps:$4 sm:$0xff]  }
  0x6f   : > { %1415 = vmatprep.subr.bf16.mxu0 %v2244_v21  ;;  %1537 = vmatprep.subr.bf16.mxu1 %v2246_v22  ;;  %v2300_v58 = vld [vmem:[%s2798_s7 + $0x1cc] ss:$16 sps:$4 sm:$0xff]   ;;  %v2302_v59 = vld [vmem:[%s2798_s7 + $0x1c0] ss:$16 sps:$4 sm:$0xff]   ;;  %v2303_v60 = vld [vmem:[%s2798_s7 + $0x1c8] ss:$16 sps:$4 sm:$0xff]  }
  0x70   : > { %v2304_v61 = vld [vmem:[%s2798_s7 + $0x1e4] ss:$16 sps:$4 sm:$0xff]   ;;  %v2306_v62 = vld [vmem:[%s2798_s7 + $0x1ec] ss:$16 sps:$4 sm:$0xff]   ;;  %v2308_v63 = vld [vmem:[%s2798_s7 + $0x1e0] ss:$16 sps:$4 sm:$0xff]  }
  0x71   : > { %v2309_v0 = vld [vmem:[%s2798_s7 + $0x1e8] ss:$16 sps:$4 sm:$0xff]   ;;  %v2315_v1 = vld [vmem:[%s2798_s7 + $0x204] ss:$16 sps:$4 sm:$0xff]   ;;  %v2318_v2 = vld [vmem:[%s2798_s7 + $0x20c] ss:$16 sps:$4 sm:$0xff]  }
  0x72   : > { %1416 = vmatpush1.bf16.msra.mxu0 %v2248_v23  ;;  %1538 = vmatpush1.bf16.msra.mxu1 %v2249_v24  ;;  %v2310_v3 = vld [vmem:[%s3044_s0] ss:$16 sps:$4 sm:$0xff]   ;;  %v2316_v5 = vld [vmem:[%s2798_s7 + $0x208] ss:$16 sps:$4 sm:$0xff]   ;;  %v2321_v6 = vld [vmem:[%s2798_s7 + $0x224] ss:$16 sps:$4 sm:$0xff]  }
  0x73   : > { %1417 = vmatprep.subr.bf16.mxu0 %v2250_v25  ;;  %1539 = vmatprep.subr.bf16.mxu1 %v2252_v26  ;;  %v2313_v4 = vld [vmem:[%s2798_s7 + $0x200] ss:$16 sps:$4 sm:$0xff]   ;;  %v2324_v7 = vld [vmem:[%s2798_s7 + $0x22c] ss:$16 sps:$4 sm:$0xff]   ;;  %v2379_v8 = vld [vmem:[%s3044_s0 + $0x24] ss:$16 sps:$4 sm:$0xff]  }
  0x74   : > { %v2319_v9 = vld [vmem:[%s2798_s7 + $0x220] ss:$16 sps:$4 sm:$0xff]   ;;  %v2322_v10 = vld [vmem:[%s2798_s7 + $0x228] ss:$16 sps:$4 sm:$0xff]   ;;  %v2327_v11 = vld [vmem:[%s2798_s7 + $0x244] ss:$16 sps:$4 sm:$0xff]  }
  0x75   : > { %v2330_v12 = vld [vmem:[%s2798_s7 + $0x24c] ss:$16 sps:$4 sm:$0xff]   ;;  %v2387_v13 = vld [vmem:[%s3044_s0 + $0x20] ss:$16 sps:$4 sm:$0xff]   ;;  %v2328_v16 = vld [vmem:[%s2798_s7 + $0x248] ss:$16 sps:$4 sm:$0xff]  }
  0x76   : > { %1418 = vmatpush1.bf16.msra.mxu0 %v2254_v27  ;;  %1540 = vmatpush1.bf16.msra.mxu1 %v2255_v28  ;;  %v581_v14 = vld [vmem:[%s3044_s0 + $0x40] sm:$0xff]  ;;  %v2336_v18 = vld [vmem:[%s2798_s7 + $0x26c] ss:$16 sps:$4 sm:$0xff]   ;;  %v2334_v21 = vld [vmem:[%s2798_s7 + $0x268] ss:$16 sps:$4 sm:$0xff]   ;;  %s3056_s8 = smov (!%p523_p11, %s1990_s8), 15 }
  0x77   : > { %1419 = vmatprep.subr.bf16.mxu0 %v2256_v29  ;;  %1541 = vmatprep.subr.bf16.mxu1 %v2258_v30  ;;  %v2325_v15 = vld [vmem:[%s2798_s7 + $0x240] ss:$16 sps:$4 sm:$0xff]   ;;  %v2333_v17 = vld [vmem:[%s2798_s7 + $0x264] ss:$16 sps:$4 sm:$0xff]   ;;  %v2000_v19 = vcombine.high %v581_v14, %v581_v14  ;;  %v2342_v23 = vld [vmem:[%s2798_s7 + $0x28c] ss:$16 sps:$4 sm:$0xff]   ;;  %v1999_v26 = vcombine.low %v581_v14, %v581_v14  ;;  %s525_s11 = scalar_lea.vmem %s3046_s2, %s3056_s8 }
  0x78   : > { %v2331_v20 = vld [vmem:[%s2798_s7 + $0x260] ss:$16 sps:$4 sm:$0xff]   ;;  %v2339_v22 = vld [vmem:[%s2798_s7 + $0x284] ss:$16 sps:$4 sm:$0xff]   ;;  %v2340_v25 = vld [vmem:[%s2798_s7 + $0x288] ss:$16 sps:$4 sm:$0xff]  }
  0x79   : > { %v2337_v24 = vld [vmem:[%s2798_s7 + $0x280] ss:$16 sps:$4 sm:$0xff]   ;;  %v2345_v27 = vld [vmem:[%s2798_s7 + $0x2a4] ss:$16 sps:$4 sm:$0xff]   ;;  %v2348_v28 = vld [vmem:[%s2798_s7 + $0x2ac] ss:$16 sps:$4 sm:$0xff]  }
  0x7a   : > { %1420 = vmatpush1.bf16.msra.mxu0 %v2260_v31  ;;  %1542 = vmatpush1.bf16.msra.mxu1 %v2261_v32  ;;  %v2343_v29 = vld [vmem:[%s2798_s7 + $0x2a0] ss:$16 sps:$4 sm:$0xff]   ;;  %v2346_v30 = vld [vmem:[%s2798_s7 + $0x2a8] ss:$16 sps:$4 sm:$0xff]   ;;  %v2351_v31 = vld [vmem:[%s2798_s7 + $0x2c4] ss:$16 sps:$4 sm:$0xff]  }
  0x7b   : > { %1421 = vmatprep.subr.bf16.mxu0 %v2262_v33  ;;  %1543 = vmatprep.subr.bf16.mxu1 %v2264_v34  ;;  %v2354_v32 = vld [vmem:[%s2798_s7 + $0x2cc] ss:$16 sps:$4 sm:$0xff]   ;;  %v2349_v34 = vld [vmem:[%s2798_s7 + $0x2c0] ss:$16 sps:$4 sm:$0xff]   ;;  %s2173_s18 = smul.u32 80, %s472_s30  ;;  %s2156_s30 = sshll.u32 (%p2517_p6), %s2452_s14, 4 }
  0x7c   : > { %v2416_v33 = vld [vmem:[%s3044_s0 + $0xc] ss:$16 sps:$4 sm:$0xff]   ;;  %s1840_s23 = scalar_lea.vmem (%p2517_p6), %s3047_s3, %s2156_s30 }
  0x7d   : > { %s2985_s12 = scalar_lea.vmem [#allocation4], %s2173_s18 }
  0x7e   : > { %1422 = vmatpush1.bf16.msra.mxu0 %v2266_v35  ;;  %1544 = vmatpush1.bf16.msra.mxu1 %v2267_v36  ;;  %v2352_v35 = vld [vmem:[%s2798_s7 + $0x2c8] ss:$16 sps:$4 sm:$0xff]   ;;  %v2357_v36 = vld [vmem:[%s2798_s7 + $0x2e4] ss:$16 sps:$4 sm:$0xff]  }
  0x7f   : > { %1423 = vmatprep.subr.bf16.mxu0 %v2268_v37  ;;  %1545 = vmatprep.subr.bf16.mxu1 %v2270_v38  ;;  %v2360_v37 = vld [vmem:[%s2798_s7 + $0x2ec] ss:$16 sps:$4 sm:$0xff]   ;;  %v2355_v38 = vld [vmem:[%s2798_s7 + $0x2e0] ss:$16 sps:$4 sm:$0xff]  }
  0x82   : > { %1424 = vmatpush1.bf16.msra.mxu0 %v2272_v39  ;;  %1546 = vmatpush1.bf16.msra.mxu1 %v2273_v40  ;;  %v2358_v39 = vld [vmem:[%s2798_s7 + $0x2e8] ss:$16 sps:$4 sm:$0xff]   ;;  %v2363_v40 = vld [vmem:[%s2798_s7 + $0x304] ss:$16 sps:$4 sm:$0xff]  }
  0x83   : > { %1425 = vmatprep.subr.bf16.mxu0 %v2274_v41  ;;  %1547 = vmatprep.subr.bf16.mxu1 %v2276_v42  ;;  %v2366_v41 = vld [vmem:[%s2798_s7 + $0x30c] ss:$16 sps:$4 sm:$0xff]   ;;  %v2361_v42 = vld [vmem:[%s2798_s7 + $0x300] ss:$16 sps:$4 sm:$0xff]  }
  0x86   : > { %1426 = vmatpush1.bf16.msra.mxu0 %v2278_v43  ;;  %1548 = vmatpush1.bf16.msra.mxu1 %v2279_v44  ;;  %v2364_v43 = vld [vmem:[%s2798_s7 + $0x308] ss:$16 sps:$4 sm:$0xff]   ;;  %v2369_v44 = vld [vmem:[%s2798_s7 + $0x324] ss:$16 sps:$4 sm:$0xff]  }
  0x87   : > { %1427 = vmatprep.subr.bf16.mxu0 %v2280_v45  ;;  %1549 = vmatprep.subr.bf16.mxu1 %v2282_v46  ;;  %v2372_v45 = vld [vmem:[%s2798_s7 + $0x32c] ss:$16 sps:$4 sm:$0xff]   ;;  %v2367_v46 = vld [vmem:[%s2798_s7 + $0x320] ss:$16 sps:$4 sm:$0xff]  }
  0x8a   : > { %1428 = vmatpush1.bf16.msra.mxu0 %v2284_v47  ;;  %1550 = vmatpush1.bf16.msra.mxu1 %v2285_v48  ;;  %v2370_v47 = vld [vmem:[%s2798_s7 + $0x328] ss:$16 sps:$4 sm:$0xff]   ;;  %v2375_v48 = vld [vmem:[%s2798_s7 + $0x344] ss:$16 sps:$4 sm:$0xff]  }
  0x8b   : > { %1429 = vmatprep.subr.bf16.mxu0 %v2286_v49  ;;  %1551 = vmatprep.subr.bf16.mxu1 %v2288_v50  ;;  %v2378_v49 = vld [vmem:[%s2798_s7 + $0x34c] ss:$16 sps:$4 sm:$0xff]   ;;  %v2373_v50 = vld [vmem:[%s2798_s7 + $0x340] ss:$16 sps:$4 sm:$0xff]  }
  0x8e   : > { %1430 = vmatpush1.bf16.msra.mxu0 %v2290_v51  ;;  %1552 = vmatpush1.bf16.msra.mxu1 %v2291_v52  ;;  %v2376_v51 = vld [vmem:[%s2798_s7 + $0x348] ss:$16 sps:$4 sm:$0xff]   ;;  %v2383_v52 = vld [vmem:[%s2798_s7 + $0x364] ss:$16 sps:$4 sm:$0xff]  }
  0x8f   : > { %1431 = vmatprep.subr.bf16.mxu0 %v2292_v53  ;;  %1553 = vmatprep.subr.bf16.mxu1 %v2294_v54  ;;  %v2386_v53 = vld [vmem:[%s2798_s7 + $0x36c] ss:$16 sps:$4 sm:$0xff]   ;;  %v2381_v54 = vld [vmem:[%s2798_s7 + $0x360] ss:$16 sps:$4 sm:$0xff]  }
  0x92   : > { %1432 = vmatpush1.bf16.msra.mxu0 %v2296_v55  ;;  %1554 = vmatpush1.bf16.msra.mxu1 %v2297_v56  ;;  %v2384_v55 = vld [vmem:[%s2798_s7 + $0x368] ss:$16 sps:$4 sm:$0xff]   ;;  %v2390_v56 = vld [vmem:[%s2798_s7 + $0x384] ss:$16 sps:$4 sm:$0xff]  }
  0x93   : > { %1433 = vmatprep.subr.bf16.mxu0 %v2298_v57  ;;  %1555 = vmatprep.subr.bf16.mxu1 %v2300_v58  ;;  %v2393_v57 = vld [vmem:[%s2798_s7 + $0x38c] ss:$16 sps:$4 sm:$0xff]   ;;  %v2388_v58 = vld [vmem:[%s2798_s7 + $0x380] ss:$16 sps:$4 sm:$0xff]  }
  0x96   : > { %1434 = vmatpush1.bf16.msra.mxu0 %v2302_v59  ;;  %1556 = vmatpush1.bf16.msra.mxu1 %v2303_v60  ;;  %v2391_v59 = vld [vmem:[%s2798_s7 + $0x388] ss:$16 sps:$4 sm:$0xff]   ;;  %v2397_v60 = vld [vmem:[%s2798_s7 + $0x3a4] ss:$16 sps:$4 sm:$0xff]  }
  0x97   : > { %1435 = vmatprep.subr.bf16.mxu0 %v2304_v61  ;;  %1557 = vmatprep.subr.bf16.mxu1 %v2306_v62  ;;  %v2400_v61 = vld [vmem:[%s2798_s7 + $0x3ac] ss:$16 sps:$4 sm:$0xff]   ;;  %v2395_v62 = vld [vmem:[%s2798_s7 + $0x3a0] ss:$16 sps:$4 sm:$0xff]  }
  0x9a   : > { %1436 = vmatpush1.bf16.msra.mxu0 %v2308_v63  ;;  %1558 = vmatpush1.bf16.msra.mxu1 %v2309_v0  ;;  %v2398_v63 = vld [vmem:[%s2798_s7 + $0x3a8] ss:$16 sps:$4 sm:$0xff]   ;;  %v2404_v0 = vld [vmem:[%s2798_s7 + $0x3c4] ss:$16 sps:$4 sm:$0xff]  }
  0x9b   : > { %1466 = vmatprep.subr.bf16.mxu0 %v2315_v1  ;;  %1588 = vmatprep.subr.bf16.mxu1 %v2318_v2  ;;  %v2407_v1 = vld [vmem:[%s2798_s7 + $0x3cc] ss:$16 sps:$4 sm:$0xff]   ;;  %v2402_v2 = vld [vmem:[%s2798_s7 + $0x3c0] ss:$16 sps:$4 sm:$0xff]  }
  0x9d   : > { %1438 = vmatmul.mubr.bf16.vlgmr.msra.gmra.mrb[0].mxu0 %v2310_v3  ;;  %1560 = vmatmul.mubr.bf16.vlgmr.msra.gmra.mrb[0].mxu1 %v2310_v3  ;;  %v2405_v3 = vld [vmem:[%s2798_s7 + $0x3c8] ss:$16 sps:$4 sm:$0xff]  }
  0x9e   : > { %1467 = vmatpush1.bf16.msra.mxu0 %v2313_v4  ;;  %1589 = vmatpush1.bf16.msra.mxu1 %v2316_v5  ;;  %v2410_v4 = vld [vmem:[%s2798_s7 + $0x3e4] ss:$16 sps:$4 sm:$0xff]   ;;  %v2413_v5 = vld [vmem:[%s2798_s7 + $0x3ec] ss:$16 sps:$4 sm:$0xff]  }
  0x9f   : > { %1468 = vmatprep.subr.bf16.mxu0 %v2321_v6  ;;  %1590 = vmatprep.subr.bf16.mxu1 %v2324_v7  ;;  %v2408_v6 = vld [vmem:[%s2798_s7 + $0x3e0] ss:$16 sps:$4 sm:$0xff]   ;;  %v2411_v7 = vld [vmem:[%s2798_s7 + $0x3e8] ss:$16 sps:$4 sm:$0xff]  }
  0xa0   : > { %1447 = vmatprep.mubr.bf16.mxu0 %v2379_v8  ;;  %1569 = vmatprep.mubr.bf16.mxu1 %v2379_v8  ;;  %v2414_v8 = vld [vmem:[%s3044_s0 + $0x8] ss:$16 sps:$4 sm:$0xff]  }
  0xa2   : > { %1469 = vmatpush1.bf16.msra.mxu0 %v2319_v9  ;;  %1591 = vmatpush1.bf16.msra.mxu1 %v2322_v10  ;;  %v2417_v9 = vld [vmem:[%s3044_s0 + $0x2c] ss:$16 sps:$4 sm:$0xff]  }
  0xa3   : > { %1470 = vmatprep.subr.bf16.mxu0 %v2327_v11  ;;  %1592 = vmatprep.subr.bf16.mxu1 %v2330_v12  ;;  %v582_v10 = vld [vmem:[%s3044_s0 + $0x48] sm:$0xff] }
  0xa4   : > { %v2419_v11 = vld [vmem:[%s3044_s0 + $0x28] ss:$16 sps:$4 sm:$0xff]   ;;  %v2002_v12 = vcombine.high %v582_v10, %v582_v10 }
  0xa5   : > { %1448 = vmatmul.mubr.bf16.gmra.mrb[4].mxu0 %v2387_v13  ;;  %1570 = vmatmul.mubr.bf16.gmra.mrb[4].mxu1 %v2387_v13  ;;  %v2001_v13 = vcombine.low %v582_v10, %v582_v10 }
  0xa6   : > { %1471 = vmatpush1.bf16.msra.mxu0 %v2325_v15  ;;  %1593 = vmatpush1.bf16.msra.mxu1 %v2328_v16 }
  0xa7   : > { %1472 = vmatprep.subr.bf16.mxu0 %v2333_v17  ;;  %1594 = vmatprep.subr.bf16.mxu1 %v2336_v18 }
  0xa8   : > { %1457 = vmatprep.mubr.bf16.mxu0 %v2000_v19  ;;  %1579 = vmatprep.mubr.bf16.mxu1 %v2000_v19 }
  0xaa   : > { %1473 = vmatpush1.bf16.msra.mxu0 %v2331_v20  ;;  %1595 = vmatpush1.bf16.msra.mxu1 %v2334_v21 }
  0xab   : > { %1474 = vmatprep.subr.bf16.mxu0 %v2339_v22  ;;  %1596 = vmatprep.subr.bf16.mxu1 %v2342_v23  ;;  %v1714_v22 = vlaneseq }
  0xad   : > { %1458 = vmatmul.mubr.bf16.gmra.mrb[8].mxu0 %v1999_v26  ;;  %1580 = vmatmul.mubr.bf16.gmra.mrb[8].mxu1 %v1999_v26  ;;  %v1715_v23 = vshrl.u32 %v1714_v22, 7  ;;  %v1712_v26 = vld [vmem:[%s525_s11] sm:$0xf] }
  0xae   : > { %1475 = vmatpush1.bf16.msra.mxu0 %v2337_v24  ;;  %1597 = vmatpush1.bf16.msra.mxu1 %v2340_v25 }
  0xaf   : > { %1476 = vmatprep.subr.bf16.mxu0 %v2345_v27  ;;  %1598 = vmatprep.subr.bf16.mxu1 %v2348_v28  ;;  %v1716_v24 = vsub.s32 0, %v1715_v23  ;;  %v1724_v25 = vsub.s32 2, %v1715_v23  ;;  %v1720_v27 = vsub.s32 1, %v1715_v23  ;;  %v1728_v28 = vsub.s32 3, %v1715_v23 }
  0xb0   : > { %1498 = vmatprep.mubr.bf16.mxu0 %v2416_v33  ;;  %1620 = vmatprep.mubr.bf16.mxu1 %v2416_v33 }
  0xb2   : > { %1477 = vmatpush1.bf16.msra.mxu0 %v2343_v29  ;;  %1599 = vmatpush1.bf16.msra.mxu1 %v2346_v30  ;;  %v2967_v29 = vrot.slane %v1712_v26, %v1716_v24  ;;  %v2969_v30 = vrot.slane %v1712_v26, %v1724_v25 }
  0xb3   : > { %1478 = vmatprep.subr.bf16.mxu0 %v2351_v31  ;;  %1600 = vmatprep.subr.bf16.mxu1 %v2354_v32  ;;  %v2971_v31 = vrot.slane %v1712_v26, %v1720_v27  ;;  %v2973_v32 = vrot.slane %v1712_v26, %v1728_v28 }
  0xb6   : > { %1479 = vmatpush1.bf16.msra.mxu0 %v2349_v34  ;;  %1601 = vmatpush1.bf16.msra.mxu1 %v2352_v35 }
  0xb7   : > { %1480 = vmatprep.subr.bf16.mxu0 %v2357_v36  ;;  %1602 = vmatprep.subr.bf16.mxu1 %v2360_v37 }
  0xba   : > { %1481 = vmatpush1.bf16.msra.mxu0 %v2355_v38  ;;  %1603 = vmatpush1.bf16.msra.mxu1 %v2358_v39 }
  0xbb   : > { %1482 = vmatprep.subr.bf16.mxu0 %v2363_v40  ;;  %1604 = vmatprep.subr.bf16.mxu1 %v2366_v41 }
  0xbe   : > { %1483 = vmatpush1.bf16.msra.mxu0 %v2361_v42  ;;  %1605 = vmatpush1.bf16.msra.mxu1 %v2364_v43 }
  0xbf   : > { %1484 = vmatprep.subr.bf16.mxu0 %v2369_v44  ;;  %1606 = vmatprep.subr.bf16.mxu1 %v2372_v45 }
  0xc2   : > { %1485 = vmatpush1.bf16.msra.mxu0 %v2367_v46  ;;  %1607 = vmatpush1.bf16.msra.mxu1 %v2370_v47 }
  0xc3   : > { %1486 = vmatprep.subr.bf16.mxu0 %v2375_v48  ;;  %1608 = vmatprep.subr.bf16.mxu1 %v2378_v49 }
  0xc6   : > { %1487 = vmatpush1.bf16.msra.mxu0 %v2373_v50  ;;  %1609 = vmatpush1.bf16.msra.mxu1 %v2376_v51 }
  0xc7   : > { %1488 = vmatprep.subr.bf16.mxu0 %v2383_v52  ;;  %1610 = vmatprep.subr.bf16.mxu1 %v2386_v53 }
  0xca   : > { %1489 = vmatpush1.bf16.msra.mxu0 %v2381_v54  ;;  %1611 = vmatpush1.bf16.msra.mxu1 %v2384_v55 }
  0xcb   : > { %1490 = vmatprep.subr.bf16.mxu0 %v2390_v56  ;;  %1612 = vmatprep.subr.bf16.mxu1 %v2393_v57 }
  0xce   : > { %1491 = vmatpush1.bf16.msra.mxu0 %v2388_v58  ;;  %1613 = vmatpush1.bf16.msra.mxu1 %v2391_v59 }
  0xcf   : > { %1492 = vmatprep.subr.bf16.mxu0 %v2397_v60  ;;  %1614 = vmatprep.subr.bf16.mxu1 %v2400_v61 }
  0xd2   : > { %1493 = vmatpush1.bf16.msra.mxu0 %v2395_v62  ;;  %1615 = vmatpush1.bf16.msra.mxu1 %v2398_v63 }
  0xd3   : > { %1494 = vmatprep.subr.bf16.mxu0 %v2404_v0  ;;  %1616 = vmatprep.subr.bf16.mxu1 %v2407_v1 }
  0xd6   : > { %1495 = vmatpush1.bf16.msra.mxu0 %v2402_v2  ;;  %1617 = vmatpush1.bf16.msra.mxu1 %v2405_v3 }
  0xd7   : > { %1496 = vmatprep.subr.bf16.mxu0 %v2410_v4  ;;  %1618 = vmatprep.subr.bf16.mxu1 %v2413_v5 }
  0xda   : > { %1497 = vmatpush1.bf16.msra.mxu0 %v2408_v6  ;;  %1619 = vmatpush1.bf16.msra.mxu1 %v2411_v7 }
  0xdd   : > { %1499 = vmatmul.mubr.bf16.vlgmr.msra.gmra.mrb[0].mxu0 %v2414_v8  ;;  %1621 = vmatmul.mubr.bf16.vlgmr.msra.gmra.mrb[0].mxu1 %v2414_v8 }
  0xde   : > { %1508 = vmatprep.mubr.bf16.mxu0 %v2417_v9  ;;  %1630 = vmatprep.mubr.bf16.mxu1 %v2417_v9 }
  0xe5   : > { %1509 = vmatmul.mubr.bf16.gmra.mrb[4].mxu0 %v2419_v11  ;;  %1631 = vmatmul.mubr.bf16.gmra.mrb[4].mxu1 %v2419_v11 }
  0xe6   : > { %1518 = vmatprep.mubr.bf16.mxu0 %v2002_v12  ;;  %1640 = vmatprep.mubr.bf16.mxu1 %v2002_v12 }
  0xed   : > { %1519 = vmatmul.mubr.bf16.gmra.mrb[12].mxu0 %v2001_v13  ;;  %1641 = vmatmul.mubr.bf16.gmra.mrb[12].mxu1 %v2001_v13 }
 0x180   : > { %v2955_v14 = vpop.f32.mrb[8].mxu0  ;;  %v2957_v15 = vpop.f32.mrb[8].mxu1 }
 0x181   : > { %v2959_v16 = vpop.f32.mrb[9].mxu0  ;;  %v2961_v17 = vpop.f32.mrb[9].mxu1 }
 0x182   : > { %v1463_v18 = vpop.f32.mrb[10].mxu0  ;;  %v1585_v19 = vpop.f32.mrb[10].mxu1 }
 0x183   : > { %v1464_v20 = vpop.f32.mrb[11].mxu0  ;;  %v1586_v21 = vpop.f32.mrb[11].mxu1 }
 0x1b0   : > { %v1500_v33 = vpop.f32.mrb[0].mxu0  ;;  %v1622_v34 = vpop.f32.mrb[0].mxu1 }
 0x1b1   : > { %v1734_v35 = vadd.f32 %v2967_v29, %v1500_v33  ;;  %v1736_v36 = vadd.f32 %v2969_v30, %v1622_v34  ;;  %v1502_v37 = vpop.f32.mrb[1].mxu0  ;;  %v1624_v38 = vpop.f32.mrb[1].mxu1 }
 0x1b2   : > { %v1735_v39 = vadd.f32 %v2971_v31, %v1502_v37  ;;  %v1737_v40 = vadd.f32 %v2973_v32, %v1624_v38  ;;  %v1504_v41 = vpop.f32.mrb[2].mxu0  ;;  %v1626_v42 = vpop.f32.mrb[2].mxu1 }
 0x1b3   : > { %v1738_v43 = vadd.f32 %v2967_v29, %v1504_v41  ;;  %v1740_v44 = vadd.f32 %v2969_v30, %v1626_v42  ;;  %v1506_v45 = vpop.f32.mrb[3].mxu0  ;;  %v1628_v46 = vpop.f32.mrb[3].mxu1 }
 0x1b4   : > { %v2146_v47 = vpack.c.bf16 %v1735_v39, %v1734_v35  ;;  %v2147_v48 = vpack.c.bf16 %v1737_v40, %v1736_v36  ;;  %v1739_v49 = vadd.f32 %v2971_v31, %v1506_v45  ;;  %v1741_v50 = vadd.f32 %v2973_v32, %v1628_v46 }
 0x1b6   : > { %1818 = vst [vmem:[%s2985_s12] sm:$0xff] %v2146_v47  ;;  %1819 = vst [vmem:[%s2985_s12 + $0x8] sm:$0xff] %v2147_v48  ;;  %v2148_v51 = vpack.c.bf16 %v1739_v49, %v1738_v43  ;;  %v2149_v52 = vpack.c.bf16 %v1741_v50, %v1740_v44 }
 0x1b8   : > { %1820 = vst [vmem:[%s2985_s12 + $0x10] sm:$0xff] %v2148_v51  ;;  %1821 = vst [vmem:[%s2985_s12 + $0x18] sm:$0xff] %v2149_v52  ;;  %v1510_v53 = vpop.f32.mrb[4].mxu0  ;;  %v1632_v54 = vpop.f32.mrb[4].mxu1 }
 0x1b9   : > { %v1742_v55 = vadd.f32 %v2967_v29, %v1510_v53  ;;  %v1744_v56 = vadd.f32 %v2969_v30, %v1632_v54  ;;  %v1512_v57 = vpop.f32.mrb[5].mxu0  ;;  %v1634_v58 = vpop.f32.mrb[5].mxu1 }
 0x1ba   : > { %v1743_v59 = vadd.f32 %v2971_v31, %v1512_v57  ;;  %v1745_v60 = vadd.f32 %v2973_v32, %v1634_v58  ;;  %v1514_v61 = vpop.f32.mrb[6].mxu0  ;;  %v1636_v62 = vpop.f32.mrb[6].mxu1 }
 0x1bb   : > { %v1746_v63 = vadd.f32 %v2967_v29, %v1514_v61  ;;  %v1748_v0 = vadd.f32 %v2969_v30, %v1636_v62  ;;  %v1516_v1 = vpop.f32.mrb[7].mxu0  ;;  %v1638_v2 = vpop.f32.mrb[7].mxu1 }
 0x1bc   : > { %v2150_v3 = vpack.c.bf16 %v1743_v59, %v1742_v55  ;;  %v2151_v4 = vpack.c.bf16 %v1745_v60, %v1744_v56  ;;  %v1747_v5 = vadd.f32 %v2971_v31, %v1516_v1  ;;  %v1749_v6 = vadd.f32 %v2973_v32, %v1638_v2 }
 0x1be   : > { %1822 = vst [vmem:[%s2985_s12 + $0x20] sm:$0xff] %v2150_v3  ;;  %1823 = vst [vmem:[%s2985_s12 + $0x28] sm:$0xff] %v2151_v4  ;;  %v2152_v7 = vpack.c.bf16 %v1747_v5, %v1746_v63  ;;  %v2153_v8 = vpack.c.bf16 %v1749_v6, %v1748_v0 }
 0x1c0   : > { %1824 = vst [vmem:[%s2985_s12 + $0x30] sm:$0xff] %v2152_v7  ;;  %1825 = vst [vmem:[%s2985_s12 + $0x38] sm:$0xff] %v2153_v8  ;;  %v1520_v9 = vpop.f32.mrb[12].mxu0  ;;  %v1642_v10 = vpop.f32.mrb[12].mxu1 }
 0x1c1   : > { %v1521_v11 = vadd.f32 %v1520_v9, %v2955_v14  ;;  %v1643_v12 = vadd.f32 %v1642_v10, %v2957_v15  ;;  %v1522_v13 = vpop.f32.mrb[13].mxu0  ;;  %v1644_v18 = vpop.f32.mrb[13].mxu1 }
 0x1c2   : > { %v1523_v19 = vadd.f32 %v1522_v13, %v2959_v16  ;;  %v1645_v20 = vadd.f32 %v1644_v18, %v2961_v17  ;;  %v1524_v21 = vpop.f32.mrb[14].mxu0  ;;  %v1646_v22 = vpop.f32.mrb[14].mxu1  ;;  %1834 = sbr.rel (!%p2517_p6) target bundleno = 465 (0x1d1), region = 67  ;;  %v1853_v16 = vld [vmem:[%s2985_s12] sm:$0xff] (%p2517_p6)  ;;  %v1855_v17 = vld [vmem:[%s2985_s12 + $0x8] sm:$0xff] (%p2517_p6) }
 0x1c3   : > { %v1750_v23 = vadd.f32 %v2967_v29, %v1521_v11  ;;  %v1752_v24 = vadd.f32 %v2969_v30, %v1643_v12  ;;  %v1525_v25 = vpop.f32.mrb[15].mxu0  ;;  %v1647_v26 = vpop.f32.mrb[15].mxu1  ;;  %v1857_v29 = vld [vmem:[%s2985_s12 + $0x10] sm:$0xff] (%p2517_p6)  ;;  %v1859_v30 = vld [vmem:[%s2985_s12 + $0x18] sm:$0xff] (%p2517_p6)  ;;  %1854 = vst [vmem:[%s1840_s23] sm:$0xff] (%p2517_p6), %v1853_v16  ;;  %1856 = vst [vmem:[%s1840_s23 + $0x8] sm:$0xff] (%p2517_p6), %v1855_v17 }
 0x1c4   : > { %v1751_v14 = vadd.f32 %v2971_v31, %v1523_v19  ;;  %v1753_v27 = vadd.f32 %v2973_v32, %v1645_v20  ;;  %1858 = vst [vmem:[%s1840_s23 + $0x40] sm:$0xff] (%p2517_p6), %v1857_v29  ;;  %1860 = vst [vmem:[%s1840_s23 + $0x48] sm:$0xff] (%p2517_p6), %v1859_v30 }
 0x1c5   : > { %v1861_v31 = vld [vmem:[%s2985_s12 + $0x20] sm:$0xff] (%p2517_p6)  ;;  %v1863_v32 = vld [vmem:[%s2985_s12 + $0x28] sm:$0xff] (%p2517_p6) }
 0x1c6   : > { %v2154_v15 = vpack.c.bf16 %v1751_v14, %v1750_v23  ;;  %v2155_v28 = vpack.c.bf16 %v1753_v27, %v1752_v24  ;;  %1862 = vst [vmem:[%s1840_s23 + $0x80] sm:$0xff] (%p2517_p6), %v1861_v31  ;;  %1864 = vst [vmem:[%s1840_s23 + $0x88] sm:$0xff] (%p2517_p6), %v1863_v32 }
 0x1c7   : > { %v1865_v33 = vld [vmem:[%s2985_s12 + $0x30] sm:$0xff] (%p2517_p6)  ;;  %v1867_v34 = vld [vmem:[%s2985_s12 + $0x38] sm:$0xff] (%p2517_p6) }
 0x1c8   : > { %1826 = vst [vmem:[%s2985_s12 + $0x40] sm:$0xff] %v2154_v15  ;;  %1827 = vst [vmem:[%s2985_s12 + $0x48] sm:$0xff] %v2155_v28 }
 0x1c9   : > { %1866 = vst [vmem:[%s1840_s23 + $0xc0] sm:$0xff] %v1865_v33  ;;  %1868 = vst [vmem:[%s1840_s23 + $0xc8] sm:$0xff] %v1867_v34 }
 0x1cf   : > { %v1869_v35 = vld [vmem:[%s2985_s12 + $0x40] sm:$0xff]  ;;  %v1871_v36 = vld [vmem:[%s2985_s12 + $0x48] sm:$0xff] }
 0x1d0   : > { %1870 = vst [vmem:[%s1840_s23 + $0x100] sm:$0xff] %v1869_v35  ;;  %1872 = vst [vmem:[%s1840_s23 + $0x108] sm:$0xff] %v1871_v36 }
 0x1d1 PF: > { %s13_s16 = sadd.s32 1, %s2460_s16   ;;  %s3049_s12 = smov %s2448_s13 }
 0x1d2   : > { %p10_p12 = scmp.ge.s32.totalorder %s13_s16, 6   ;;  %s3050_s13 = smov %s2522_s22 }
 0x1d3   : > { %s3051_s14 = smov %s2456_s15  ;;  %s3052_s15 = smov %s3054_s17 }
 0x1d4   :  { %12 = sbr.rel (!%p10_p12) target bundleno = 3 (0x3), region = 127 }

// kernel: crnn_forward.8
= control target key start
LH: loop header
LB: loop body
LE: loop exit
PB: predicated region body
PF: predicated region fallthrough
CT: control target
= control target key end

     0   :  { %s1839_s9 = smov 0   ;;  %s1841_s10 = smov 0   ;;  %s2168_s0 = inlined_call_operand.vmem [shape: bf16[5,8,2048], index: 0, kind: input, shape index: {}]   ;;  %s2169_s1 = inlined_call_operand.vmem [shape: bf16[2,256,1024], index: 1, kind: input, shape index: {}]   ;;  %s2170_s2 = inlined_call_operand.vmem [shape: f32[5,8,512], index: 2, kind: output, shape index: {}]  }
   0x1   :  { %s1843_s11 = smov 0   ;;  %s1845_s12 = smov 0  }
   0x2   :  { %s1847_s13 = smov 0  }
   0x3 LB: > { %s24_s14 = sadd.s32 1, %s1798_s12  ;;  %s1464_s15 = sadd.s32 4294967295, %s1802_s13   ;;  %s1802_s13 = sphi %s1847_s13, %s12_s13   ;;  %s1798_s12 = sphi %s1845_s12, %s2175_s12   ;;  %s1794_s11 = sphi %s1843_s11, %s2174_s11   ;;  %s1790_s10 = sphi %s1841_s10, %s2173_s10   ;;  %s1786_s9 = sphi %s1839_s9, %s2172_s9  }
   0x4   : > { %p26_p0 = scmp.ge.s32.totalorder %s24_s14, 2  ;;  %p46_p1 = scmp.ne.s32.totalorder %s1790_s10, %s1786_s9 }
   0x5   : > { %p47_p2 = scmp.eq.s32.totalorder %s1802_s13, 0  ;;  %p110_p4 = scmp.eq.s32.totalorder %s1464_s15, 1 }
   0x6   : > { %s2177_s14 = smov (%p26_p0, %s24_s14), 0  ;;  %s39_s17 = sadd.s32 1, %s1790_s10 }
   0x7   : > { %p48_p3 = por %p47_p2, %p46_p1  ;;  %s35_s16 = ssub.s32 %s1798_s12, %s2177_s14 }
   0x8   : > { %p37_p5 = scmp.eq.s32.totalorder %s35_s16, 0  ;;  %p1874_p6 = por %p110_p4, %p46_p1 }
   0x9   : > { %p1471_p7 = scmp.ge.s32.totalorder %s1802_s13, 2 }
   0xa   : > { %s1879_s19 = scalar_select %p37_p5, %s1790_s10, %s39_s17  }
   0xb   : > { %132 = sbr.rel (%p1471_p7) target bundleno = 33 (0x21), region = 16 }
  0x12   : > { %135 = sbr.rel (!%p48_p3) target bundleno = 33 (0x21), region = 20  ;;  %s137_s20 = sand.u32 (%p48_p3), 1, %s1790_s10  }
  0x13   : > { %s1623_s21 = sshll.u32 (%p48_p3), %s1798_s12, 5  ;;  %s1628_s22 = smul.u32 (%p48_p3), 160, %s137_s20 }
  0x14   : > { %s1887_s25 = scalar_lea.vmem (%p48_p3), %s2168_s0, %s1623_s21 }
  0x15   : > { %v161_v0 = vld [vmem:[%s1887_s25] sm:$0xff] (%p48_p3)  ;;  %v163_v1 = vld [vmem:[%s1887_s25 + $0x8] sm:$0xff] (%p48_p3)  ;;  %v165_v2 = vld [vmem:[%s1887_s25 + $0x10] sm:$0xff] (%p48_p3)  ;;  %s1895_s26 = scalar_lea.vmem (%p48_p3), [#allocation4], %s1628_s22 }
  0x16   : > { %v167_v3 = vld [vmem:[%s1887_s25 + $0x18] sm:$0xff] (%p48_p3)  ;;  %v169_v4 = vld [vmem:[%s1887_s25 + $0x40] sm:$0xff] (%p48_p3)  ;;  %v171_v5 = vld [vmem:[%s1887_s25 + $0x48] sm:$0xff] (%p48_p3)  ;;  %162 = vst [vmem:[%s1895_s26] sm:$0xff] (%p48_p3), %v161_v0 }
  0x17   : > { %164 = vst [vmem:[%s1895_s26 + $0x8] sm:$0xff] (%p48_p3), %v163_v1  ;;  %166 = vst [vmem:[%s1895_s26 + $0x10] sm:$0xff] (%p48_p3), %v165_v2  ;;  %v173_v6 = vld [vmem:[%s1887_s25 + $0x50] sm:$0xff] (%p48_p3)  ;;  %v175_v7 = vld [vmem:[%s1887_s25 + $0x58] sm:$0xff] (%p48_p3) }
  0x18   : > { %168 = vst [vmem:[%s1895_s26 + $0x18] sm:$0xff] (%p48_p3), %v167_v3  ;;  %170 = vst [vmem:[%s1895_s26 + $0x20] sm:$0xff] (%p48_p3), %v169_v4  ;;  %v177_v8 = vld [vmem:[%s1887_s25 + $0x80] sm:$0xff] (%p48_p3)  ;;  %v179_v9 = vld [vmem:[%s1887_s25 + $0x88] sm:$0xff] (%p48_p3) }
  0x19   : > { %172 = vst [vmem:[%s1895_s26 + $0x28] sm:$0xff] %v171_v5  ;;  %174 = vst [vmem:[%s1895_s26 + $0x30] sm:$0xff] %v173_v6  ;;  %v181_v10 = vld [vmem:[%s1887_s25 + $0x90] sm:$0xff]  ;;  %v183_v11 = vld [vmem:[%s1887_s25 + $0x98] sm:$0xff] }
  0x1a   : > { %176 = vst [vmem:[%s1895_s26 + $0x38] sm:$0xff] %v175_v7  ;;  %178 = vst [vmem:[%s1895_s26 + $0x40] sm:$0xff] %v177_v8  ;;  %v185_v12 = vld [vmem:[%s1887_s25 + $0xc0] sm:$0xff]  ;;  %v187_v13 = vld [vmem:[%s1887_s25 + $0xc8] sm:$0xff] }
  0x1b   : > { %180 = vst [vmem:[%s1895_s26 + $0x48] sm:$0xff] %v179_v9  ;;  %182 = vst [vmem:[%s1895_s26 + $0x50] sm:$0xff] %v181_v10  ;;  %v189_v14 = vld [vmem:[%s1887_s25 + $0xd0] sm:$0xff]  ;;  %v191_v15 = vld [vmem:[%s1887_s25 + $0xd8] sm:$0xff] }
  0x1c   : > { %184 = vst [vmem:[%s1895_s26 + $0x58] sm:$0xff] %v183_v11  ;;  %186 = vst [vmem:[%s1895_s26 + $0x60] sm:$0xff] %v185_v12  ;;  %v193_v16 = vld [vmem:[%s1887_s25 + $0x100] sm:$0xff]  ;;  %v195_v17 = vld [vmem:[%s1887_s25 + $0x108] sm:$0xff] }
  0x1d   : > { %188 = vst [vmem:[%s1895_s26 + $0x68] sm:$0xff] %v187_v13  ;;  %190 = vst [vmem:[%s1895_s26 + $0x70] sm:$0xff] %v189_v14  ;;  %v197_v18 = vld [vmem:[%s1887_s25 + $0x110] sm:$0xff]  ;;  %v199_v19 = vld [vmem:[%s1887_s25 + $0x118] sm:$0xff] }
  0x1e   : > { %192 = vst [vmem:[%s1895_s26 + $0x78] sm:$0xff] %v191_v15  ;;  %194 = vst [vmem:[%s1895_s26 + $0x80] sm:$0xff] %v193_v16 }
  0x1f   : > { %196 = vst [vmem:[%s1895_s26 + $0x88] sm:$0xff] %v195_v17  ;;  %198 = vst [vmem:[%s1895_s26 + $0x90] sm:$0xff] %v197_v18 }
  0x20   : > { %200 = vst [vmem:[%s1895_s26 + $0x98] sm:$0xff] %v199_v19 }
  0x21 PF: > { %p1475_p8 = scmp.ge.s32.totalorder %s1802_s13, 1  ;;  %p213_p9 = scmp.lt.s32.totalorder %s1802_s13, 3 }
  0x23   : > { %p214_p10 = pnand %p1475_p8, %p213_p9 }
  0x24   : > { %s220_s27 = sand.u32 (!%p214_p10), 1, %s1786_s9   ;;  %p250_p11 = scmp.lt.s32.totalorder (!%p214_p10), %s1794_s11, 1  ;;  %v1949_v20 = vmov (!%p214_p10), 0.0   ;;  %v1951_v21 = vmov (!%p214_p10), 0.0   ;;  %v1953_v22 = vmov (!%p214_p10), 0.0   ;;  %v1955_v23 = vmov (!%p214_p10), 0.0  }
  0x25   : > { %217 = sbr.rel (%p214_p10) target bundleno = 439 (0x1b7), region = 47  ;;  %s1478_s29 = sshll.u32 (!%p214_p10), %s1794_s11, 1 }
  0x26   : > { %s1935_s28 = smul.u32 (!%p214_p10), 160, %s220_s27  ;;  %s1938_s3 = ssub.s32 (!%p214_p10), 1, %s1478_s29 }
  0x27   : > { %s1630_s30 = smul.u32 (!%p214_p10), 80, %s220_s27  ;;  %s1957_s9 = smov (!%p214_p10), 0  }
  0x28   : > { %s222_s15 = scalar_lea.vmem (!%p214_p10), [#allocation4], %s1935_s28 }
  0x29   : > { %s1947_s16 = scalar_lea.vmem (!%p214_p10), [#allocation5], %s1630_s30 }
  0x2c   : > { %s251_s4 = scalar_select %p250_p11, %s1794_s11, 1 }
  0x2e   : > { %s1624_s5 = sshll.u32 %s251_s4, 10 }
  0x2f   : > { %s1944_s8 = scalar_lea.vmem %s2169_s1, %s1624_s5 }
  0x30 LB: >> { %v295_v24 = vld [vmem:[%s1944_s8] sm:$0xff]  ;;  %v296_v26 = vld [vmem:[%s1944_s8 + $0x8] sm:$0xff]  ;;  %v1984_v42 = vpack.c.bf16 %v1814_v22, %v1814_v22  ;;  %s291_s17 = smul.u32 %s1822_s9, %s1938_s3  ;;  %s1479_s20 = sshll.u32 %s1794_s11, 2  ;;  %s1822_s9 = sphi %s1957_s9, %s282_s9   ;;  %v1818_v23 = vphi %v1955_v23, %v1296_v23   ;;  %v1814_v22 = vphi %v1953_v22, %v1297_v22   ;;  %v1810_v21 = vphi %v1951_v21, %v1292_v21   ;;  %v1806_v20 = vphi %v1949_v20, %v1293_v20  }
  0x31   : >> { %v299_v25 = vld [vmem:[%s1944_s8 + $0x20] sm:$0xff]  ;;  %v300_v28 = vld [vmem:[%s1944_s8 + $0x28] sm:$0xff]  ;;  %s282_s9 = sadd.s32 1, %s1822_s9  }
  0x32   : >> { %v1481_v27 = vcombine.high %v295_v24, %v299_v25  ;;  %v1480_v29 = vcombine.low %v295_v24, %v299_v25  ;;  %v303_v30 = vld [vmem:[%s1944_s8 + $0x40] sm:$0xff]  ;;  %v1483_v32 = vcombine.high %v296_v26, %v300_v28  ;;  %v1482_v33 = vcombine.low %v296_v26, %v300_v28  ;;  %v304_v35 = vld [vmem:[%s1944_s8 + $0x48] sm:$0xff]  ;;  %1095 = vmatprep.mubr.bf16.mxu0 %v1984_v42  ;;  %s2117_s21 = sadd.s32 %s1479_s20, %s291_s17  ;;  %p281_p12 = scmp.ge.s32.totalorder %s282_s9, 5 }
  0x33   : >> { %v307_v31 = vld [vmem:[%s1944_s8 + $0x60] sm:$0xff]  ;;  %v308_v36 = vld [vmem:[%s1944_s8 + $0x68] sm:$0xff]  ;;  %1136 = vmatprep.mubr.bf16.mxu1 %v1984_v42  ;;  %s1625_s22 = sshll.u32 %s2117_s21, 5  ;;  %s1626_s24 = sshll.u32 %s2117_s21, 4 }
  0x34   : >> { %v1489_v34 = vcombine.high %v303_v30, %v307_v31  ;;  %v311_v37 = vld [vmem:[%s1944_s8 + $0x80] sm:$0xff]  ;;  %1063 = vmatprep.subr.bf16.mxu0 %v1481_v27  ;;  %v1491_v38 = vcombine.high %v304_v35, %v308_v36  ;;  %v312_v40 = vld [vmem:[%s1944_s8 + $0x88] sm:$0xff]  ;;  %1104 = vmatprep.subr.bf16.mxu1 %v1483_v32  ;;  %v1488_v43 = vcombine.low %v303_v30, %v307_v31  ;;  %s1229_s23 = scalar_lea.vmem %s222_s15, %s1625_s22 [#allocation4]  ;;  %s1300_s25 = scalar_lea.vmem %s1947_s16, %s1626_s24 [#allocation5] }
  0x35   : >> { %v315_v39 = vld [vmem:[%s1944_s8 + $0xa0] sm:$0xff]  ;;  %v316_v41 = vld [vmem:[%s1944_s8 + $0xa8] sm:$0xff]  ;;  %1064 = vmatpush1.bf16.msra.mxu0 %v1480_v29  ;;  %1105 = vmatpush1.bf16.msra.mxu1 %v1482_v33  ;;  %v1490_v44 = vcombine.low %v304_v35, %v308_v36 }
  0x36   : >> { %1065 = vmatprep.subr.bf16.mxu0 %v1489_v34  ;;  %v1497_v45 = vcombine.high %v311_v37, %v315_v39  ;;  %1106 = vmatprep.subr.bf16.mxu1 %v1491_v38  ;;  %v1499_v46 = vcombine.high %v312_v40, %v316_v41  ;;  %v319_v47 = vld [vmem:[%s1944_s8 + $0xc0] sm:$0xff]  ;;  %v320_v49 = vld [vmem:[%s1944_s8 + $0xc8] sm:$0xff]  ;;  %v1496_v51 = vcombine.low %v311_v37, %v315_v39 }
  0x37   : >> { %v323_v48 = vld [vmem:[%s1944_s8 + $0xe0] sm:$0xff]  ;;  %v324_v50 = vld [vmem:[%s1944_s8 + $0xe8] sm:$0xff]  ;;  %v1498_v52 = vcombine.low %v312_v40, %v316_v41 }
  0x38   : >> { %v1505_v53 = vcombine.high %v319_v47, %v323_v48  ;;  %v1507_v54 = vcombine.high %v320_v49, %v324_v50  ;;  %v327_v55 = vld [vmem:[%s1944_s8 + $0x100] sm:$0xff]  ;;  %v328_v57 = vld [vmem:[%s1944_s8 + $0x108] sm:$0xff]  ;;  %v1504_v59 = vcombine.low %v319_v47, %v323_v48  ;;  %v1506_v60 = vcombine.low %v320_v49, %v324_v50 }
  0x39   : >> { %1066 = vmatpush1.bf16.msra.mxu0 %v1488_v43  ;;  %1107 = vmatpush1.bf16.msra.mxu1 %v1490_v44  ;;  %v331_v56 = vld [vmem:[%s1944_s8 + $0x120] sm:$0xff]  ;;  %v332_v58 = vld [vmem:[%s1944_s8 + $0x128] sm:$0xff] }
  0x3a   : >> { %1067 = vmatprep.subr.bf16.mxu0 %v1497_v45  ;;  %1108 = vmatprep.subr.bf16.mxu1 %v1499_v46  ;;  %v1513_v61 = vcombine.high %v327_v55, %v331_v56  ;;  %v1515_v62 = vcombine.high %v328_v57, %v332_v58  ;;  %v335_v63 = vld [vmem:[%s1944_s8 + $0x140] sm:$0xff]  ;;  %v336_v1 = vld [vmem:[%s1944_s8 + $0x148] sm:$0xff]  ;;  %v1512_v3 = vcombine.low %v327_v55, %v331_v56 }
  0x3b   : >> { %v339_v0 = vld [vmem:[%s1944_s8 + $0x160] sm:$0xff]  ;;  %v340_v2 = vld [vmem:[%s1944_s8 + $0x168] sm:$0xff]  ;;  %v1514_v4 = vcombine.low %v328_v57, %v332_v58 }
  0x3c   : >> { %v1521_v5 = vcombine.high %v335_v63, %v339_v0  ;;  %v1523_v6 = vcombine.high %v336_v1, %v340_v2  ;;  %v343_v7 = vld [vmem:[%s1944_s8 + $0x180] sm:$0xff]  ;;  %v344_v9 = vld [vmem:[%s1944_s8 + $0x188] sm:$0xff]  ;;  %v1520_v11 = vcombine.low %v335_v63, %v339_v0  ;;  %v1522_v12 = vcombine.low %v336_v1, %v340_v2 }
  0x3d   : >> { %1068 = vmatpush1.bf16.msra.mxu0 %v1496_v51  ;;  %1109 = vmatpush1.bf16.msra.mxu1 %v1498_v52  ;;  %v347_v8 = vld [vmem:[%s1944_s8 + $0x1a0] sm:$0xff]  ;;  %v348_v10 = vld [vmem:[%s1944_s8 + $0x1a8] sm:$0xff] }
  0x3e   : >> { %1069 = vmatprep.subr.bf16.mxu0 %v1505_v53  ;;  %1110 = vmatprep.subr.bf16.mxu1 %v1507_v54  ;;  %v1529_v13 = vcombine.high %v343_v7, %v347_v8  ;;  %v1531_v14 = vcombine.high %v344_v9, %v348_v10  ;;  %v351_v15 = vld [vmem:[%s1944_s8 + $0x1c0] sm:$0xff]  ;;  %v352_v17 = vld [vmem:[%s1944_s8 + $0x1c8] sm:$0xff]  ;;  %v1528_v19 = vcombine.low %v343_v7, %v347_v8 }
  0x3f   : >> { %v355_v16 = vld [vmem:[%s1944_s8 + $0x1e0] sm:$0xff]  ;;  %v356_v18 = vld [vmem:[%s1944_s8 + $0x1e8] sm:$0xff]  ;;  %v1530_v22 = vcombine.low %v344_v9, %v348_v10 }
  0x40   : >> { %v1537_v24 = vcombine.high %v351_v15, %v355_v16  ;;  %v1539_v25 = vcombine.high %v352_v17, %v356_v18  ;;  %v359_v26 = vld [vmem:[%s1944_s8 + $0x200] sm:$0xff]  ;;  %v360_v28 = vld [vmem:[%s1944_s8 + $0x208] sm:$0xff]  ;;  %v1536_v30 = vcombine.low %v351_v15, %v355_v16  ;;  %v1538_v31 = vcombine.low %v352_v17, %v356_v18 }
  0x41   : >> { %1070 = vmatpush1.bf16.msra.mxu0 %v1504_v59  ;;  %1111 = vmatpush1.bf16.msra.mxu1 %v1506_v60  ;;  %v363_v27 = vld [vmem:[%s1944_s8 + $0x220] sm:$0xff]  ;;  %v364_v29 = vld [vmem:[%s1944_s8 + $0x228] sm:$0xff] }
  0x42   : >> { %1071 = vmatprep.subr.bf16.mxu0 %v1513_v61  ;;  %1112 = vmatprep.subr.bf16.mxu1 %v1515_v62  ;;  %v1545_v32 = vcombine.high %v359_v26, %v363_v27  ;;  %v1547_v33 = vcombine.high %v360_v28, %v364_v29  ;;  %v367_v34 = vld [vmem:[%s1944_s8 + $0x240] sm:$0xff]  ;;  %v368_v36 = vld [vmem:[%s1944_s8 + $0x248] sm:$0xff]  ;;  %v1544_v38 = vcombine.low %v359_v26, %v363_v27 }
  0x43   : >> { %v371_v35 = vld [vmem:[%s1944_s8 + $0x260] sm:$0xff]  ;;  %v372_v37 = vld [vmem:[%s1944_s8 + $0x268] sm:$0xff]  ;;  %v1546_v39 = vcombine.low %v360_v28, %v364_v29 }
  0x44   : >> { %v1553_v40 = vcombine.high %v367_v34, %v371_v35  ;;  %v1555_v41 = vcombine.high %v368_v36, %v372_v37  ;;  %v375_v43 = vld [vmem:[%s1944_s8 + $0x280] sm:$0xff]  ;;  %v376_v45 = vld [vmem:[%s1944_s8 + $0x288] sm:$0xff]  ;;  %v1552_v47 = vcombine.low %v367_v34, %v371_v35  ;;  %v1554_v48 = vcombine.low %v368_v36, %v372_v37 }
  0x45   : >> { %1072 = vmatpush1.bf16.msra.mxu0 %v1512_v3  ;;  %1113 = vmatpush1.bf16.msra.mxu1 %v1514_v4  ;;  %v379_v44 = vld [vmem:[%s1944_s8 + $0x2a0] sm:$0xff]  ;;  %v380_v46 = vld [vmem:[%s1944_s8 + $0x2a8] sm:$0xff] }
  0x46   : >> { %1073 = vmatprep.subr.bf16.mxu0 %v1521_v5  ;;  %1114 = vmatprep.subr.bf16.mxu1 %v1523_v6  ;;  %v1561_v49 = vcombine.high %v375_v43, %v379_v44  ;;  %v1563_v50 = vcombine.high %v376_v45, %v380_v46  ;;  %v383_v51 = vld [vmem:[%s1944_s8 + $0x2c0] sm:$0xff]  ;;  %v384_v53 = vld [vmem:[%s1944_s8 + $0x2c8] sm:$0xff]  ;;  %v1560_v55 = vcombine.low %v375_v43, %v379_v44  ;;  %v310_v43 = vld [vmem:[%s1944_s8 + $0x78] sm:$0xff] }
  0x47   : >> { %v387_v52 = vld [vmem:[%s1944_s8 + $0x2e0] sm:$0xff]  ;;  %v388_v54 = vld [vmem:[%s1944_s8 + $0x2e8] sm:$0xff]  ;;  %v1562_v56 = vcombine.low %v376_v45, %v380_v46 }
  0x48   : >> { %v1569_v57 = vcombine.high %v383_v51, %v387_v52  ;;  %v1571_v58 = vcombine.high %v384_v53, %v388_v54  ;;  %v391_v59 = vld [vmem:[%s1944_s8 + $0x300] sm:$0xff]  ;;  %v392_v61 = vld [vmem:[%s1944_s8 + $0x308] sm:$0xff]  ;;  %v1568_v63 = vcombine.low %v383_v51, %v387_v52  ;;  %v1570_v0 = vcombine.low %v384_v53, %v388_v54 }
  0x49   : >> { %1074 = vmatpush1.bf16.msra.mxu0 %v1520_v11  ;;  %1115 = vmatpush1.bf16.msra.mxu1 %v1522_v12  ;;  %v395_v60 = vld [vmem:[%s1944_s8 + $0x320] sm:$0xff]  ;;  %v396_v62 = vld [vmem:[%s1944_s8 + $0x328] sm:$0xff] }
  0x4a   : >> { %1075 = vmatprep.subr.bf16.mxu0 %v1529_v13  ;;  %1116 = vmatprep.subr.bf16.mxu1 %v1531_v14  ;;  %v1577_v1 = vcombine.high %v391_v59, %v395_v60  ;;  %v1579_v2 = vcombine.high %v392_v61, %v396_v62  ;;  %v399_v3 = vld [vmem:[%s1944_s8 + $0x340] sm:$0xff]  ;;  %v400_v5 = vld [vmem:[%s1944_s8 + $0x348] sm:$0xff]  ;;  %v1576_v7 = vcombine.low %v391_v59, %v395_v60 }
  0x4b   : >> { %v403_v4 = vld [vmem:[%s1944_s8 + $0x360] sm:$0xff]  ;;  %v404_v6 = vld [vmem:[%s1944_s8 + $0x368] sm:$0xff]  ;;  %v1578_v8 = vcombine.low %v392_v61, %v396_v62 }
  0x4c   : >> { %v1585_v9 = vcombine.high %v399_v3, %v403_v4  ;;  %v1587_v10 = vcombine.high %v400_v5, %v404_v6  ;;  %v407_v11 = vld [vmem:[%s1944_s8 + $0x380] sm:$0xff]  ;;  %v408_v13 = vld [vmem:[%s1944_s8 + $0x388] sm:$0xff]  ;;  %v1584_v15 = vcombine.low %v399_v3, %v403_v4  ;;  %v1586_v16 = vcombine.low %v400_v5, %v404_v6  ;;  %v337_v6 = vld [vmem:[%s1944_s8 + $0x150] sm:$0xff] }
  0x4d   : >> { %1076 = vmatpush1.bf16.msra.mxu0 %v1528_v19  ;;  %1117 = vmatpush1.bf16.msra.mxu1 %v1530_v22  ;;  %v411_v12 = vld [vmem:[%s1944_s8 + $0x3a0] sm:$0xff]  ;;  %v412_v14 = vld [vmem:[%s1944_s8 + $0x3a8] sm:$0xff] }
  0x4e   : >> { %1077 = vmatprep.subr.bf16.mxu0 %v1537_v24  ;;  %1118 = vmatprep.subr.bf16.mxu1 %v1539_v25  ;;  %v1593_v17 = vcombine.high %v407_v11, %v411_v12  ;;  %v1595_v18 = vcombine.high %v408_v13, %v412_v14  ;;  %v415_v19 = vld [vmem:[%s1944_s8 + $0x3c0] sm:$0xff]  ;;  %v416_v24 = vld [vmem:[%s1944_s8 + $0x3c8] sm:$0xff]  ;;  %v1592_v26 = vcombine.low %v407_v11, %v411_v12 }
  0x4f   : >> { %v419_v22 = vld [vmem:[%s1944_s8 + $0x3e0] sm:$0xff]  ;;  %v420_v25 = vld [vmem:[%s1944_s8 + $0x3e8] sm:$0xff]  ;;  %v1594_v27 = vcombine.low %v408_v13, %v412_v14  ;;  %v345_v14 = vld [vmem:[%s1944_s8 + $0x190] sm:$0xff] }
  0x50   : >> { %v1601_v28 = vcombine.high %v415_v19, %v419_v22  ;;  %v1603_v29 = vcombine.high %v416_v24, %v420_v25  ;;  %v1600_v34 = vcombine.low %v415_v19, %v419_v22  ;;  %v1602_v35 = vcombine.low %v416_v24, %v420_v25  ;;  %v353_v25 = vld [vmem:[%s1944_s8 + $0x1d0] sm:$0xff] }
  0x51   : >> { %1078 = vmatpush1.bf16.msra.mxu0 %v1536_v30  ;;  %1119 = vmatpush1.bf16.msra.mxu1 %v1538_v31  ;;  %v297_v30 = vld [vmem:[%s1944_s8 + $0x10] sm:$0xff] }
  0x52   : >> { %1079 = vmatprep.subr.bf16.mxu0 %v1545_v32  ;;  %1120 = vmatprep.subr.bf16.mxu1 %v1547_v33  ;;  %v301_v31 = vld [vmem:[%s1944_s8 + $0x30] sm:$0xff]  ;;  %v298_v32 = vld [vmem:[%s1944_s8 + $0x18] sm:$0xff] }
  0x53   : >> { %v302_v33 = vld [vmem:[%s1944_s8 + $0x38] sm:$0xff]  ;;  %v1485_v36 = vcombine.high %v297_v30, %v301_v31  ;;  %v1484_v44 = vcombine.low %v297_v30, %v301_v31 }
  0x54   : >> { %v1487_v37 = vcombine.high %v298_v32, %v302_v33  ;;  %v1486_v45 = vcombine.low %v298_v32, %v302_v33  ;;  %v361_v33 = vld [vmem:[%s1944_s8 + $0x210] sm:$0xff] }
  0x55   : >> { %1080 = vmatpush1.bf16.msra.mxu0 %v1544_v38  ;;  %1121 = vmatpush1.bf16.msra.mxu1 %v1546_v39  ;;  %v305_v38 = vld [vmem:[%s1944_s8 + $0x50] sm:$0xff] }
  0x56   : >> { %1081 = vmatprep.subr.bf16.mxu0 %v1553_v40  ;;  %1122 = vmatprep.subr.bf16.mxu1 %v1555_v41  ;;  %v309_v39 = vld [vmem:[%s1944_s8 + $0x70] sm:$0xff]  ;;  %v2048_v40 = vpack.c.bf16 %v1818_v23, %v1818_v23  ;;  %v306_v41 = vld [vmem:[%s1944_s8 + $0x58] sm:$0xff] }
  0x57   : >> { %v1493_v46 = vcombine.high %v305_v38, %v309_v39  ;;  %v314_v23 = vld [vmem:[%s1944_s8 + $0x98] sm:$0xff]  ;;  %v1492_v51 = vcombine.low %v305_v38, %v309_v39  ;;  %v1494_v52 = vcombine.low %v306_v41, %v310_v43 }
  0x59   : >> { %1082 = vmatpush1.bf16.msra.mxu0 %v1552_v47  ;;  %1123 = vmatpush1.bf16.msra.mxu1 %v1554_v48  ;;  %v1495_v47 = vcombine.high %v306_v41, %v310_v43  ;;  %v313_v48 = vld [vmem:[%s1944_s8 + $0x90] sm:$0xff] }
  0x5a   : >> { %1083 = vmatprep.subr.bf16.mxu0 %v1561_v49  ;;  %1124 = vmatprep.subr.bf16.mxu1 %v1563_v50  ;;  %v317_v49 = vld [vmem:[%s1944_s8 + $0xb0] sm:$0xff]  ;;  %v318_v50 = vld [vmem:[%s1944_s8 + $0xb8] sm:$0xff] }
  0x5b   : >> { %v1501_v53 = vcombine.high %v313_v48, %v317_v49  ;;  %v1503_v54 = vcombine.high %v314_v23, %v318_v50  ;;  %v1500_v59 = vcombine.low %v313_v48, %v317_v49  ;;  %v1502_v60 = vcombine.low %v314_v23, %v318_v50  ;;  %v369_v43 = vld [vmem:[%s1944_s8 + $0x250] sm:$0xff] }
  0x5c   : >> { %v377_v50 = vld [vmem:[%s1944_s8 + $0x290] sm:$0xff] }
  0x5d   : >> { %1084 = vmatpush1.bf16.msra.mxu0 %v1560_v55  ;;  %1125 = vmatpush1.bf16.msra.mxu1 %v1562_v56  ;;  %v321_v55 = vld [vmem:[%s1944_s8 + $0xd0] sm:$0xff] }
  0x5e   : >> { %1085 = vmatprep.subr.bf16.mxu0 %v1569_v57  ;;  %1126 = vmatprep.subr.bf16.mxu1 %v1571_v58  ;;  %v325_v56 = vld [vmem:[%s1944_s8 + $0xf0] sm:$0xff]  ;;  %v322_v57 = vld [vmem:[%s1944_s8 + $0xd8] sm:$0xff] }
  0x5f   : >> { %v326_v58 = vld [vmem:[%s1944_s8 + $0xf8] sm:$0xff]  ;;  %v1509_v61 = vcombine.high %v321_v55, %v325_v56  ;;  %v1508_v3 = vcombine.low %v321_v55, %v325_v56 }
  0x60   : >> { %v1511_v62 = vcombine.high %v322_v57, %v326_v58 }
  0x61   : >> { %1086 = vmatpush1.bf16.msra.mxu0 %v1568_v63  ;;  %1127 = vmatpush1.bf16.msra.mxu1 %v1570_v0  ;;  %v329_v63 = vld [vmem:[%s1944_s8 + $0x110] sm:$0xff] }
  0x62   : >> { %1087 = vmatprep.subr.bf16.mxu0 %v1577_v1  ;;  %1128 = vmatprep.subr.bf16.mxu1 %v1579_v2  ;;  %v333_v0 = vld [vmem:[%s1944_s8 + $0x130] sm:$0xff]  ;;  %v330_v1 = vld [vmem:[%s1944_s8 + $0x118] sm:$0xff] }
  0x63   : >> { %v334_v2 = vld [vmem:[%s1944_s8 + $0x138] sm:$0xff]  ;;  %v1517_v4 = vcombine.high %v329_v63, %v333_v0 }
  0x64   : >> { %v1519_v5 = vcombine.high %v330_v1, %v334_v2  ;;  %v1518_v11 = vcombine.low %v330_v1, %v334_v2  ;;  %v393_v2 = vld [vmem:[%s1944_s8 + $0x310] sm:$0xff] }
  0x65   : >> { %1088 = vmatpush1.bf16.msra.mxu0 %v1576_v7  ;;  %1129 = vmatpush1.bf16.msra.mxu1 %v1578_v8  ;;  %v341_v7 = vld [vmem:[%s1944_s8 + $0x170] sm:$0xff]  ;;  %v338_v8 = vld [vmem:[%s1944_s8 + $0x158] sm:$0xff] }
  0x66   : >> { %1089 = vmatprep.subr.bf16.mxu0 %v1585_v9  ;;  %1130 = vmatprep.subr.bf16.mxu1 %v1587_v10  ;;  %v342_v9 = vld [vmem:[%s1944_s8 + $0x178] sm:$0xff]  ;;  %v1516_v10 = vcombine.low %v329_v63, %v333_v0  ;;  %v1525_v12 = vcombine.high %v337_v6, %v341_v7 }
  0x67   : >> { %v1527_v13 = vcombine.high %v338_v8, %v342_v9  ;;  %v1526_v19 = vcombine.low %v338_v8, %v342_v9  ;;  %v401_v9 = vld [vmem:[%s1944_s8 + $0x350] sm:$0xff] }
  0x69   : >> { %1090 = vmatpush1.bf16.msra.mxu0 %v1584_v15  ;;  %1131 = vmatpush1.bf16.msra.mxu1 %v1586_v16  ;;  %v349_v15 = vld [vmem:[%s1944_s8 + $0x1b0] sm:$0xff]  ;;  %v346_v16 = vld [vmem:[%s1944_s8 + $0x198] sm:$0xff] }
  0x6a   : >> { %1091 = vmatprep.subr.bf16.mxu0 %v1593_v17  ;;  %1132 = vmatprep.subr.bf16.mxu1 %v1595_v18  ;;  %v350_v17 = vld [vmem:[%s1944_s8 + $0x1b8] sm:$0xff]  ;;  %v1524_v18 = vcombine.low %v337_v6, %v341_v7  ;;  %v1533_v22 = vcombine.high %v345_v14, %v349_v15 }
  0x6b   : >> { %v1535_v24 = vcombine.high %v346_v16, %v350_v17  ;;  %v1534_v30 = vcombine.low %v346_v16, %v350_v17  ;;  %v409_v17 = vld [vmem:[%s1944_s8 + $0x390] sm:$0xff] }
  0x6d   : >> { %1092 = vmatpush1.bf16.msra.mxu0 %v1592_v26  ;;  %1133 = vmatpush1.bf16.msra.mxu1 %v1594_v27  ;;  %v357_v26 = vld [vmem:[%s1944_s8 + $0x1f0] sm:$0xff]  ;;  %v354_v27 = vld [vmem:[%s1944_s8 + $0x1d8] sm:$0xff] }
  0x6e   : >> { %1093 = vmatprep.subr.bf16.mxu0 %v1601_v28  ;;  %1134 = vmatprep.subr.bf16.mxu1 %v1603_v29  ;;  %v358_v28 = vld [vmem:[%s1944_s8 + $0x1f8] sm:$0xff]  ;;  %v1532_v29 = vcombine.low %v345_v14, %v349_v15  ;;  %v1541_v31 = vcombine.high %v353_v25, %v357_v26 }
  0x6f   : >> { %v1543_v32 = vcombine.high %v354_v27, %v358_v28  ;;  %v1542_v38 = vcombine.low %v354_v27, %v358_v28  ;;  %v417_v28 = vld [vmem:[%s1944_s8 + $0x3d0] sm:$0xff] }
  0x71   : >> { %1094 = vmatpush1.bf16.msra.mxu0 %v1600_v34  ;;  %1135 = vmatpush1.bf16.msra.mxu1 %v1602_v35  ;;  %v365_v34 = vld [vmem:[%s1944_s8 + $0x230] sm:$0xff]  ;;  %v362_v35 = vld [vmem:[%s1944_s8 + $0x218] sm:$0xff] }
  0x72   : >> { %1145 = vmatprep.subr.bf16.mxu0 %v1485_v36  ;;  %1186 = vmatprep.subr.bf16.mxu1 %v1487_v37  ;;  %v366_v36 = vld [vmem:[%s1944_s8 + $0x238] sm:$0xff]  ;;  %v1540_v37 = vcombine.low %v353_v25, %v357_v26  ;;  %v1549_v39 = vcombine.high %v361_v33, %v365_v34 }
  0x73   : >> { %v1551_v41 = vcombine.high %v362_v35, %v366_v36  ;;  %v1550_v48 = vcombine.low %v362_v35, %v366_v36 }
  0x74   : >> { %1096 = vmatmul.mubr.bf16.vlgmr.msra.gmra.mrb[0].mxu0 %v2048_v40  ;;  %1137 = vmatmul.mubr.bf16.vlgmr.msra.gmra.mrb[0].mxu1 %v2048_v40 }
  0x75   : >> { %1146 = vmatpush1.bf16.msra.mxu0 %v1484_v44  ;;  %1187 = vmatpush1.bf16.msra.mxu1 %v1486_v45  ;;  %v373_v44 = vld [vmem:[%s1944_s8 + $0x270] sm:$0xff]  ;;  %v370_v45 = vld [vmem:[%s1944_s8 + $0x258] sm:$0xff] }
  0x76   : >> { %1147 = vmatprep.subr.bf16.mxu0 %v1493_v46  ;;  %1188 = vmatprep.subr.bf16.mxu1 %v1495_v47  ;;  %v374_v46 = vld [vmem:[%s1944_s8 + $0x278] sm:$0xff]  ;;  %v1548_v47 = vcombine.low %v361_v33, %v365_v34  ;;  %v1557_v49 = vcombine.high %v369_v43, %v373_v44 }
  0x77   : >> { %1177 = vmatprep.mubr.bf16.mxu0 %v1984_v42  ;;  %1218 = vmatprep.mubr.bf16.mxu1 %v1984_v42  ;;  %v1510_v42 = vcombine.low %v322_v57, %v326_v58  ;;  %v1559_v23 = vcombine.high %v370_v45, %v374_v46  ;;  %v1558_v55 = vcombine.low %v370_v45, %v374_v46  ;;  %v385_v58 = vld [vmem:[%s1944_s8 + $0x2d0] sm:$0xff] }
  0x79   : >> { %1148 = vmatpush1.bf16.msra.mxu0 %v1492_v51  ;;  %1189 = vmatpush1.bf16.msra.mxu1 %v1494_v52  ;;  %v381_v51 = vld [vmem:[%s1944_s8 + $0x2b0] sm:$0xff]  ;;  %v378_v52 = vld [vmem:[%s1944_s8 + $0x298] sm:$0xff] }
  0x7a   : >> { %1149 = vmatprep.subr.bf16.mxu0 %v1501_v53  ;;  %1190 = vmatprep.subr.bf16.mxu1 %v1503_v54  ;;  %v382_v53 = vld [vmem:[%s1944_s8 + $0x2b8] sm:$0xff]  ;;  %v1556_v54 = vcombine.low %v369_v43, %v373_v44  ;;  %v1565_v56 = vcombine.high %v377_v50, %v381_v51 }
  0x7b   : >> { %v1567_v57 = vcombine.high %v378_v52, %v382_v53  ;;  %v1566_v63 = vcombine.low %v378_v52, %v382_v53 }
  0x7d   : >> { %1150 = vmatpush1.bf16.msra.mxu0 %v1500_v59  ;;  %1191 = vmatpush1.bf16.msra.mxu1 %v1502_v60  ;;  %v389_v59 = vld [vmem:[%s1944_s8 + $0x2f0] sm:$0xff]  ;;  %v386_v60 = vld [vmem:[%s1944_s8 + $0x2d8] sm:$0xff] }
  0x7e   : >> { %1151 = vmatprep.subr.bf16.mxu0 %v1509_v61  ;;  %1192 = vmatprep.subr.bf16.mxu1 %v1511_v62  ;;  %v390_v61 = vld [vmem:[%s1944_s8 + $0x2f8] sm:$0xff]  ;;  %v1564_v62 = vcombine.low %v377_v50, %v381_v51  ;;  %v1573_v0 = vcombine.high %v385_v58, %v389_v59 }
  0x7f   : >> { %v1575_v1 = vcombine.high %v386_v60, %v390_v61  ;;  %v1574_v6 = vcombine.low %v386_v60, %v390_v61 }
  0x81   : >> { %1152 = vmatpush1.bf16.msra.mxu0 %v1508_v3  ;;  %1193 = vmatpush1.bf16.msra.mxu1 %v1510_v42  ;;  %v397_v3 = vld [vmem:[%s1944_s8 + $0x330] sm:$0xff]  ;;  %v394_v42 = vld [vmem:[%s1944_s8 + $0x318] sm:$0xff] }
  0x82   : >> { %1153 = vmatprep.subr.bf16.mxu0 %v1517_v4  ;;  %1194 = vmatprep.subr.bf16.mxu1 %v1519_v5  ;;  %v398_v4 = vld [vmem:[%s1944_s8 + $0x338] sm:$0xff]  ;;  %v1572_v5 = vcombine.low %v385_v58, %v389_v59  ;;  %v1581_v7 = vcombine.high %v393_v2, %v397_v3 }
  0x83   : >> { %v1583_v8 = vcombine.high %v394_v42, %v398_v4  ;;  %v1582_v14 = vcombine.low %v394_v42, %v398_v4 }
  0x85   : >> { %1154 = vmatpush1.bf16.msra.mxu0 %v1516_v10  ;;  %1195 = vmatpush1.bf16.msra.mxu1 %v1518_v11  ;;  %v405_v10 = vld [vmem:[%s1944_s8 + $0x370] sm:$0xff]  ;;  %v402_v11 = vld [vmem:[%s1944_s8 + $0x358] sm:$0xff] }
  0x86   : >> { %1155 = vmatprep.subr.bf16.mxu0 %v1525_v12  ;;  %1196 = vmatprep.subr.bf16.mxu1 %v1527_v13  ;;  %v406_v12 = vld [vmem:[%s1944_s8 + $0x378] sm:$0xff]  ;;  %v1580_v13 = vcombine.low %v393_v2, %v397_v3  ;;  %v1589_v15 = vcombine.high %v401_v9, %v405_v10 }
  0x87   : >> { %v1591_v16 = vcombine.high %v402_v11, %v406_v12  ;;  %v1590_v25 = vcombine.low %v402_v11, %v406_v12  ;;  %v1233_v2 = vld [vmem:[%s1229_s23 + $0x18] sm:$0xff] }
  0x89   : >> { %1156 = vmatpush1.bf16.msra.mxu0 %v1524_v18  ;;  %1197 = vmatpush1.bf16.msra.mxu1 %v1526_v19  ;;  %v413_v18 = vld [vmem:[%s1944_s8 + $0x3b0] sm:$0xff]  ;;  %v410_v19 = vld [vmem:[%s1944_s8 + $0x398] sm:$0xff] }
  0x8a   : >> { %1157 = vmatprep.subr.bf16.mxu0 %v1533_v22  ;;  %1198 = vmatprep.subr.bf16.mxu1 %v1535_v24  ;;  %v414_v22 = vld [vmem:[%s1944_s8 + $0x3b8] sm:$0xff]  ;;  %v1588_v24 = vcombine.low %v401_v9, %v405_v10  ;;  %v1597_v26 = vcombine.high %v409_v17, %v413_v18 }
  0x8b   : >> { %v1599_v27 = vcombine.high %v410_v19, %v414_v22  ;;  %v1598_v33 = vcombine.low %v410_v19, %v414_v22 }
  0x8d   : >> { %1158 = vmatpush1.bf16.msra.mxu0 %v1532_v29  ;;  %1199 = vmatpush1.bf16.msra.mxu1 %v1534_v30  ;;  %v421_v29 = vld [vmem:[%s1944_s8 + $0x3f0] sm:$0xff]  ;;  %v418_v30 = vld [vmem:[%s1944_s8 + $0x3d8] sm:$0xff] }
  0x8e   : >> { %1159 = vmatprep.subr.bf16.mxu0 %v1541_v31  ;;  %1200 = vmatprep.subr.bf16.mxu1 %v1543_v32  ;;  %v422_v31 = vld [vmem:[%s1944_s8 + $0x3f8] sm:$0xff]  ;;  %v1596_v32 = vcombine.low %v409_v17, %v413_v18  ;;  %v1605_v34 = vcombine.high %v417_v28, %v421_v29  ;;  %v1604_v36 = vcombine.low %v417_v28, %v421_v29 }
  0x8f   : >> { %v1607_v35 = vcombine.high %v418_v30, %v422_v31 }
  0x91   : >> { %1160 = vmatpush1.bf16.msra.mxu0 %v1540_v37  ;;  %1201 = vmatpush1.bf16.msra.mxu1 %v1542_v38  ;;  %v1606_v37 = vcombine.low %v418_v30, %v422_v31 }
  0x92   : >> { %1161 = vmatprep.subr.bf16.mxu0 %v1549_v39  ;;  %1202 = vmatprep.subr.bf16.mxu1 %v1551_v41 }
  0x95   : >> { %1162 = vmatpush1.bf16.msra.mxu0 %v1548_v47  ;;  %1203 = vmatpush1.bf16.msra.mxu1 %v1550_v48  ;;  %v1230_v48 = vld [vmem:[%s1229_s23] sm:$0xff] }
  0x96   : >> { %1163 = vmatprep.subr.bf16.mxu0 %v1557_v49  ;;  %1204 = vmatprep.subr.bf16.mxu1 %v1559_v23  ;;  %v1231_v49 = vld [vmem:[%s1229_s23 + $0x8] sm:$0xff]  ;;  %v1234_v23 = vunpack.c.l.bf16 %v1230_v48  ;;  %v1235_v50 = vunpack.c.h.bf16 %v1230_v48 }
  0x97   : >> { %v1237_v51 = vunpack.c.h.bf16 %v1231_v49 }
  0x99   : >> { %1164 = vmatpush1.bf16.msra.mxu0 %v1556_v54  ;;  %1205 = vmatpush1.bf16.msra.mxu1 %v1558_v55 }
  0x9a   : >> { %1165 = vmatprep.subr.bf16.mxu0 %v1565_v56  ;;  %1206 = vmatprep.subr.bf16.mxu1 %v1567_v57 }
  0x9d   : >> { %1166 = vmatpush1.bf16.msra.mxu0 %v1564_v62  ;;  %1207 = vmatpush1.bf16.msra.mxu1 %v1566_v63  ;;  %v1232_v63 = vld [vmem:[%s1229_s23 + $0x10] sm:$0xff] }
  0x9e   : >> { %1167 = vmatprep.subr.bf16.mxu0 %v1573_v0  ;;  %1208 = vmatprep.subr.bf16.mxu1 %v1575_v1  ;;  %v1238_v4 = vunpack.c.l.bf16 %v1232_v63 }
  0xa1   : >> { %1168 = vmatpush1.bf16.msra.mxu0 %v1572_v5  ;;  %1209 = vmatpush1.bf16.msra.mxu1 %v1574_v6  ;;  %v1240_v6 = vunpack.c.l.bf16 %v1233_v2 }
  0xa2   : >> { %1169 = vmatprep.subr.bf16.mxu0 %v1581_v7  ;;  %1210 = vmatprep.subr.bf16.mxu1 %v1583_v8  ;;  %v1239_v7 = vunpack.c.h.bf16 %v1232_v63  ;;  %v1241_v8 = vunpack.c.h.bf16 %v1233_v2 }
  0xa5   : >> { %1170 = vmatpush1.bf16.msra.mxu0 %v1580_v13  ;;  %1211 = vmatpush1.bf16.msra.mxu1 %v1582_v14 }
  0xa6   : >> { %1171 = vmatprep.subr.bf16.mxu0 %v1589_v15  ;;  %1212 = vmatprep.subr.bf16.mxu1 %v1591_v16 }
  0xa9   : >> { %1172 = vmatpush1.bf16.msra.mxu0 %v1588_v24  ;;  %1213 = vmatpush1.bf16.msra.mxu1 %v1590_v25 }
  0xaa   : >> { %1173 = vmatprep.subr.bf16.mxu0 %v1597_v26  ;;  %1214 = vmatprep.subr.bf16.mxu1 %v1599_v27 }
  0xad   : >> { %1174 = vmatpush1.bf16.msra.mxu0 %v1596_v32  ;;  %1215 = vmatpush1.bf16.msra.mxu1 %v1598_v33 }
  0xae   : >> { %1175 = vmatprep.subr.bf16.mxu0 %v1605_v34  ;;  %1216 = vmatprep.subr.bf16.mxu1 %v1607_v35 }
  0xb1   : >> { %1176 = vmatpush1.bf16.msra.mxu0 %v1604_v36  ;;  %1217 = vmatpush1.bf16.msra.mxu1 %v1606_v37 }
  0xb4   : >> { %1178 = vmatmul.mubr.bf16.vlgmr.msra.gmra.mrb[4].mxu0 %v2048_v40  ;;  %1219 = vmatmul.mubr.bf16.vlgmr.msra.gmra.mrb[4].mxu1 %v2048_v40  ;;  %v1236_v40 = vunpack.c.l.bf16 %v1231_v49 }
 0x147   : >> { %v1097_v38 = vpop.f32.mrb[0].mxu0  ;;  %v1138_v39 = vpop.f32.mrb[0].mxu1 }
 0x148   : >> { %v1099_v41 = vpop.f32.mrb[1].mxu0  ;;  %v1140_v43 = vpop.f32.mrb[1].mxu1  ;;  %v1242_v52 = vadd.f32 %v1234_v23, %v1097_v38  ;;  %v1244_v53 = vadd.f32 %v1236_v40, %v1138_v39 }
 0x149   : >> { %v1101_v44 = vpop.f32.mrb[2].mxu0  ;;  %v1142_v45 = vpop.f32.mrb[2].mxu1  ;;  %v1243_v54 = vadd.f32 %v1235_v50, %v1099_v41  ;;  %v1245_v55 = vadd.f32 %v1237_v51, %v1140_v43 }
 0x14a   : >> { %v1102_v46 = vpop.f32.mrb[3].mxu0  ;;  %v1143_v47 = vpop.f32.mrb[3].mxu1  ;;  %v1610_v56 = vmul.f32 -1.442695, %v1242_v52  ;;  %v1612_v57 = vmul.f32 -1.442695, %v1244_v53 }
 0x14b   : >> { %v1611_v58 = vmul.f32 -1.442695, %v1243_v54  ;;  %v1613_v59 = vmul.f32 -1.442695, %v1245_v55 }
 0x14c   : >> { %1712 = vpow2.f32 %v1610_v56 }
 0x14d   : >> { %1714 = vpow2.f32 %v1612_v57 }
 0x14e   : >> { %1716 = vpow2.f32 %v1611_v58 }
 0x14f   : >> { %1718 = vpow2.f32 %v1613_v59 }
 0x156   : >> { %v1713_v60 = vpop.eup %1712 }
 0x157   : >> { %v1715_v61 = vpop.eup %1714  ;;  %v1256_v1 = vadd.f32 1.0, %v1713_v60 }
 0x158   : >> { %v1717_v62 = vpop.eup %1716  ;;  %v1268_v3 = vadd.f32 1.0, %v1715_v61 }
 0x159   : >> { %v1719_v0 = vpop.eup %1718  ;;  %v1257_v42 = vadd.f32 1.0, %v1717_v62  ;;  %1720 = vrcp.f32 %v1256_v1 }
 0x15a   : >> { %v1269_v5 = vadd.f32 1.0, %v1719_v0  ;;  %1722 = vrcp.f32 %v1268_v3 }
 0x15b   : >> { %1724 = vrcp.f32 %v1257_v42 }
 0x15c   : >> { %1726 = vrcp.f32 %v1269_v5 }
 0x163   : >> { %v1721_v26 = vpop.eup %1720 }
 0x164   : >> { %v1723_v27 = vpop.eup %1722 }
 0x165   : >> { %v1725_v28 = vpop.eup %1724  ;;  %v1288_v32 = vmul.f32 %v1810_v21, %v1723_v27 }
 0x166   : >> { %v1727_v29 = vpop.eup %1726 }
 0x167   : >> { %v1289_v34 = vmul.f32 %v1806_v20, %v1727_v29 }
 0x187   : >> { %v1179_v9 = vpop.f32.mrb[4].mxu0  ;;  %v1220_v11 = vpop.f32.mrb[4].mxu1 }
 0x188   : >> { %v1246_v10 = vadd.f32 %v1238_v4, %v1179_v9  ;;  %v1181_v12 = vpop.f32.mrb[5].mxu0  ;;  %v1248_v13 = vadd.f32 %v1240_v6, %v1220_v11  ;;  %v1222_v15 = vpop.f32.mrb[5].mxu1 }
 0x189   : >> { %v1247_v14 = vadd.f32 %v1239_v7, %v1181_v12  ;;  %v1183_v16 = vpop.f32.mrb[6].mxu0  ;;  %v1249_v17 = vadd.f32 %v1241_v8, %v1222_v15  ;;  %v1224_v18 = vpop.f32.mrb[6].mxu1 }
 0x18a   : >> { %1728 = vtanh.f32 %v1246_v10  ;;  %v1184_v19 = vpop.f32.mrb[7].mxu0  ;;  %v1614_v22 = vmul.f32 -1.442695, %v1248_v13  ;;  %v1225_v24 = vpop.f32.mrb[7].mxu1 }
 0x18b   : >> { %1730 = vtanh.f32 %v1247_v14  ;;  %v1615_v25 = vmul.f32 -1.442695, %v1249_v17 }
 0x18c   : >> { %1732 = vpow2.f32 %v1614_v22 }
 0x18d   : >> { %1734 = vpow2.f32 %v1615_v25 }
 0x194   : >> { %v1729_v30 = vpop.eup %1728 }
 0x195   : >> { %v1731_v31 = vpop.eup %1730  ;;  %v1290_v33 = vmul.f32 %v1729_v30, %v1721_v26 }
 0x196   : >> { %v1291_v35 = vmul.f32 %v1731_v31, %v1725_v28  ;;  %v1733_v36 = vpop.eup %1732 }
 0x197   : >> { %v1292_v21 = vadd.f32 %v1290_v33, %v1288_v32   ;;  %v1735_v37 = vpop.eup %1734  ;;  %v1282_v38 = vadd.f32 1.0, %v1733_v36 }
 0x198   : >> { %v1293_v20 = vadd.f32 %v1291_v35, %v1289_v34   ;;  %v1283_v39 = vadd.f32 1.0, %v1735_v37 }
 0x199   : >> { %1736 = vtanh.f32 %v1292_v21 }
 0x19a   : >> { %1738 = vrcp.f32 %v1282_v38 }
 0x19b   : >> { %1740 = vtanh.f32 %v1293_v20 }
 0x19c   : >> { %1742 = vrcp.f32 %v1283_v39 }
 0x1a3   : >> { %v1737_v41 = vpop.eup %1736  ;;  %284 = sbr.rel (!%p281_p12) target bundleno = 48 (0x30), region = 125 }
 0x1a4   : >> { %v1739_v43 = vpop.eup %1738 }
 0x1a5   : >> { %v1741_v44 = vpop.eup %1740  ;;  %v1296_v23 = vmul.f32 %v1739_v43, %v1737_v41  }
 0x1a6   : >> { %v1743_v45 = vpop.eup %1742 }
 0x1a7   : >> { %1301 = vst [vmem:[%s1300_s25] sm:$0xff] %v1296_v23  ;;  %v1297_v22 = vmul.f32 %v1743_v45, %v1741_v44  }
 0x1a9   : >> { %1302 = vst [vmem:[%s1300_s25 + $0x8] sm:$0xff] %v1297_v22 }
 0x1aa   : > { %1313 = sbr.rel (!%p1874_p6) target bundleno = 439 (0x1b7), region = 66  ;;  %s1627_s26 = sshll.u32 (%p1874_p6), %s1794_s11, 4 }
 0x1ab   : > { %s1322_s28 = scalar_lea.vmem (%p1874_p6), %s2170_s2, %s1627_s26 }
 0x1b0   : > { %v1335_v46 = vld [vmem:[%s1947_s16] sm:$0xff] (%p1874_p6)  ;;  %v1337_v47 = vld [vmem:[%s1947_s16 + $0x8] sm:$0xff] (%p1874_p6)  ;;  %v1339_v48 = vld [vmem:[%s1947_s16 + $0x10] sm:$0xff] (%p1874_p6) }
 0x1b1   : > { %v1341_v20 = vld [vmem:[%s1947_s16 + $0x18] sm:$0xff]  ;;  %v1343_v21 = vld [vmem:[%s1947_s16 + $0x20] sm:$0xff]  ;;  %v1345_v49 = vld [vmem:[%s1947_s16 + $0x28] sm:$0xff]  ;;  %1336 = vst [vmem:[%s1322_s28] sm:$0xff] %v1335_v46 }
 0x1b2   : > { %1338 = vst [vmem:[%s1322_s28 + $0x8] sm:$0xff] %v1337_v47  ;;  %1340 = vst [vmem:[%s1322_s28 + $0x20] sm:$0xff] %v1339_v48  ;;  %v1347_v23 = vld [vmem:[%s1947_s16 + $0x30] sm:$0xff]  ;;  %v1349_v40 = vld [vmem:[%s1947_s16 + $0x38] sm:$0xff] }
 0x1b3   : > { %1342 = vst [vmem:[%s1322_s28 + $0x28] sm:$0xff] %v1341_v20  ;;  %1344 = vst [vmem:[%s1322_s28 + $0x40] sm:$0xff] %v1343_v21  ;;  %v1351_v50 = vld [vmem:[%s1947_s16 + $0x40] sm:$0xff]  ;;  %v1353_v51 = vld [vmem:[%s1947_s16 + $0x48] sm:$0xff] }
 0x1b4   : > { %1346 = vst [vmem:[%s1322_s28 + $0x48] sm:$0xff] %v1345_v49  ;;  %1348 = vst [vmem:[%s1322_s28 + $0x60] sm:$0xff] %v1347_v23 }
 0x1b5   : > { %1350 = vst [vmem:[%s1322_s28 + $0x68] sm:$0xff] %v1349_v40  ;;  %1352 = vst [vmem:[%s1322_s28 + $0x80] sm:$0xff] %v1351_v50 }
 0x1b6   : > { %1354 = vst [vmem:[%s1322_s28 + $0x88] sm:$0xff] %v1353_v51 }
 0x1b7 PF: > { %s12_s13 = sadd.s32 1, %s1802_s13   ;;  %s2172_s9 = smov %s1790_s10 }
 0x1b8   : > { %p9_p13 = scmp.ge.s32.totalorder %s12_s13, 4   ;;  %s2173_s10 = smov %s1879_s19 }
 0x1b9   : > { %s2174_s11 = smov %s1798_s12  ;;  %s2175_s12 = smov %s2177_s14 }
 0x1ba   :  { %11 = sbr.rel (!%p9_p13) target bundleno = 3 (0x3), region = 136 }

// kernel: crnn_forward.11
= control target key start
LH: loop header
LB: loop body
LE: loop exit
PB: predicated region body
PF: predicated region fallthrough
CT: control target
= control target key end

     0   :  { %s825_s1 = inlined_call_operand.vmem [shape: bf16[512,128], index: 1, kind: input, shape index: {}]   ;;  %s826_s0 = inlined_call_operand.vmem [shape: bf16[40,512], index: 0, kind: input, shape index: {}]   ;;  %s827_s2 = inlined_call_operand.vmem [shape: f32[1,128], index: 2, kind: input, shape index: {}]   ;;  %s828_s3 = inlined_call_operand.vmem [shape: f32[40,128], index: 3, kind: output, shape index: {}]  }
   0x1   :  { %v613_v0 = vld [vmem:[%s825_s1 + $0x40] sm:$0xff]   ;;  %v617_v4 = vld [vmem:[%s825_s1 + $0x48] sm:$0xff]   ;;  %v621_v8 = vld [vmem:[%s825_s1 + $0x50] sm:$0xff]  }
   0x2   :  { %v614_v1 = vld [vmem:[%s825_s1 + $0xc0] sm:$0xff]   ;;  %545 = vmatprep.subr.bf16.mxu0 %v613_v0  ;;  %v618_v5 = vld [vmem:[%s825_s1 + $0xc8] sm:$0xff]   ;;  %v622_v9 = vld [vmem:[%s825_s1 + $0xd0] sm:$0xff]  }
   0x3   :  { %v615_v2 = vld [vmem:[%s825_s1] sm:$0xff]   ;;  %579 = vmatprep.subr.bf16.mxu1 %v614_v1  ;;  %v619_v6 = vld [vmem:[%s825_s1 + $0x8] sm:$0xff]   ;;  %v623_v10 = vld [vmem:[%s825_s1 + $0x10] sm:$0xff]  }
   0x4   :  { %v616_v3 = vld [vmem:[%s825_s1 + $0x80] sm:$0xff]   ;;  %546 = vmatpush3.bf16.msra.mxu0 %v615_v2  ;;  %v620_v7 = vld [vmem:[%s825_s1 + $0x88] sm:$0xff]   ;;  %v624_v11 = vld [vmem:[%s825_s1 + $0x90] sm:$0xff]  }
   0x5   :  { %580 = vmatpush3.bf16.msra.mxu1 %v616_v3  ;;  %547 = vmatprep.subr.bf16.mxu0 %v617_v4  ;;  %v625_v12 = vld [vmem:[%s825_s1 + $0x58] sm:$0xff]   ;;  %v629_v16 = vld [vmem:[%s825_s1 + $0x60] sm:$0xff]   ;;  %v633_v20 = vld [vmem:[%s825_s1 + $0x68] sm:$0xff]  }
   0x6   :  { %581 = vmatprep.subr.bf16.mxu1 %v618_v5  ;;  %v626_v13 = vld [vmem:[%s825_s1 + $0xd8] sm:$0xff]   ;;  %v630_v17 = vld [vmem:[%s825_s1 + $0xe0] sm:$0xff]   ;;  %v634_v21 = vld [vmem:[%s825_s1 + $0xe8] sm:$0xff]  }
   0x7   :  { %v627_v14 = vld [vmem:[%s825_s1 + $0x18] sm:$0xff]   ;;  %v631_v18 = vld [vmem:[%s825_s1 + $0x20] sm:$0xff]   ;;  %v635_v22 = vld [vmem:[%s825_s1 + $0x28] sm:$0xff]  }
   0x8   :  { %548 = vmatpush3.bf16.msra.mxu0 %v619_v6  ;;  %v628_v15 = vld [vmem:[%s825_s1 + $0x98] sm:$0xff]   ;;  %v632_v19 = vld [vmem:[%s825_s1 + $0xa0] sm:$0xff]   ;;  %v636_v23 = vld [vmem:[%s825_s1 + $0xa8] sm:$0xff]  }
   0x9   :  { %582 = vmatpush3.bf16.msra.mxu1 %v620_v7  ;;  %549 = vmatprep.subr.bf16.mxu0 %v621_v8  ;;  %v637_v24 = vld [vmem:[%s825_s1 + $0x70] sm:$0xff]   ;;  %v641_v28 = vld [vmem:[%s825_s1 + $0x78] sm:$0xff]   ;;  %v37_v38 = vld [vmem:[%s826_s0 + $0x40] sm:$0xff] }
   0xa   :  { %583 = vmatprep.subr.bf16.mxu1 %v622_v9  ;;  %v638_v25 = vld [vmem:[%s825_s1 + $0xf0] sm:$0xff]   ;;  %v642_v29 = vld [vmem:[%s825_s1 + $0xf8] sm:$0xff]   ;;  %v38_v39 = vld [vmem:[%s826_s0 + $0x48] sm:$0xff]  ;;  %v509_v42 = vcombine.high %v37_v38, %v37_v38  ;;  %v508_v44 = vcombine.low %v37_v38, %v37_v38 }
   0xb   :  { %v639_v26 = vld [vmem:[%s825_s1 + $0x30] sm:$0xff]   ;;  %v643_v30 = vld [vmem:[%s825_s1 + $0x38] sm:$0xff]   ;;  %v511_v43 = vcombine.high %v38_v39, %v38_v39  ;;  %v510_v45 = vcombine.low %v38_v39, %v38_v39  ;;  %v544_v55 = vld [vmem:[%s827_s2] ss:$0 sm:$0xff] }
   0xc   :  { %550 = vmatpush3.bf16.msra.mxu0 %v623_v10  ;;  %v640_v27 = vld [vmem:[%s825_s1 + $0xb0] sm:$0xff]   ;;  %v644_v31 = vld [vmem:[%s825_s1 + $0xb8] sm:$0xff]  }
   0xd   :  { %584 = vmatpush3.bf16.msra.mxu1 %v624_v11  ;;  %551 = vmatprep.subr.bf16.mxu0 %v625_v12  ;;  %v645_v32 = vld [vmem:[%s826_s0] ss:$16 sps:$4 sm:$0xff]   ;;  %v647_v33 = vld [vmem:[%s826_s0 + $0x4] ss:$16 sps:$4 sm:$0xff]   ;;  %v648_v34 = vld [vmem:[%s826_s0 + $0x8] ss:$16 sps:$4 sm:$0xff]  }
   0xe   :  { %585 = vmatprep.subr.bf16.mxu1 %v626_v13  ;;  %v650_v35 = vld [vmem:[%s826_s0 + $0xc] ss:$16 sps:$4 sm:$0xff]   ;;  %381 = vmatprep.mubr.bf16.mxu0 %v647_v33  ;;  %v651_v36 = vld [vmem:[%s826_s0 + $0x24] ss:$16 sps:$4 sm:$0xff]   ;;  %v655_v40 = vld [vmem:[%s826_s0 + $0x20] ss:$16 sps:$4 sm:$0xff]  }
   0xf   :  { %437 = vmatprep.mubr.bf16.mxu1 %v650_v35  ;;  %v653_v37 = vld [vmem:[%s826_s0 + $0x2c] ss:$16 sps:$4 sm:$0xff]   ;;  %v656_v41 = vld [vmem:[%s826_s0 + $0x28] ss:$16 sps:$4 sm:$0xff]  }
  0x10   :  { %552 = vmatpush3.bf16.msra.mxu0 %v627_v14 }
  0x11   :  { %586 = vmatpush3.bf16.msra.mxu1 %v628_v15  ;;  %553 = vmatprep.subr.bf16.mxu0 %v629_v16 }
  0x12   :  { %587 = vmatprep.subr.bf16.mxu1 %v630_v17 }
  0x14   :  { %554 = vmatpush3.bf16.msra.mxu0 %v631_v18 }
  0x15   :  { %588 = vmatpush3.bf16.msra.mxu1 %v632_v19  ;;  %555 = vmatprep.subr.bf16.mxu0 %v633_v20 }
  0x16   :  { %589 = vmatprep.subr.bf16.mxu1 %v634_v21 }
  0x18   :  { %556 = vmatpush3.bf16.msra.mxu0 %v635_v22 }
  0x19   :  { %590 = vmatpush3.bf16.msra.mxu1 %v636_v23  ;;  %557 = vmatprep.subr.bf16.mxu0 %v637_v24 }
  0x1a   :  { %591 = vmatprep.subr.bf16.mxu1 %v638_v25 }
  0x1c   :  { %558 = vmatpush3.bf16.msra.mxu0 %v639_v26 }
  0x1d   :  { %592 = vmatpush3.bf16.msra.mxu1 %v640_v27  ;;  %559 = vmatprep.subr.bf16.mxu0 %v641_v28 }
  0x1e   :  { %593 = vmatprep.subr.bf16.mxu1 %v642_v29 }
  0x20   :  { %560 = vmatpush3.bf16.msra.mxu0 %v643_v30 }
  0x21   :  { %594 = vmatpush3.bf16.msra.mxu1 %v644_v31 }
  0x23   :  { %382 = vmatmul.mubr.bf16.vlgmr.msra.gmra.mrb[0].mxu0 %v645_v32 }
  0x24   :  { %438 = vmatmul.mubr.bf16.vlgmr.msra.gmra.mrb[0].mxu1 %v648_v34  ;;  %389 = vmatprep.mubr.bf16.mxu0 %v651_v36 }
  0x25   :  { %445 = vmatprep.mubr.bf16.mxu1 %v653_v37 }
  0x2b   :  { %390 = vmatmul.mubr.bf16.gmra.mrb[4].mxu0 %v655_v40 }
  0x2c   :  { %446 = vmatmul.mubr.bf16.gmra.mrb[4].mxu1 %v656_v41  ;;  %397 = vmatprep.mubr.bf16.mxu0 %v509_v42 }
  0x2d   :  { %453 = vmatprep.mubr.bf16.mxu1 %v511_v43 }
  0x33   :  { %398 = vmatmul.mubr.bf16.gmra.mrb[8].mxu0 %v508_v44 }
  0x34   :  { %454 = vmatmul.mubr.bf16.gmra.mrb[8].mxu1 %v510_v45 }
  0xf6   :  { %v561_v46 = vpop.f32.mrb[0].mxu0 }
  0xf7   :  { %v595_v47 = vpop.f32.mrb[0].mxu1  ;;  %v562_v48 = vpop.f32.mrb[1].mxu0 }
  0xf8   :  { %v563_v49 = vadd.f32 %v562_v48, %v561_v46  ;;  %v596_v50 = vpop.f32.mrb[1].mxu1  ;;  %v564_v51 = vpop.f32.mrb[2].mxu0 }
  0xf9   :  { %v597_v52 = vadd.f32 %v596_v50, %v595_v47  ;;  %v598_v53 = vpop.f32.mrb[2].mxu1  ;;  %v565_v54 = vpop.f32.mrb[3].mxu0 }
  0xfa   :  { %v566_v56 = vadd.f32 %v565_v54, %v564_v51  ;;  %v599_v57 = vpop.f32.mrb[3].mxu1 }
  0xfb   :  { %v440_v58 = vadd.f32 %v597_v52, %v563_v49  ;;  %v600_v59 = vadd.f32 %v599_v57, %v598_v53 }
  0xfd   :  { %v486_v60 = vadd.f32 %v544_v55, %v440_v58  ;;  %v443_v61 = vadd.f32 %v600_v59, %v566_v56 }
  0xfe   :  { %v567_v62 = vpop.f32.mrb[4].mxu0 }
  0xff   :  { %491 = vst [vmem:[%s828_s3] sm:$0xff] %v486_v60  ;;  %v487_v63 = vadd.f32 %v544_v55, %v443_v61  ;;  %v601_v0 = vpop.f32.mrb[4].mxu1  ;;  %v568_v1 = vpop.f32.mrb[5].mxu0 }
 0x100   :  { %v569_v2 = vadd.f32 %v568_v1, %v567_v62  ;;  %v602_v3 = vpop.f32.mrb[5].mxu1  ;;  %v570_v4 = vpop.f32.mrb[6].mxu0 }
 0x101   :  { %492 = vst [vmem:[%s828_s3 + $0x8] sm:$0xff] %v487_v63  ;;  %v603_v5 = vadd.f32 %v602_v3, %v601_v0  ;;  %v604_v6 = vpop.f32.mrb[6].mxu1  ;;  %v571_v7 = vpop.f32.mrb[7].mxu0 }
 0x102   :  { %v572_v8 = vadd.f32 %v571_v7, %v570_v4  ;;  %v605_v9 = vpop.f32.mrb[7].mxu1 }
 0x103   :  { %v448_v10 = vadd.f32 %v603_v5, %v569_v2  ;;  %v606_v11 = vadd.f32 %v605_v9, %v604_v6 }
 0x105   :  { %v488_v12 = vadd.f32 %v544_v55, %v448_v10  ;;  %v451_v13 = vadd.f32 %v606_v11, %v572_v8 }
 0x106   :  { %v573_v14 = vpop.f32.mrb[8].mxu0 }
 0x107   :  { %493 = vst [vmem:[%s828_s3 + $0x10] sm:$0xff] %v488_v12  ;;  %v489_v15 = vadd.f32 %v544_v55, %v451_v13  ;;  %v607_v16 = vpop.f32.mrb[8].mxu1  ;;  %v574_v17 = vpop.f32.mrb[9].mxu0 }
 0x108   :  { %v575_v18 = vadd.f32 %v574_v17, %v573_v14  ;;  %v608_v19 = vpop.f32.mrb[9].mxu1  ;;  %v576_v20 = vpop.f32.mrb[10].mxu0 }
 0x109   :  { %494 = vst [vmem:[%s828_s3 + $0x18] sm:$0xff] %v489_v15  ;;  %v609_v21 = vadd.f32 %v608_v19, %v607_v16  ;;  %v610_v22 = vpop.f32.mrb[10].mxu1  ;;  %v577_v23 = vpop.f32.mrb[11].mxu0 }
 0x10a   :  { %v611_v24 = vpop.f32.mrb[11].mxu1 }
 0x10b   :  { %v456_v25 = vadd.f32 %v609_v21, %v575_v18 }
 0x10d   :  { %v490_v26 = vadd.f32 %v544_v55, %v456_v25 }
 0x10f   :  { %495 = vst [vmem:[%s828_s3 + $0x20] sm:$0xff] %v490_v26 }

</bundles_post_ra>
